<compile_context>
chip_gen: v7x
topology: tpu7x:2x2x1
jax: 0.10.0
libtpu: 0.0.40
codegen_flags: <defaults>
</compile_context>

<pallas_src>
import functools

import jax
import jax.numpy as jnp
from jax.experimental import pallas as pl
from jax.experimental.pallas import tpu as pltpu


LANE = 128
SUBLANE_BF16 = 16                      # bf16 second-minor packing
TILE_M_MAX = 1024                      # big tiles amortize ~0.35us/step overhead
PATCH_TILE_BUDGET = 24 * 1024 * 1024   # double-buffered bf16 patch tile budget
VMEM_LIMIT_BYTES = 48 * 1024 * 1024    # <= v7x 64 MiB physical; fine on v5e/v6e


def _round_up(x, m):
    return (x + m - 1) // m * m


def _pad_dim(d):
    """Lane-dense padding only when it does not inflate small dims.

    Full-dim blocks are always legal, so dims < 128 stay natural (saves HBM
    bytes on layer-0 K / small Cout / final Cout=1)."""
    return d if d < LANE else _round_up(d, LANE)


def _pad2d(x, rows, cols):
    r, c = x.shape
    if r == rows and c == cols:
        return x
    return jnp.pad(x, ((0, rows - r), (0, cols - c)))


def _choose_tm(m, kp):
    """Largest M tile (multiple of 16, <= TILE_M_MAX) whose double-buffered
    bf16 patch slab fits the per-call budget (keeps v7x's 64 MiB VMEM safe)."""
    tm = min(TILE_M_MAX, _round_up(m, SUBLANE_BF16))
    while tm > SUBLANE_BF16 and 2 * tm * kp * 2 > PATCH_TILE_BUDGET:
        tm //= 2
    return max(SUBLANE_BF16, _round_up(tm, SUBLANE_BF16))


# ----------------------------- Pallas kernels ------------------------------

def _apply_act(out, act):
    if act == "leaky":
        return jnp.where(out >= 0.0, out, 0.2 * out)
    if act == "sigmoid":
        # numerically stable sigmoid, bounded in [0, 1]
        e = jnp.exp(-jnp.abs(out))
        return jnp.where(out >= 0.0, 1.0 / (1.0 + e), e / (1.0 + e))
    return out


def _conv_act_kernel(p_ref, w_ref, o_ref, *, act):
    """Conv-as-matmul (bf16 operands, f32 accumulate) + fused activation."""
    out = jnp.dot(p_ref[...], w_ref[...], preferred_element_type=jnp.float32)
    o_ref[...] = _apply_act(out, act).astype(o_ref.dtype)


def _conv_stats_kernel(p_ref, w_ref, o_ref, sum_ref, sq_ref):
    """Conv-as-matmul with fused BN pass-1 statistics.

    Per-tile partial sum / sum-of-squares (f32, from the MXU accumulator) are
    written to their own (1, 1, C) block so the M axis stays 'parallel'; the
    activation itself is stored as bf16."""
    out = jnp.dot(p_ref[...], w_ref[...], preferred_element_type=jnp.float32)
    sum_ref[0] = jnp.sum(out, axis=0, keepdims=True)
    sq_ref[0] = jnp.sum(out * out, axis=0, keepdims=True)
    o_ref[...] = out.astype(o_ref.dtype)


def _bn_apply_leaky_kernel(x_ref, scale_ref, shift_ref, o_ref):
    """y = LeakyReLU(x * scale + shift); bf16 in/out, f32 math."""
    y = x_ref[...].astype(jnp.float32) * scale_ref[...] + shift_ref[...]
    o_ref[...] = jnp.where(y >= 0.0, y, 0.2 * y).astype(o_ref.dtype)


# ------------------------------ call wrappers -------------------------------

def conv_act(patches, w_packed, act, out_dtype):
    """patches: [M, K] bf16.  w_packed: [Kp, Cp] bf16.  Returns [Mp, Cp]."""
    M, _ = patches.shape
    Kp, Cp = w_packed.shape
    tm = _choose_tm(M, Kp)
    Mp = _round_up(M, tm)
    p = _pad2d(patches, Mp, Kp)

    out_bytes = Mp * Cp * jnp.dtype(out_dtype).itemsize
    cost = pl.CostEstimate(
        flops=2 * Mp * Kp * Cp,
        transcendentals=Mp * Cp if act == "sigmoid" else 0,
        bytes_accessed=Mp * Kp * 2 + Kp * Cp * 2 + out_bytes)

    return pl.pallas_call(
        functools.partial(_conv_act_kernel, act=act),
        out_shape=jax.ShapeDtypeStruct((Mp, Cp), out_dtype),
        grid=(Mp // tm,),
        in_specs=[pl.BlockSpec((tm, Kp), lambda i: (i, 0)),
                  pl.BlockSpec((Kp, Cp), lambda i: (0, 0))],   # weight resident
        out_specs=pl.BlockSpec((tm, Cp), lambda i: (i, 0)),
        compiler_params=pltpu.CompilerParams(
            dimension_semantics=("parallel",),
            vmem_limit_bytes=VMEM_LIMIT_BYTES),
        cost_estimate=cost,
    )(p, w_packed)


def conv_with_stats(patches, w_packed):
    """Conv matmul + fused per-tile BN statistics.

    Returns (y_pad bf16 [Mp, Cp], sum [nt,1,Cp] f32, sumsq [nt,1,Cp] f32, tm)."""
    M, _ = patches.shape
    Kp, Cp = w_packed.shape
    tm = _choose_tm(M, Kp)
    Mp = _round_up(M, tm)
    nt = Mp // tm
    p = _pad2d(patches, Mp, Kp)

    cost = pl.CostEstimate(
        flops=2 * Mp * Kp * Cp + 3 * Mp * Cp,
        transcendentals=0,
        bytes_accessed=Mp * Kp * 2 + Kp * Cp * 2 + Mp * Cp * 2 + 2 * nt * Cp * 4)

    y, s, ss = pl.pallas_call(
        _conv_stats_kernel,
        out_shape=(jax.ShapeDtypeStruct((Mp, Cp), jnp.bfloat16),
                   jax.ShapeDtypeStruct((nt, 1, Cp), jnp.float32),
                   jax.ShapeDtypeStruct((nt, 1, Cp), jnp.float32)),
        grid=(nt,),
        in_specs=[pl.BlockSpec((tm, Kp), lambda i: (i, 0)),
                  pl.BlockSpec((Kp, Cp), lambda i: (0, 0))],
        out_specs=(pl.BlockSpec((tm, Cp), lambda i: (i, 0)),
                   pl.BlockSpec((1, 1, Cp), lambda i: (i, 0, 0)),
                   pl.BlockSpec((1, 1, Cp), lambda i: (i, 0, 0))),
        compiler_params=pltpu.CompilerParams(
            dimension_semantics=("parallel",),
            vmem_limit_bytes=VMEM_LIMIT_BYTES),
        cost_estimate=cost,
    )(p, w_packed)
    return y, s, ss, tm


def bn_apply_leaky(y_pad, tm, scale, shift):
    """Tiled y = LeakyReLU(y * scale + shift); bf16 output."""
    Mp, Cp = y_pad.shape
    cost = pl.CostEstimate(
        flops=4 * Mp * Cp, transcendentals=0,
        bytes_accessed=2 * Mp * Cp * 2 + 2 * Cp * 4)
    return pl.pallas_call(
        _bn_apply_leaky_kernel,
        out_shape=jax.ShapeDtypeStruct((Mp, Cp), jnp.bfloat16),
        grid=(Mp // tm,),
        in_specs=[pl.BlockSpec((tm, Cp), lambda i: (i, 0)),
                  pl.BlockSpec((1, Cp), lambda i: (0, 0)),
                  pl.BlockSpec((1, Cp), lambda i: (0, 0))],
        out_specs=pl.BlockSpec((tm, Cp), lambda i: (i, 0)),
        compiler_params=pltpu.CompilerParams(
            dimension_semantics=("parallel",),
            vmem_limit_bytes=VMEM_LIMIT_BYTES),
        cost_estimate=cost,
    )(y_pad, scale, shift)


def conv_bn_leaky(patches, w_packed, gamma_p, beta_p, m_real, eps=1e-5):
    """Conv -> BatchNorm (training-mode batch stats over N*H*W) -> LeakyReLU(0.2)."""
    y, s_t, ss_t, tm = conv_with_stats(patches, w_packed)
    s = jnp.sum(s_t, axis=0)          # (1, Cp); padded rows/channels are zero
    ss = jnp.sum(ss_t, axis=0)
    mean = s / m_real
    # TODO(synk): switch to mean-shifted accumulation if E[x^2]-E[x]^2 ever cancels.
    var = ss / m_real - mean * mean
    scale = gamma_p * jax.lax.rsqrt(var + eps)
    shift = beta_p - mean * scale
    return bn_apply_leaky(y, tm, scale, shift)


# ------------------------------ glue (plain JAX) ----------------------------

def im2col(x_nhwc, k, stride, pad):
    """Extract conv patches; rows [N*Ho*Wo, k*k*Cin] in (kh, kw, Cin) order.

    Dtype-preserving (bf16 in -> bf16 patches)."""
    if pad:
        x_nhwc = jnp.pad(x_nhwc, ((0, 0), (pad, pad), (pad, pad), (0, 0)))
    N, H, W, C = x_nhwc.shape
    Ho = (H - k) // stride + 1
    Wo = (W - k) // stride + 1
    slabs = []
    for i in range(k):
        for j in range(k):
            slabs.append(
                x_nhwc[:, i:i + stride * Ho:stride, j:j + stride * Wo:stride, :])
    p = jnp.stack(slabs, axis=3)                       # [N, Ho, Wo, k*k, C]
    p = p.reshape(N, Ho, Wo, k * k * C)
    return p.reshape(N * Ho * Wo, k * k * C), Ho, Wo


def torch_weight_to_matmul(w_oihw):
    """[Cout, Cin, kh, kw] -> [kh*kw*Cin, Cout] matching im2col row order."""
    cout, cin, kh, kw = w_oihw.shape
    return jnp.transpose(w_oihw, (2, 3, 1, 0)).reshape(kh * kw * cin, cout)


# ------------------------------ the module ----------------------------------

def init_discriminator_params(key, nc, ndf):
    """DCGAN-style init: conv weights N(0, 0.02), BN gamma=1 / beta=0.

    Weights stored packed [Kp, Cp] bf16; K/Cout padded only when >= 128."""
    chans = [nc, ndf, ndf * 2, ndf * 4, ndf * 8, 1]
    params = {}
    keys = jax.random.split(key, 5)
    for li in range(5):
        cin, cout = chans[li], chans[li + 1]
        w = 0.02 * jax.random.normal(keys[li], (cout, cin, 4, 4), jnp.float32)
        wm = torch_weight_to_matmul(w)                    # [16*cin, cout]
        kp = _pad_dim(16 * cin)
        cp = _pad_dim(cout)
        params[f"w{li}"] = _pad2d(wm, kp, cp).astype(jnp.bfloat16)
    for li in (1, 2, 3):
        c = chans[li + 1]
        cp = _pad_dim(c)
        params[f"gamma{li}"] = jnp.pad(jnp.ones((1, c), jnp.float32),
                                       ((0, 0), (0, cp - c)), constant_values=1.0)
        params[f"beta{li}"] = jnp.pad(jnp.zeros((1, c), jnp.float32),
                                      ((0, 0), (0, cp - c)))
    return params


def discriminator_forward(params, x_nchw, nc, ndf):
    """Forward pass matching the nn.Sequential Discriminator (returns shape [N]).

    Note: matmul operands / activations are bf16 (intentional deviation from the
    f32 PyTorch reference, ~1e-2 relative error); accumulation and BN math are f32."""
    x = jnp.transpose(x_nchw, (0, 2, 3, 1)).astype(jnp.bfloat16)   # NCHW -> NHWC
    N = x.shape[0]
    chans = [nc, ndf, ndf * 2, ndf * 4, ndf * 8, 1]

    # Conv(nc -> ndf, 4, 2, 1) + LeakyReLU(0.2)
    p, ho, wo = im2col(x, 4, 2, 1)
    M = p.shape[0]
    y = conv_act(p, params["w0"], act="leaky", out_dtype=jnp.bfloat16)
    x = y[:M, :ndf].reshape(N, ho, wo, ndf)

    # Conv -> BN (batch stats) -> LeakyReLU, three times
    for li in range(1, 4):
        c = chans[li + 1]
        p, ho, wo = im2col(x, 4, 2, 1)
        M = p.shape[0]
        y = conv_bn_leaky(p, params[f"w{li}"],
                          params[f"gamma{li}"], params[f"beta{li}"], float(M))
        x = y[:M, :c].reshape(N, ho, wo, c)

    # Conv(8ndf -> 1, 4, 1, 0) + Sigmoid   (unpadded Cout=1; tiny M)
    p, ho, wo = im2col(x, 4, 1, 0)                        # 4x4 -> 1x1
    M = p.shape[0]
    y = conv_act(p, params["w4"], act="sigmoid", out_dtype=jnp.float32)

    # output.view(-1, 1).squeeze(1)
    return y[:M, :1].reshape(-1)


# ----------------------------------- main ------------------------------------

if __name__ == "__main__":
    # Small, architecture-consistent config: nc=1, ndf=8, 64x64 input, batch=2.
    nc, ndf = 1, 8
    batch, H, W = 2, 64, 64

    key = jax.random.PRNGKey(0)
    k_params, k_input = jax.random.split(key)
    params = init_discriminator_params(k_params, nc, ndf)
    x = jax.random.normal(k_input, (batch, nc, H, W), jnp.float32)   # NCHW

    fwd = jax.jit(functools.partial(discriminator_forward, nc=nc, ndf=ndf))
    out = fwd(params, x)
    out = jax.block_until_ready(out)

    assert out.shape == (batch,), out.shape
    assert bool(jnp.all((out >= 0.0) & (out <= 1.0))), "sigmoid range violated"
    assert bool(jnp.all(jnp.isfinite(out))), "non-finite output"
    print("KERNEL_OK")
</pallas_src>

<mosaic_0001>
module attributes {stable_mosaic.version = 11 : i64} {
  func.func @_conv_act_kernel(%arg0: i32, %arg1: memref<1024x16xbf16, #tpu.memory_space<vmem>>, %arg2: memref<16x8xbf16, #tpu.memory_space<vmem>>, %arg3: memref<1024x8xbf16, #tpu.memory_space<vmem>>) attributes {dimension_semantics = [#tpu.dimension_semantics<parallel>], iteration_bounds = array<i64: 2>, scalar_prefetch = 0 : i64, scratch_operands = 0 : i64, tpu.core_type = #tpu.core_type<tc>, window_params = [{transform_indices = @transform_0, window_bounds = array<i64: 1024, 16>}, {pipeline_mode = #tpu.pipeline_mode<synchronous>, transform_indices = @transform_1, window_bounds = array<i64: 16, 8>}, {transform_indices = @transform_2, window_bounds = array<i64: 1024, 8>}]} {
    %c0 = arith.constant 0 : index
    %c0_0 = arith.constant 0 : index
    %0 = vector.load %arg1[%c0, %c0_0] : memref<1024x16xbf16, #tpu.memory_space<vmem>>, vector<1024x16xbf16>
    %c0_1 = arith.constant 0 : index
    %c0_2 = arith.constant 0 : index
    %1 = vector.load %arg2[%c0_1, %c0_2] : memref<16x8xbf16, #tpu.memory_space<vmem>>, vector<16x8xbf16>
    %cst = arith.constant dense<0.000000e+00> : vector<1024x8xf32>
    %2 = tpu.matmul %0, %1, %cst {dimension_numbers = #tpu.dot_dimension_numbers<[1], [0], [0], [1], [0, 0, 1, 1], [], []>} : vector<1024x16xbf16>, vector<16x8xbf16>, vector<1024x8xf32> -> vector<1024x8xf32>
    %cst_3 = arith.constant 0.000000e+00 : f32
    %3 = vector.broadcast %cst_3 : f32 to vector<1024x8xf32>
    %4 = arith.cmpf oge, %2, %3 : vector<1024x8xf32>
    %cst_4 = arith.constant 2.000000e-01 : f32
    %5 = vector.broadcast %cst_4 : f32 to vector<1024x8xf32>
    %6 = arith.mulf %5, %2 : vector<1024x8xf32>
    %7 = arith.select %4, %2, %6 : vector<1024x8xi1>, vector<1024x8xf32>
    %8 = arith.truncf %7 : vector<1024x8xf32> to vector<1024x8xbf16>
    %c0_5 = arith.constant 0 : index
    %c0_6 = arith.constant 0 : index
    %9 = vector.load %arg3[%c0_5, %c0_6] : memref<1024x8xbf16, #tpu.memory_space<vmem>>, vector<1024x8xbf16>
    tpu.vector_store %arg3[%c0_5, %c0_6], %8 {strides = array<i32>} : memref<1024x8xbf16, #tpu.memory_space<vmem>>, vector<1024x8xbf16>,
    return
  }
  func.func @transform_0(%arg0: i32) -> (i32, i32) {
    %c0_i32 = arith.constant 0 : i32
    %c0_i32_0 = arith.constant 0 : i32
    return %arg0, %c0_i32 : i32, i32
  }
  func.func @transform_1(%arg0: i32) -> (i32, i32) {
    %c0_i32 = arith.constant 0 : i32
    %c0_i32_0 = arith.constant 0 : i32
    %c0_i32_1 = arith.constant 0 : i32
    return %c0_i32, %c0_i32_0 : i32, i32
  }
  func.func @transform_2(%arg0: i32) -> (i32, i32) {
    %c0_i32 = arith.constant 0 : i32
    %c0_i32_0 = arith.constant 0 : i32
    return %arg0, %c0_i32 : i32, i32
  }
}

module attributes {stable_mosaic.version = 11 : i64} {
  func.func @_conv_stats_kernel(%arg0: i32, %arg1: memref<512x128xbf16, #tpu.memory_space<vmem>>, %arg2: memref<128x16xbf16, #tpu.memory_space<vmem>>, %arg3: memref<512x16xbf16, #tpu.memory_space<vmem>>, %arg4: memref<1x1x16xf32, #tpu.memory_space<vmem>>, %arg5: memref<1x1x16xf32, #tpu.memory_space<vmem>>) attributes {dimension_semantics = [#tpu.dimension_semantics<parallel>], iteration_bounds = array<i64: 1>, scalar_prefetch = 0 : i64, scratch_operands = 0 : i64, tpu.core_type = #tpu.core_type<tc>, window_params = [{transform_indices = @transform_0, window_bounds = array<i64: 512, 128>}, {pipeline_mode = #tpu.pipeline_mode<synchronous>, transform_indices = @transform_1, window_bounds = array<i64: 128, 16>}, {transform_indices = @transform_2, window_bounds = array<i64: 512, 16>}, {transform_indices = @transform_3, window_bounds = array<i64: 1, 1, 16>}, {transform_indices = @transform_4, window_bounds = array<i64: 1, 1, 16>}]} {
    %c0 = arith.constant 0 : index
    %c0_0 = arith.constant 0 : index
    %0 = vector.load %arg1[%c0, %c0_0] : memref<512x128xbf16, #tpu.memory_space<vmem>>, vector<512x128xbf16>
    %c0_1 = arith.constant 0 : index
    %c0_2 = arith.constant 0 : index
    %1 = vector.load %arg2[%c0_1, %c0_2] : memref<128x16xbf16, #tpu.memory_space<vmem>>, vector<128x16xbf16>
    %cst = arith.constant dense<0.000000e+00> : vector<512x16xf32>
    %2 = tpu.matmul %0, %1, %cst {dimension_numbers = #tpu.dot_dimension_numbers<[1], [0], [0], [1], [0, 0, 1, 1], [], []>} : vector<512x128xbf16>, vector<128x16xbf16>, vector<512x16xf32> -> vector<512x16xf32>
    %cst_3 = arith.constant dense<0.000000e+00> : vector<16xf32>
    %3 = vector.multi_reduction <add>, %2, %cst_3 [0] : vector<512x16xf32> to vector<16xf32>
    %4 = vector.shape_cast %3 : vector<16xf32> to vector<1x16xf32>
    %c0_4 = arith.constant 0 : index
    %c0_5 = arith.constant 0 : index
    %c0_6 = arith.constant 0 : index
    %5 = vector.load %arg4[%c0_4, %c0_5, %c0_6] : memref<1x1x16xf32, #tpu.memory_space<vmem>>, vector<1x1x16xf32>
    %6 = vector.shape_cast %5 : vector<1x1x16xf32> to vector<1x16xf32>
    %7 = vector.shape_cast %4 : vector<1x16xf32> to vector<1x1x16xf32>
    tpu.vector_store %arg4[%c0_4, %c0_5, %c0_6], %7 {strides = array<i32>} : memref<1x1x16xf32, #tpu.memory_space<vmem>>, vector<1x1x16xf32>,
    %8 = arith.mulf %2, %2 : vector<512x16xf32>
    %cst_7 = arith.constant dense<0.000000e+00> : vector<16xf32>
    %9 = vector.multi_reduction <add>, %8, %cst_7 [0] : vector<512x16xf32> to vector<16xf32>
    %10 = vector.shape_cast %9 : vector<16xf32> to vector<1x16xf32>
    %c0_8 = arith.constant 0 : index
    %c0_9 = arith.constant 0 : index
    %c0_10 = arith.constant 0 : index
    %11 = vector.load %arg5[%c0_8, %c0_9, %c0_10] : memref<1x1x16xf32, #tpu.memory_space<vmem>>, vector<1x1x16xf32>
    %12 = vector.shape_cast %11 : vector<1x1x16xf32> to vector<1x16xf32>
    %13 = vector.shape_cast %10 : vector<1x16xf32> to vector<1x1x16xf32>
    tpu.vector_store %arg5[%c0_8, %c0_9, %c0_10], %13 {strides = array<i32>} : memref<1x1x16xf32, #tpu.memory_space<vmem>>, vector<1x1x16xf32>,
    %14 = arith.truncf %2 : vector<512x16xf32> to vector<512x16xbf16>
    %c0_11 = arith.constant 0 : index
    %c0_12 = arith.constant 0 : index
    %15 = vector.load %arg3[%c0_11, %c0_12] : memref<512x16xbf16, #tpu.memory_space<vmem>>, vector<512x16xbf16>
    tpu.vector_store %arg3[%c0_11, %c0_12], %14 {strides = array<i32>} : memref<512x16xbf16, #tpu.memory_space<vmem>>, vector<512x16xbf16>,
    return
  }
  func.func @transform_0(%arg0: i32) -> (i32, i32) {
    %c0_i32 = arith.constant 0 : i32
    %c0_i32_0 = arith.constant 0 : i32
    return %arg0, %c0_i32 : i32, i32
  }
  func.func @transform_1(%arg0: i32) -> (i32, i32) {
    %c0_i32 = arith.constant 0 : i32
    %c0_i32_0 = arith.constant 0 : i32
    %c0_i32_1 = arith.constant 0 : i32
    return %c0_i32, %c0_i32_0 : i32, i32
  }
  func.func @transform_2(%arg0: i32) -> (i32, i32) {
    %c0_i32 = arith.constant 0 : i32
    %c0_i32_0 = arith.constant 0 : i32
    return %arg0, %c0_i32 : i32, i32
  }
  func.func @transform_3(%arg0: i32) -> (i32, i32, i32) {
    %c0_i32 = arith.constant 0 : i32
    %c0_i32_0 = arith.constant 0 : i32
    %c0_i32_1 = arith.constant 0 : i32
    return %arg0, %c0_i32, %c0_i32_0 : i32, i32, i32
  }
  func.func @transform_4(%arg0: i32) -> (i32, i32, i32) {
    %c0_i32 = arith.constant 0 : i32
    %c0_i32_0 = arith.constant 0 : i32
    %c0_i32_1 = arith.constant 0 : i32
    return %arg0, %c0_i32, %c0_i32_0 : i32, i32, i32
  }
}

module attributes {stable_mosaic.version = 11 : i64} {
  func.func @_bn_apply_leaky_kernel(%arg0: i32, %arg1: memref<512x16xbf16, #tpu.memory_space<vmem>>, %arg2: memref<1x16xf32, #tpu.memory_space<vmem>>, %arg3: memref<1x16xf32, #tpu.memory_space<vmem>>, %arg4: memref<512x16xbf16, #tpu.memory_space<vmem>>) attributes {dimension_semantics = [#tpu.dimension_semantics<parallel>], iteration_bounds = array<i64: 1>, scalar_prefetch = 0 : i64, scratch_operands = 0 : i64, tpu.core_type = #tpu.core_type<tc>, window_params = [{transform_indices = @transform_0, window_bounds = array<i64: 512, 16>}, {pipeline_mode = #tpu.pipeline_mode<synchronous>, transform_indices = @transform_1, window_bounds = array<i64: 1, 16>}, {pipeline_mode = #tpu.pipeline_mode<synchronous>, transform_indices = @transform_2, window_bounds = array<i64: 1, 16>}, {transform_indices = @transform_3, window_bounds = array<i64: 512, 16>}]} {
    %c0 = arith.constant 0 : index
    %c0_0 = arith.constant 0 : index
    %0 = vector.load %arg1[%c0, %c0_0] : memref<512x16xbf16, #tpu.memory_space<vmem>>, vector<512x16xbf16>
    %1 = arith.extf %0 : vector<512x16xbf16> to vector<512x16xf32>
    %c0_1 = arith.constant 0 : index
    %c0_2 = arith.constant 0 : index
    %2 = vector.load %arg2[%c0_1, %c0_2] : memref<1x16xf32, #tpu.memory_space<vmem>>, vector<1x16xf32>
    %3 = vector.broadcast %2 : vector<1x16xf32> to vector<512x16xf32>
    %4 = arith.mulf %1, %3 : vector<512x16xf32>
    %c0_3 = arith.constant 0 : index
    %c0_4 = arith.constant 0 : index
    %5 = vector.load %arg3[%c0_3, %c0_4] : memref<1x16xf32, #tpu.memory_space<vmem>>, vector<1x16xf32>
    %6 = vector.broadcast %5 : vector<1x16xf32> to vector<512x16xf32>
    %7 = arith.addf %4, %6 : vector<512x16xf32>
    %cst = arith.constant 0.000000e+00 : f32
    %8 = vector.broadcast %cst : f32 to vector<512x16xf32>
    %9 = arith.cmpf oge, %7, %8 : vector<512x16xf32>
    %cst_5 = arith.constant 2.000000e-01 : f32
    %10 = vector.broadcast %cst_5 : f32 to vector<512x16xf32>
    %11 = arith.mulf %10, %7 : vector<512x16xf32>
    %12 = arith.select %9, %7, %11 : vector<512x16xi1>, vector<512x16xf32>
    %13 = arith.truncf %12 : vector<512x16xf32> to vector<512x16xbf16>
    %c0_6 = arith.constant 0 : index
    %c0_7 = arith.constant 0 : index
    %14 = vector.load %arg4[%c0_6, %c0_7] : memref<512x16xbf16, #tpu.memory_space<vmem>>, vector<512x16xbf16>
    tpu.vector_store %arg4[%c0_6, %c0_7], %13 {strides = array<i32>} : memref<512x16xbf16, #tpu.memory_space<vmem>>, vector<512x16xbf16>,
    return
  }
  func.func @transform_0(%arg0: i32) -> (i32, i32) {
    %c0_i32 = arith.constant 0 : i32
    %c0_i32_0 = arith.constant 0 : i32
    return %arg0, %c0_i32 : i32, i32
  }
  func.func @transform_1(%arg0: i32) -> (i32, i32) {
    %c0_i32 = arith.constant 0 : i32
    %c0_i32_0 = arith.constant 0 : i32
    %c0_i32_1 = arith.constant 0 : i32
    return %c0_i32, %c0_i32_0 : i32, i32
  }
  func.func @transform_2(%arg0: i32) -> (i32, i32) {
    %c0_i32 = arith.constant 0 : i32
    %c0_i32_0 = arith.constant 0 : i32
    %c0_i32_1 = arith.constant 0 : i32
    return %c0_i32, %c0_i32_0 : i32, i32
  }
  func.func @transform_3(%arg0: i32) -> (i32, i32) {
    %c0_i32 = arith.constant 0 : i32
    %c0_i32_0 = arith.constant 0 : i32
    return %arg0, %c0_i32 : i32, i32
  }
}

module attributes {stable_mosaic.version = 11 : i64} {
  func.func @_conv_stats_kernel(%arg0: i32, %arg1: memref<128x256xbf16, #tpu.memory_space<vmem>>, %arg2: memref<256x32xbf16, #tpu.memory_space<vmem>>, %arg3: memref<128x32xbf16, #tpu.memory_space<vmem>>, %arg4: memref<1x1x32xf32, #tpu.memory_space<vmem>>, %arg5: memref<1x1x32xf32, #tpu.memory_space<vmem>>) attributes {dimension_semantics = [#tpu.dimension_semantics<parallel>], iteration_bounds = array<i64: 1>, scalar_prefetch = 0 : i64, scratch_operands = 0 : i64, tpu.core_type = #tpu.core_type<tc>, window_params = [{transform_indices = @transform_0, window_bounds = array<i64: 128, 256>}, {pipeline_mode = #tpu.pipeline_mode<synchronous>, transform_indices = @transform_1, window_bounds = array<i64: 256, 32>}, {transform_indices = @transform_2, window_bounds = array<i64: 128, 32>}, {transform_indices = @transform_3, window_bounds = array<i64: 1, 1, 32>}, {transform_indices = @transform_4, window_bounds = array<i64: 1, 1, 32>}]} {
    %c0 = arith.constant 0 : index
    %c0_0 = arith.constant 0 : index
    %0 = vector.load %arg1[%c0, %c0_0] : memref<128x256xbf16, #tpu.memory_space<vmem>>, vector<128x256xbf16>
    %c0_1 = arith.constant 0 : index
    %c0_2 = arith.constant 0 : index
    %1 = vector.load %arg2[%c0_1, %c0_2] : memref<256x32xbf16, #tpu.memory_space<vmem>>, vector<256x32xbf16>
    %cst = arith.constant dense<0.000000e+00> : vector<128x32xf32>
    %2 = tpu.matmul %0, %1, %cst {dimension_numbers = #tpu.dot_dimension_numbers<[1], [0], [0], [1], [0, 0, 1, 1], [], []>} : vector<128x256xbf16>, vector<256x32xbf16>, vector<128x32xf32> -> vector<128x32xf32>
    %cst_3 = arith.constant dense<0.000000e+00> : vector<32xf32>
    %3 = vector.multi_reduction <add>, %2, %cst_3 [0] : vector<128x32xf32> to vector<32xf32>
    %4 = vector.shape_cast %3 : vector<32xf32> to vector<1x32xf32>
    %c0_4 = arith.constant 0 : index
    %c0_5 = arith.constant 0 : index
    %c0_6 = arith.constant 0 : index
    %5 = vector.load %arg4[%c0_4, %c0_5, %c0_6] : memref<1x1x32xf32, #tpu.memory_space<vmem>>, vector<1x1x32xf32>
    %6 = vector.shape_cast %5 : vector<1x1x32xf32> to vector<1x32xf32>
    %7 = vector.shape_cast %4 : vector<1x32xf32> to vector<1x1x32xf32>
    tpu.vector_store %arg4[%c0_4, %c0_5, %c0_6], %7 {strides = array<i32>} : memref<1x1x32xf32, #tpu.memory_space<vmem>>, vector<1x1x32xf32>,
    %8 = arith.mulf %2, %2 : vector<128x32xf32>
    %cst_7 = arith.constant dense<0.000000e+00> : vector<32xf32>
    %9 = vector.multi_reduction <add>, %8, %cst_7 [0] : vector<128x32xf32> to vector<32xf32>
    %10 = vector.shape_cast %9 : vector<32xf32> to vector<1x32xf32>
    %c0_8 = arith.constant 0 : index
    %c0_9 = arith.constant 0 : index
    %c0_10 = arith.constant 0 : index
    %11 = vector.load %arg5[%c0_8, %c0_9, %c0_10] : memref<1x1x32xf32, #tpu.memory_space<vmem>>, vector<1x1x32xf32>
    %12 = vector.shape_cast %11 : vector<1x1x32xf32> to vector<1x32xf32>
    %13 = vector.shape_cast %10 : vector<1x32xf32> to vector<1x1x32xf32>
    tpu.vector_store %arg5[%c0_8, %c0_9, %c0_10], %13 {strides = array<i32>} : memref<1x1x32xf32, #tpu.memory_space<vmem>>, vector<1x1x32xf32>,
    %14 = arith.truncf %2 : vector<128x32xf32> to vector<128x32xbf16>
    %c0_11 = arith.constant 0 : index
    %c0_12 = arith.constant 0 : index
    %15 = vector.load %arg3[%c0_11, %c0_12] : memref<128x32xbf16, #tpu.memory_space<vmem>>, vector<128x32xbf16>
    tpu.vector_store %arg3[%c0_11, %c0_12], %14 {strides = array<i32>} : memref<128x32xbf16, #tpu.memory_space<vmem>>, vector<128x32xbf16>,
    return
  }
  func.func @transform_0(%arg0: i32) -> (i32, i32) {
    %c0_i32 = arith.constant 0 : i32
    %c0_i32_0 = arith.constant 0 : i32
    return %arg0, %c0_i32 : i32, i32
  }
  func.func @transform_1(%arg0: i32) -> (i32, i32) {
    %c0_i32 = arith.constant 0 : i32
    %c0_i32_0 = arith.constant 0 : i32
    %c0_i32_1 = arith.constant 0 : i32
    return %c0_i32, %c0_i32_0 : i32, i32
  }
  func.func @transform_2(%arg0: i32) -> (i32, i32) {
    %c0_i32 = arith.constant 0 : i32
    %c0_i32_0 = arith.constant 0 : i32
    return %arg0, %c0_i32 : i32, i32
  }
  func.func @transform_3(%arg0: i32) -> (i32, i32, i32) {
    %c0_i32 = arith.constant 0 : i32
    %c0_i32_0 = arith.constant 0 : i32
    %c0_i32_1 = arith.constant 0 : i32
    return %arg0, %c0_i32, %c0_i32_0 : i32, i32, i32
  }
  func.func @transform_4(%arg0: i32) -> (i32, i32, i32) {
    %c0_i32 = arith.constant 0 : i32
    %c0_i32_0 = arith.constant 0 : i32
    %c0_i32_1 = arith.constant 0 : i32
    return %arg0, %c0_i32, %c0_i32_0 : i32, i32, i32
  }
}

module attributes {stable_mosaic.version = 11 : i64} {
  func.func @_bn_apply_leaky_kernel(%arg0: i32, %arg1: memref<128x32xbf16, #tpu.memory_space<vmem>>, %arg2: memref<1x32xf32, #tpu.memory_space<vmem>>, %arg3: memref<1x32xf32, #tpu.memory_space<vmem>>, %arg4: memref<128x32xbf16, #tpu.memory_space<vmem>>) attributes {dimension_semantics = [#tpu.dimension_semantics<parallel>], iteration_bounds = array<i64: 1>, scalar_prefetch = 0 : i64, scratch_operands = 0 : i64, tpu.core_type = #tpu.core_type<tc>, window_params = [{transform_indices = @transform_0, window_bounds = array<i64: 128, 32>}, {pipeline_mode = #tpu.pipeline_mode<synchronous>, transform_indices = @transform_1, window_bounds = array<i64: 1, 32>}, {pipeline_mode = #tpu.pipeline_mode<synchronous>, transform_indices = @transform_2, window_bounds = array<i64: 1, 32>}, {transform_indices = @transform_3, window_bounds = array<i64: 128, 32>}]} {
    %c0 = arith.constant 0 : index
    %c0_0 = arith.constant 0 : index
    %0 = vector.load %arg1[%c0, %c0_0] : memref<128x32xbf16, #tpu.memory_space<vmem>>, vector<128x32xbf16>
    %1 = arith.extf %0 : vector<128x32xbf16> to vector<128x32xf32>
    %c0_1 = arith.constant 0 : index
    %c0_2 = arith.constant 0 : index
    %2 = vector.load %arg2[%c0_1, %c0_2] : memref<1x32xf32, #tpu.memory_space<vmem>>, vector<1x32xf32>
    %3 = vector.broadcast %2 : vector<1x32xf32> to vector<128x32xf32>
    %4 = arith.mulf %1, %3 : vector<128x32xf32>
    %c0_3 = arith.constant 0 : index
    %c0_4 = arith.constant 0 : index
    %5 = vector.load %arg3[%c0_3, %c0_4] : memref<1x32xf32, #tpu.memory_space<vmem>>, vector<1x32xf32>
    %6 = vector.broadcast %5 : vector<1x32xf32> to vector<128x32xf32>
    %7 = arith.addf %4, %6 : vector<128x32xf32>
    %cst = arith.constant 0.000000e+00 : f32
    %8 = vector.broadcast %cst : f32 to vector<128x32xf32>
    %9 = arith.cmpf oge, %7, %8 : vector<128x32xf32>
    %cst_5 = arith.constant 2.000000e-01 : f32
    %10 = vector.broadcast %cst_5 : f32 to vector<128x32xf32>
    %11 = arith.mulf %10, %7 : vector<128x32xf32>
    %12 = arith.select %9, %7, %11 : vector<128x32xi1>, vector<128x32xf32>
    %13 = arith.truncf %12 : vector<128x32xf32> to vector<128x32xbf16>
    %c0_6 = arith.constant 0 : index
    %c0_7 = arith.constant 0 : index
    %14 = vector.load %arg4[%c0_6, %c0_7] : memref<128x32xbf16, #tpu.memory_space<vmem>>, vector<128x32xbf16>
    tpu.vector_store %arg4[%c0_6, %c0_7], %13 {strides = array<i32>} : memref<128x32xbf16, #tpu.memory_space<vmem>>, vector<128x32xbf16>,
    return
  }
  func.func @transform_0(%arg0: i32) -> (i32, i32) {
    %c0_i32 = arith.constant 0 : i32
    %c0_i32_0 = arith.constant 0 : i32
    return %arg0, %c0_i32 : i32, i32
  }
  func.func @transform_1(%arg0: i32) -> (i32, i32) {
    %c0_i32 = arith.constant 0 : i32
    %c0_i32_0 = arith.constant 0 : i32
    %c0_i32_1 = arith.constant 0 : i32
    return %c0_i32, %c0_i32_0 : i32, i32
  }
  func.func @transform_2(%arg0: i32) -> (i32, i32) {
    %c0_i32 = arith.constant 0 : i32
    %c0_i32_0 = arith.constant 0 : i32
    %c0_i32_1 = arith.constant 0 : i32
    return %c0_i32, %c0_i32_0 : i32, i32
  }
  func.func @transform_3(%arg0: i32) -> (i32, i32) {
    %c0_i32 = arith.constant 0 : i32
    %c0_i32_0 = arith.constant 0 : i32
    return %arg0, %c0_i32 : i32, i32
  }
}

module attributes {stable_mosaic.version = 11 : i64} {
  func.func @_conv_stats_kernel(%arg0: i32, %arg1: memref<32x512xbf16, #tpu.memory_space<vmem>>, %arg2: memref<512x64xbf16, #tpu.memory_space<vmem>>, %arg3: memref<32x64xbf16, #tpu.memory_space<vmem>>, %arg4: memref<1x1x64xf32, #tpu.memory_space<vmem>>, %arg5: memref<1x1x64xf32, #tpu.memory_space<vmem>>) attributes {dimension_semantics = [#tpu.dimension_semantics<parallel>], iteration_bounds = array<i64: 1>, scalar_prefetch = 0 : i64, scratch_operands = 0 : i64, tpu.core_type = #tpu.core_type<tc>, window_params = [{transform_indices = @transform_0, window_bounds = array<i64: 32, 512>}, {pipeline_mode = #tpu.pipeline_mode<synchronous>, transform_indices = @transform_1, window_bounds = array<i64: 512, 64>}, {transform_indices = @transform_2, window_bounds = array<i64: 32, 64>}, {transform_indices = @transform_3, window_bounds = array<i64: 1, 1, 64>}, {transform_indices = @transform_4, window_bounds = array<i64: 1, 1, 64>}]} {
    %c0 = arith.constant 0 : index
    %c0_0 = arith.constant 0 : index
    %0 = vector.load %arg1[%c0, %c0_0] : memref<32x512xbf16, #tpu.memory_space<vmem>>, vector<32x512xbf16>
    %c0_1 = arith.constant 0 : index
    %c0_2 = arith.constant 0 : index
    %1 = vector.load %arg2[%c0_1, %c0_2] : memref<512x64xbf16, #tpu.memory_space<vmem>>, vector<512x64xbf16>
    %cst = arith.constant dense<0.000000e+00> : vector<32x64xf32>
    %2 = tpu.matmul %0, %1, %cst {dimension_numbers = #tpu.dot_dimension_numbers<[1], [0], [0], [1], [0, 0, 1, 1], [], []>} : vector<32x512xbf16>, vector<512x64xbf16>, vector<32x64xf32> -> vector<32x64xf32>
    %cst_3 = arith.constant dense<0.000000e+00> : vector<64xf32>
    %3 = vector.multi_reduction <add>, %2, %cst_3 [0] : vector<32x64xf32> to vector<64xf32>
    %4 = vector.shape_cast %3 : vector<64xf32> to vector<1x64xf32>
    %c0_4 = arith.constant 0 : index
    %c0_5 = arith.constant 0 : index
    %c0_6 = arith.constant 0 : index
    %5 = vector.load %arg4[%c0_4, %c0_5, %c0_6] : memref<1x1x64xf32, #tpu.memory_space<vmem>>, vector<1x1x64xf32>
    %6 = vector.shape_cast %5 : vector<1x1x64xf32> to vector<1x64xf32>
    %7 = vector.shape_cast %4 : vector<1x64xf32> to vector<1x1x64xf32>
    tpu.vector_store %arg4[%c0_4, %c0_5, %c0_6], %7 {strides = array<i32>} : memref<1x1x64xf32, #tpu.memory_space<vmem>>, vector<1x1x64xf32>,
    %8 = arith.mulf %2, %2 : vector<32x64xf32>
    %cst_7 = arith.constant dense<0.000000e+00> : vector<64xf32>
    %9 = vector.multi_reduction <add>, %8, %cst_7 [0] : vector<32x64xf32> to vector<64xf32>
    %10 = vector.shape_cast %9 : vector<64xf32> to vector<1x64xf32>
    %c0_8 = arith.constant 0 : index
    %c0_9 = arith.constant 0 : index
    %c0_10 = arith.constant 0 : index
    %11 = vector.load %arg5[%c0_8, %c0_9, %c0_10] : memref<1x1x64xf32, #tpu.memory_space<vmem>>, vector<1x1x64xf32>
    %12 = vector.shape_cast %11 : vector<1x1x64xf32> to vector<1x64xf32>
    %13 = vector.shape_cast %10 : vector<1x64xf32> to vector<1x1x64xf32>
    tpu.vector_store %arg5[%c0_8, %c0_9, %c0_10], %13 {strides = array<i32>} : memref<1x1x64xf32, #tpu.memory_space<vmem>>, vector<1x1x64xf32>,
    %14 = arith.truncf %2 : vector<32x64xf32> to vector<32x64xbf16>
    %c0_11 = arith.constant 0 : index
    %c0_12 = arith.constant 0 : index
    %15 = vector.load %arg3[%c0_11, %c0_12] : memref<32x64xbf16, #tpu.memory_space<vmem>>, vector<32x64xbf16>
    tpu.vector_store %arg3[%c0_11, %c0_12], %14 {strides = array<i32>} : memref<32x64xbf16, #tpu.memory_space<vmem>>, vector<32x64xbf16>,
    return
  }
  func.func @transform_0(%arg0: i32) -> (i32, i32) {
    %c0_i32 = arith.constant 0 : i32
    %c0_i32_0 = arith.constant 0 : i32
    return %arg0, %c0_i32 : i32, i32
  }
  func.func @transform_1(%arg0: i32) -> (i32, i32) {
    %c0_i32 = arith.constant 0 : i32
    %c0_i32_0 = arith.constant 0 : i32
    %c0_i32_1 = arith.constant 0 : i32
    return %c0_i32, %c0_i32_0 : i32, i32
  }
  func.func @transform_2(%arg0: i32) -> (i32, i32) {
    %c0_i32 = arith.constant 0 : i32
    %c0_i32_0 = arith.constant 0 : i32
    return %arg0, %c0_i32 : i32, i32
  }
  func.func @transform_3(%arg0: i32) -> (i32, i32, i32) {
    %c0_i32 = arith.constant 0 : i32
    %c0_i32_0 = arith.constant 0 : i32
    %c0_i32_1 = arith.constant 0 : i32
    return %arg0, %c0_i32, %c0_i32_0 : i32, i32, i32
  }
  func.func @transform_4(%arg0: i32) -> (i32, i32, i32) {
    %c0_i32 = arith.constant 0 : i32
    %c0_i32_0 = arith.constant 0 : i32
    %c0_i32_1 = arith.constant 0 : i32
    return %arg0, %c0_i32, %c0_i32_0 : i32, i32, i32
  }
}

module attributes {stable_mosaic.version = 11 : i64} {
  func.func @_bn_apply_leaky_kernel(%arg0: i32, %arg1: memref<32x64xbf16, #tpu.memory_space<vmem>>, %arg2: memref<1x64xf32, #tpu.memory_space<vmem>>, %arg3: memref<1x64xf32, #tpu.memory_space<vmem>>, %arg4: memref<32x64xbf16, #tpu.memory_space<vmem>>) attributes {dimension_semantics = [#tpu.dimension_semantics<parallel>], iteration_bounds = array<i64: 1>, scalar_prefetch = 0 : i64, scratch_operands = 0 : i64, tpu.core_type = #tpu.core_type<tc>, window_params = [{transform_indices = @transform_0, window_bounds = array<i64: 32, 64>}, {pipeline_mode = #tpu.pipeline_mode<synchronous>, transform_indices = @transform_1, window_bounds = array<i64: 1, 64>}, {pipeline_mode = #tpu.pipeline_mode<synchronous>, transform_indices = @transform_2, window_bounds = array<i64: 1, 64>}, {transform_indices = @transform_3, window_bounds = array<i64: 32, 64>}]} {
    %c0 = arith.constant 0 : index
    %c0_0 = arith.constant 0 : index
    %0 = vector.load %arg1[%c0, %c0_0] : memref<32x64xbf16, #tpu.memory_space<vmem>>, vector<32x64xbf16>
    %1 = arith.extf %0 : vector<32x64xbf16> to vector<32x64xf32>
    %c0_1 = arith.constant 0 : index
    %c0_2 = arith.constant 0 : index
    %2 = vector.load %arg2[%c0_1, %c0_2] : memref<1x64xf32, #tpu.memory_space<vmem>>, vector<1x64xf32>
    %3 = vector.broadcast %2 : vector<1x64xf32> to vector<32x64xf32>
    %4 = arith.mulf %1, %3 : vector<32x64xf32>
    %c0_3 = arith.constant 0 : index
    %c0_4 = arith.constant 0 : index
    %5 = vector.load %arg3[%c0_3, %c0_4] : memref<1x64xf32, #tpu.memory_space<vmem>>, vector<1x64xf32>
    %6 = vector.broadcast %5 : vector<1x64xf32> to vector<32x64xf32>
    %7 = arith.addf %4, %6 : vector<32x64xf32>
    %cst = arith.constant 0.000000e+00 : f32
    %8 = vector.broadcast %cst : f32 to vector<32x64xf32>
    %9 = arith.cmpf oge, %7, %8 : vector<32x64xf32>
    %cst_5 = arith.constant 2.000000e-01 : f32
    %10 = vector.broadcast %cst_5 : f32 to vector<32x64xf32>
    %11 = arith.mulf %10, %7 : vector<32x64xf32>
    %12 = arith.select %9, %7, %11 : vector<32x64xi1>, vector<32x64xf32>
    %13 = arith.truncf %12 : vector<32x64xf32> to vector<32x64xbf16>
    %c0_6 = arith.constant 0 : index
    %c0_7 = arith.constant 0 : index
    %14 = vector.load %arg4[%c0_6, %c0_7] : memref<32x64xbf16, #tpu.memory_space<vmem>>, vector<32x64xbf16>
    tpu.vector_store %arg4[%c0_6, %c0_7], %13 {strides = array<i32>} : memref<32x64xbf16, #tpu.memory_space<vmem>>, vector<32x64xbf16>,
    return
  }
  func.func @transform_0(%arg0: i32) -> (i32, i32) {
    %c0_i32 = arith.constant 0 : i32
    %c0_i32_0 = arith.constant 0 : i32
    return %arg0, %c0_i32 : i32, i32
  }
  func.func @transform_1(%arg0: i32) -> (i32, i32) {
    %c0_i32 = arith.constant 0 : i32
    %c0_i32_0 = arith.constant 0 : i32
    %c0_i32_1 = arith.constant 0 : i32
    return %c0_i32, %c0_i32_0 : i32, i32
  }
  func.func @transform_2(%arg0: i32) -> (i32, i32) {
    %c0_i32 = arith.constant 0 : i32
    %c0_i32_0 = arith.constant 0 : i32
    %c0_i32_1 = arith.constant 0 : i32
    return %c0_i32, %c0_i32_0 : i32, i32
  }
  func.func @transform_3(%arg0: i32) -> (i32, i32) {
    %c0_i32 = arith.constant 0 : i32
    %c0_i32_0 = arith.constant 0 : i32
    return %arg0, %c0_i32 : i32, i32
  }
}

module attributes {stable_mosaic.version = 11 : i64} {
  func.func @_conv_act_kernel(%arg0: i32, %arg1: memref<16x1024xbf16, #tpu.memory_space<vmem>>, %arg2: memref<1024x1xbf16, #tpu.memory_space<vmem>>, %arg3: memref<16x1xf32, #tpu.memory_space<vmem>>) attributes {dimension_semantics = [#tpu.dimension_semantics<parallel>], iteration_bounds = array<i64: 1>, scalar_prefetch = 0 : i64, scratch_operands = 0 : i64, tpu.core_type = #tpu.core_type<tc>, window_params = [{transform_indices = @transform_0, window_bounds = array<i64: 16, 1024>}, {pipeline_mode = #tpu.pipeline_mode<synchronous>, transform_indices = @transform_1, window_bounds = array<i64: 1024, 1>}, {transform_indices = @transform_2, window_bounds = array<i64: 16, 1>}]} {
    %c0 = arith.constant 0 : index
    %c0_0 = arith.constant 0 : index
    %0 = vector.load %arg1[%c0, %c0_0] : memref<16x1024xbf16, #tpu.memory_space<vmem>>, vector<16x1024xbf16>
    %c0_1 = arith.constant 0 : index
    %c0_2 = arith.constant 0 : index
    %1 = vector.load %arg2[%c0_1, %c0_2] : memref<1024x1xbf16, #tpu.memory_space<vmem>>, vector<1024x1xbf16>
    %cst = arith.constant dense<0.000000e+00> : vector<16x1xf32>
    %2 = tpu.matmul %0, %1, %cst {dimension_numbers = #tpu.dot_dimension_numbers<[1], [0], [0], [1], [0, 0, 1, 1], [], []>} : vector<16x1024xbf16>, vector<1024x1xbf16>, vector<16x1xf32> -> vector<16x1xf32>
    %3 = math.absf %2 : vector<16x1xf32>
    %cst_3 = arith.constant 0.000000e+00 : f32
    %4 = vector.broadcast %cst_3 : f32 to vector<16x1xf32>
    %5 = arith.subf %4, %3 : vector<16x1xf32>
    %6 = math.exp %5 : vector<16x1xf32>
    %cst_4 = arith.constant 0.000000e+00 : f32
    %7 = vector.broadcast %cst_4 : f32 to vector<16x1xf32>
    %8 = arith.cmpf oge, %2, %7 : vector<16x1xf32>
    %cst_5 = arith.constant 1.000000e+00 : f32
    %9 = vector.broadcast %cst_5 : f32 to vector<16x1xf32>
    %10 = arith.addf %9, %6 : vector<16x1xf32>
    %cst_6 = arith.constant 1.000000e+00 : f32
    %11 = vector.broadcast %cst_6 : f32 to vector<16x1xf32>
    %12 = arith.divf %11, %10 : vector<16x1xf32>
    %cst_7 = arith.constant 1.000000e+00 : f32
    %13 = vector.broadcast %cst_7 : f32 to vector<16x1xf32>
    %14 = arith.addf %13, %6 : vector<16x1xf32>
    %15 = arith.divf %6, %14 : vector<16x1xf32>
    %16 = arith.select %8, %12, %15 : vector<16x1xi1>, vector<16x1xf32>
    %c0_8 = arith.constant 0 : index
    %c0_9 = arith.constant 0 : index
    %17 = vector.load %arg3[%c0_8, %c0_9] : memref<16x1xf32, #tpu.memory_space<vmem>>, vector<16x1xf32>
    tpu.vector_store %arg3[%c0_8, %c0_9], %16 {strides = array<i32>} : memref<16x1xf32, #tpu.memory_space<vmem>>, vector<16x1xf32>,
    return
  }
  func.func @transform_0(%arg0: i32) -> (i32, i32) {
    %c0_i32 = arith.constant 0 : i32
    %c0_i32_0 = arith.constant 0 : i32
    return %arg0, %c0_i32 : i32, i32
  }
  func.func @transform_1(%arg0: i32) -> (i32, i32) {
    %c0_i32 = arith.constant 0 : i32
    %c0_i32_0 = arith.constant 0 : i32
    %c0_i32_1 = arith.constant 0 : i32
    return %c0_i32, %c0_i32_0 : i32, i32
  }
  func.func @transform_2(%arg0: i32) -> (i32, i32) {
    %c0_i32 = arith.constant 0 : i32
    %c0_i32_0 = arith.constant 0 : i32
    return %arg0, %c0_i32 : i32, i32
  }
}

</mosaic_0001>

<bundles_post_ra>
// kernel: discriminator_forward.8
= control target key start
LH: loop header
LB: loop body
LE: loop exit
PB: predicated region body
PF: predicated region fallthrough
CT: control target
= control target key end

     0   :  { %s3112_s9 = smov 0   ;;  %s3555_s0 = inlined_call_operand.vmem [shape: bf16[2048,16], index: 0, kind: input, shape index: {}]   ;;  %s3556_s1 = inlined_call_operand.vmem [shape: bf16[16,8], index: 1, kind: input, shape index: {}]   ;;  %s3557_s2 = inlined_call_operand.vmem [shape: bf16[2048,8], index: 2, kind: output, shape index: {}]  }
   0x1 LB: > { %s2423_s10 = sadd.s32 4294967295, %s3095_s9   ;;  %p2427_p0 = scmp.ge.s32.totalorder %s3095_s9, 1  ;;  %s3095_s9 = sphi %s3112_s9, %s12_s9  }
   0x2   : > { %p113_p1 = scmp.lt.s32.totalorder %s3095_s9, 3 }
   0x4   : > { %p114_p2 = pnand %p2427_p0, %p113_p1 }
   0x5   : > { %v3024_v0 = vld [vmem:[%s3556_s1] sm:$0xff] (!%p114_p2)   ;;  %s2428_s13 = sshll.u32 (!%p114_p2), %s2423_s10, 7  ;;  %vm604_vm0 = vcmask (!%p114_p2), 130048   ;;  %vm2238_vm4 = vcmask (!%p114_p2), 60416  }
   0x6   : > { %117 = sbr.rel (%p114_p2) target bundleno = 366 (0x16e), region = 28  ;;  %p136_p3 = scmp.lt.s32.totalorder (!%p114_p2), %s2428_s13, 255  ;;  %2884 = vmatprep.subr.bf16.mxu0 (!%p114_p2), %v3024_v0  ;;  %3014 = vmatprep.subr.bf16.mxu1 (!%p114_p2), %v3024_v0 }
   0x7   : > { %2885 = vmatpush3.bf16.msra.mxu0 (!%p114_p2), %v3024_v0  ;;  %3015 = vmatpush3.bf16.msra.mxu1 (!%p114_p2), %v3024_v0 }
   0xd   : > { %s3559_s13 = smov (!%p136_p3, %s2428_s13), 255 }
   0xe   : > { %s2429_s14 = sshll.u32 %s3559_s13, 2 }
   0xf   : > { %s3131_s17 = scalar_lea.vmem %s3555_s0, %s2429_s14  ;;  %s3266_s20 = scalar_lea.vmem %s3557_s2, %s2429_s14 }
  0x10   : > { %v3025_v1 = vld [vmem:[%s3131_s17] sm:$0xff]   ;;  %v3027_v3 = vld [vmem:[%s3131_s17 + $0x8] sm:$0xff]   ;;  %v3029_v5 = vld [vmem:[%s3131_s17 + $0x10] sm:$0xff]  }
  0x11   : > { %v3026_v2 = vld [vmem:[%s3131_s17 + $0x100] sm:$0xff]   ;;  %2886 = vmatprep.mubr.msk.bf16.mxu0 %vm604_vm0, %v3025_v1  ;;  %v3028_v4 = vld [vmem:[%s3131_s17 + $0x108] sm:$0xff]   ;;  %v3030_v6 = vld [vmem:[%s3131_s17 + $0x110] sm:$0xff]  }
  0x12   : > { %2950 = vmatprep.mubr.msk.bf16.mxu1 %vm604_vm0, %v3026_v2  ;;  %2887 = vmatmul.mubr.msk.bf16.vlgmr.msra.gmra.mrb[0].mxu0 %vm604_vm0, %v3027_v3  ;;  %v3031_v7 = vld [vmem:[%s3131_s17 + $0x18] sm:$0xff]   ;;  %v3033_v9 = vld [vmem:[%s3131_s17 + $0x20] sm:$0xff]   ;;  %v3035_v11 = vld [vmem:[%s3131_s17 + $0x28] sm:$0xff]  }
  0x13   : > { %2951 = vmatmul.mubr.msk.bf16.vlgmr.msra.gmra.mrb[0].mxu1 %vm604_vm0, %v3028_v4  ;;  %2890 = vmatprep.mubr.msk.bf16.mxu0 %vm604_vm0, %v3029_v5  ;;  %v3032_v8 = vld [vmem:[%s3131_s17 + $0x118] sm:$0xff]   ;;  %v3034_v10 = vld [vmem:[%s3131_s17 + $0x120] sm:$0xff]   ;;  %v3036_v12 = vld [vmem:[%s3131_s17 + $0x128] sm:$0xff]  }
  0x14   : > { %2954 = vmatprep.mubr.msk.bf16.mxu1 %vm604_vm0, %v3030_v6  ;;  %v3037_v13 = vld [vmem:[%s3131_s17 + $0x30] sm:$0xff]   ;;  %v3039_v15 = vld [vmem:[%s3131_s17 + $0x38] sm:$0xff]   ;;  %v3041_v17 = vld [vmem:[%s3131_s17 + $0x40] sm:$0xff]  }
  0x15   : > { %v3038_v14 = vld [vmem:[%s3131_s17 + $0x130] sm:$0xff]   ;;  %v3040_v16 = vld [vmem:[%s3131_s17 + $0x138] sm:$0xff]   ;;  %v3042_v18 = vld [vmem:[%s3131_s17 + $0x140] sm:$0xff]  }
  0x16   : > { %v3043_v19 = vld [vmem:[%s3131_s17 + $0x48] sm:$0xff]   ;;  %v3045_v21 = vld [vmem:[%s3131_s17 + $0x50] sm:$0xff]   ;;  %v3047_v23 = vld [vmem:[%s3131_s17 + $0x58] sm:$0xff]  }
  0x17   : > { %v3044_v20 = vld [vmem:[%s3131_s17 + $0x148] sm:$0xff]   ;;  %v3046_v22 = vld [vmem:[%s3131_s17 + $0x150] sm:$0xff]   ;;  %v3048_v24 = vld [vmem:[%s3131_s17 + $0x158] sm:$0xff]  }
  0x18   : > { %v3049_v25 = vld [vmem:[%s3131_s17 + $0x60] sm:$0xff]   ;;  %v3051_v27 = vld [vmem:[%s3131_s17 + $0x68] sm:$0xff]   ;;  %v3053_v29 = vld [vmem:[%s3131_s17 + $0x70] sm:$0xff]  }
  0x19   : > { %v3050_v26 = vld [vmem:[%s3131_s17 + $0x160] sm:$0xff]   ;;  %v3052_v28 = vld [vmem:[%s3131_s17 + $0x168] sm:$0xff]   ;;  %v3054_v30 = vld [vmem:[%s3131_s17 + $0x170] sm:$0xff]  }
  0x1a   : > { %2891 = vmatmul.mubr.msk.bf16.gmra.mrb[4].mxu0 %vm604_vm0, %v3031_v7  ;;  %v3055_v31 = vld [vmem:[%s3131_s17 + $0x78] sm:$0xff]   ;;  %v3057_v33 = vld [vmem:[%s3131_s17 + $0x80] sm:$0xff]   ;;  %v3059_v35 = vld [vmem:[%s3131_s17 + $0x88] sm:$0xff]  }
  0x1b   : > { %2955 = vmatmul.mubr.msk.bf16.gmra.mrb[4].mxu1 %vm604_vm0, %v3032_v8  ;;  %2894 = vmatprep.mubr.msk.bf16.mxu0 %vm604_vm0, %v3033_v9  ;;  %v3056_v32 = vld [vmem:[%s3131_s17 + $0x178] sm:$0xff]   ;;  %v3058_v34 = vld [vmem:[%s3131_s17 + $0x180] sm:$0xff]   ;;  %v3060_v36 = vld [vmem:[%s3131_s17 + $0x188] sm:$0xff]  }
  0x1c   : > { %2958 = vmatprep.mubr.msk.bf16.mxu1 %vm604_vm0, %v3034_v10  ;;  %v3061_v37 = vld [vmem:[%s3131_s17 + $0x90] sm:$0xff]   ;;  %v3063_v39 = vld [vmem:[%s3131_s17 + $0x98] sm:$0xff]   ;;  %v3065_v41 = vld [vmem:[%s3131_s17 + $0xa0] sm:$0xff]  }
  0x1d   : > { %v3062_v38 = vld [vmem:[%s3131_s17 + $0x190] sm:$0xff]   ;;  %v3064_v40 = vld [vmem:[%s3131_s17 + $0x198] sm:$0xff]   ;;  %v3066_v42 = vld [vmem:[%s3131_s17 + $0x1a0] sm:$0xff]  }
  0x1e   : > { %v3067_v43 = vld [vmem:[%s3131_s17 + $0xa8] sm:$0xff]   ;;  %v3069_v45 = vld [vmem:[%s3131_s17 + $0xb0] sm:$0xff]   ;;  %v3071_v47 = vld [vmem:[%s3131_s17 + $0xb8] sm:$0xff]  }
  0x1f   : > { %v3068_v44 = vld [vmem:[%s3131_s17 + $0x1a8] sm:$0xff]   ;;  %v3070_v46 = vld [vmem:[%s3131_s17 + $0x1b0] sm:$0xff]   ;;  %v3072_v48 = vld [vmem:[%s3131_s17 + $0x1b8] sm:$0xff]  }
  0x20   : > { %v3073_v49 = vld [vmem:[%s3131_s17 + $0xc0] sm:$0xff]   ;;  %v3075_v51 = vld [vmem:[%s3131_s17 + $0xc8] sm:$0xff]   ;;  %v3077_v53 = vld [vmem:[%s3131_s17 + $0xd0] sm:$0xff]  }
  0x21   : > { %v3074_v50 = vld [vmem:[%s3131_s17 + $0x1c0] sm:$0xff]   ;;  %v3076_v52 = vld [vmem:[%s3131_s17 + $0x1c8] sm:$0xff]   ;;  %v3078_v54 = vld [vmem:[%s3131_s17 + $0x1d0] sm:$0xff]  }
  0x22   : > { %2895 = vmatmul.mubr.msk.bf16.gmra.mrb[8].mxu0 %vm604_vm0, %v3035_v11  ;;  %v3079_v55 = vld [vmem:[%s3131_s17 + $0xd8] sm:$0xff]   ;;  %v3081_v57 = vld [vmem:[%s3131_s17 + $0xe0] sm:$0xff]   ;;  %v3083_v59 = vld [vmem:[%s3131_s17 + $0xe8] sm:$0xff]  }
  0x23   : > { %2959 = vmatmul.mubr.msk.bf16.gmra.mrb[8].mxu1 %vm604_vm0, %v3036_v12  ;;  %2898 = vmatprep.mubr.msk.bf16.mxu0 %vm604_vm0, %v3037_v13  ;;  %v3080_v56 = vld [vmem:[%s3131_s17 + $0x1d8] sm:$0xff]   ;;  %v3082_v58 = vld [vmem:[%s3131_s17 + $0x1e0] sm:$0xff]   ;;  %v3084_v60 = vld [vmem:[%s3131_s17 + $0x1e8] sm:$0xff]  }
  0x24   : > { %2962 = vmatprep.mubr.msk.bf16.mxu1 %vm604_vm0, %v3038_v14  ;;  %v3085_v61 = vld [vmem:[%s3131_s17 + $0xf0] sm:$0xff]   ;;  %v3087_v63 = vld [vmem:[%s3131_s17 + $0xf8] sm:$0xff]  }
  0x25   : > { %v3086_v62 = vld [vmem:[%s3131_s17 + $0x1f0] sm:$0xff]   ;;  %v3088_v0 = vld [vmem:[%s3131_s17 + $0x1f8] sm:$0xff]  }
  0x2a   : > { %2899 = vmatmul.mubr.msk.bf16.gmra.mrb[12].mxu0 %vm604_vm0, %v3039_v15 }
  0x2b   : > { %2963 = vmatmul.mubr.msk.bf16.gmra.mrb[12].mxu1 %vm604_vm0, %v3040_v16  ;;  %2902 = vmatprep.mubr.msk.bf16.mxu0 %vm604_vm0, %v3041_v17 }
  0x2c   : > { %2966 = vmatprep.mubr.msk.bf16.mxu1 %vm604_vm0, %v3042_v18 }
  0x32   : > { %2903 = vmatmul.mubr.msk.bf16.gmra.mrb[16].mxu0 %vm604_vm0, %v3043_v19 }
  0x33   : > { %2967 = vmatmul.mubr.msk.bf16.gmra.mrb[16].mxu1 %vm604_vm0, %v3044_v20  ;;  %2906 = vmatprep.mubr.msk.bf16.mxu0 %vm604_vm0, %v3045_v21 }
  0x34   : > { %2970 = vmatprep.mubr.msk.bf16.mxu1 %vm604_vm0, %v3046_v22 }
  0x3a   : > { %2907 = vmatmul.mubr.msk.bf16.gmra.mrb[20].mxu0 %vm604_vm0, %v3047_v23 }
  0x3b   : > { %2971 = vmatmul.mubr.msk.bf16.gmra.mrb[20].mxu1 %vm604_vm0, %v3048_v24  ;;  %2910 = vmatprep.mubr.msk.bf16.mxu0 %vm604_vm0, %v3049_v25 }
  0x3c   : > { %2974 = vmatprep.mubr.msk.bf16.mxu1 %vm604_vm0, %v3050_v26 }
  0x42   : > { %2911 = vmatmul.mubr.msk.bf16.gmra.mrb[24].mxu0 %vm604_vm0, %v3051_v27 }
  0x43   : > { %2975 = vmatmul.mubr.msk.bf16.gmra.mrb[24].mxu1 %vm604_vm0, %v3052_v28  ;;  %2914 = vmatprep.mubr.msk.bf16.mxu0 %vm604_vm0, %v3053_v29 }
  0x44   : > { %2978 = vmatprep.mubr.msk.bf16.mxu1 %vm604_vm0, %v3054_v30 }
  0x4a   : > { %2915 = vmatmul.mubr.msk.bf16.gmra.mrb[28].mxu0 %vm604_vm0, %v3055_v31 }
  0x4b   : > { %2979 = vmatmul.mubr.msk.bf16.gmra.mrb[28].mxu1 %vm604_vm0, %v3056_v32  ;;  %2918 = vmatprep.mubr.msk.bf16.mxu0 %vm604_vm0, %v3057_v33 }
  0x4c   : > { %2982 = vmatprep.mubr.msk.bf16.mxu1 %vm604_vm0, %v3058_v34 }
  0x52   : > { %2919 = vmatmul.mubr.msk.bf16.gmra.mrb[32].mxu0 %vm604_vm0, %v3059_v35 }
  0x53   : > { %2983 = vmatmul.mubr.msk.bf16.gmra.mrb[32].mxu1 %vm604_vm0, %v3060_v36  ;;  %2922 = vmatprep.mubr.msk.bf16.mxu0 %vm604_vm0, %v3061_v37 }
  0x54   : > { %2986 = vmatprep.mubr.msk.bf16.mxu1 %vm604_vm0, %v3062_v38 }
  0x5a   : > { %2923 = vmatmul.mubr.msk.bf16.gmra.mrb[36].mxu0 %vm604_vm0, %v3063_v39 }
  0x5b   : > { %2987 = vmatmul.mubr.msk.bf16.gmra.mrb[36].mxu1 %vm604_vm0, %v3064_v40  ;;  %2926 = vmatprep.mubr.msk.bf16.mxu0 %vm604_vm0, %v3065_v41 }
  0x5c   : > { %2990 = vmatprep.mubr.msk.bf16.mxu1 %vm604_vm0, %v3066_v42 }
  0x62   : > { %2927 = vmatmul.mubr.msk.bf16.gmra.mrb[40].mxu0 %vm604_vm0, %v3067_v43 }
  0x63   : > { %2991 = vmatmul.mubr.msk.bf16.gmra.mrb[40].mxu1 %vm604_vm0, %v3068_v44  ;;  %2930 = vmatprep.mubr.msk.bf16.mxu0 %vm604_vm0, %v3069_v45 }
  0x64   : > { %2994 = vmatprep.mubr.msk.bf16.mxu1 %vm604_vm0, %v3070_v46 }
  0x6a   : > { %2931 = vmatmul.mubr.msk.bf16.gmra.mrb[44].mxu0 %vm604_vm0, %v3071_v47 }
  0x6b   : > { %2995 = vmatmul.mubr.msk.bf16.gmra.mrb[44].mxu1 %vm604_vm0, %v3072_v48  ;;  %2934 = vmatprep.mubr.msk.bf16.mxu0 %vm604_vm0, %v3073_v49 }
  0x6c   : > { %2998 = vmatprep.mubr.msk.bf16.mxu1 %vm604_vm0, %v3074_v50 }
  0x72   : > { %2935 = vmatmul.mubr.msk.bf16.gmra.mrb[48].mxu0 %vm604_vm0, %v3075_v51 }
  0x73   : > { %2999 = vmatmul.mubr.msk.bf16.gmra.mrb[48].mxu1 %vm604_vm0, %v3076_v52  ;;  %2938 = vmatprep.mubr.msk.bf16.mxu0 %vm604_vm0, %v3077_v53 }
  0x74   : > { %3002 = vmatprep.mubr.msk.bf16.mxu1 %vm604_vm0, %v3078_v54 }
  0x7a   : > { %2939 = vmatmul.mubr.msk.bf16.gmra.mrb[52].mxu0 %vm604_vm0, %v3079_v55 }
  0x7b   : > { %3003 = vmatmul.mubr.msk.bf16.gmra.mrb[52].mxu1 %vm604_vm0, %v3080_v56  ;;  %2942 = vmatprep.mubr.msk.bf16.mxu0 %vm604_vm0, %v3081_v57 }
  0x7c   : > { %3006 = vmatprep.mubr.msk.bf16.mxu1 %vm604_vm0, %v3082_v58 }
  0x82   : > { %2943 = vmatmul.mubr.msk.bf16.gmra.mrb[56].mxu0 %vm604_vm0, %v3083_v59 }
  0x83   : > { %3007 = vmatmul.mubr.msk.bf16.gmra.mrb[56].mxu1 %vm604_vm0, %v3084_v60  ;;  %2946 = vmatprep.mubr.msk.bf16.mxu0 %vm604_vm0, %v3085_v61 }
  0x84   : > { %3010 = vmatprep.mubr.msk.bf16.mxu1 %vm604_vm0, %v3086_v62 }
  0x8a   : > { %2947 = vmatmul.mubr.msk.bf16.gmra.mrb[60].mxu0 %vm604_vm0, %v3087_v63 }
  0x8b   : > { %3011 = vmatmul.mubr.msk.bf16.gmra.mrb[60].mxu1 %vm604_vm0, %v3088_v0 }
  0xe5   : > { %v2888_v1 = vpop.f32.mrb[0].mxu0 }
  0xe6   : > { %vm1344_vm1 = vcmp.ge.f32.partialorder %v2888_v1, 0.0  ;;  %v1472_v2 = vmul.f32 0.2, %v2888_v1  ;;  %v2952_v3 = vpop.f32.mrb[0].mxu1  ;;  %v831_v4 = vpop.f32.mrb[1].mxu0 }
  0xe7   : > { %vm1408_vm2 = vcmp.ge.f32.partialorder %v2952_v3, 0.0  ;;  %v1536_v5 = vmul.f32 0.2, %v2952_v3  ;;  %vm1342_vm3 = vcmp.ge.f32.partialorder %v831_v4, 0.0  ;;  %v1470_v6 = vmul.f32 0.2, %v831_v4 }
  0xe8   : > { %v1600_v7 = vsel %vm1344_vm1, %v2888_v1, %v1472_v2  ;;  %v1087_v8 = vpop.f32.mrb[1].mxu1  ;;  %v2889_v9 = vpop.f32.mrb[2].mxu0 }
  0xe9   : > { %v2693_v10 = vpack.c.bf16 %v1600_v7, %v1600_v7  ;;  %v1664_v11 = vsel %vm1408_vm2, %v2952_v3, %v1536_v5  ;;  %v1598_v12 = vsel %vm1342_vm3, %v831_v4, %v1470_v6  ;;  %vm1406_vm5 = vcmp.ge.f32.partialorder %v1087_v8, 0.0  ;;  %v2953_v13 = vpop.f32.mrb[2].mxu1  ;;  %v834_v14 = vpop.f32.mrb[3].mxu0 }
  0xea   : > { %v2757_v15 = vpack.c.bf16 %v1664_v11, %v1664_v11  ;;  %v2691_v16 = vpack.c.bf16 %v1598_v12, %v1598_v12  ;;  %v1534_v17 = vmul.f32 0.2, %v1087_v8  ;;  %vm1345_vm6 = vcmp.ge.f32.partialorder %v2889_v9, 0.0  ;;  %v1090_v18 = vpop.f32.mrb[3].mxu1 }
  0xeb   : > { %2241 = vst.msk [vmem:[%s3266_s20 + $0x8] sm:$0xf] %vm2238_vm4, %v2693_v10  ;;  %v1473_v19 = vmul.f32 0.2, %v2889_v9  ;;  %vm1409_vm7 = vcmp.ge.f32.partialorder %v2953_v13, 0.0  ;;  %vm1343_vm8 = vcmp.ge.f32.partialorder %v834_v14, 0.0 }
  0xec   : > { %v1537_v20 = vmul.f32 0.2, %v2953_v13  ;;  %2305 = vst.msk [vmem:[%s3266_s20 + $0x108] sm:$0xf] %vm2238_vm4, %v2757_v15  ;;  %2239 = vst.msk [vmem:[%s3266_s20] sm:$0xf] %vm2238_vm4, %v2691_v16  ;;  %v1662_v21 = vsel %vm1406_vm5, %v1087_v8, %v1534_v17 }
  0xed   : > { %v1471_v22 = vmul.f32 0.2, %v834_v14  ;;  %vm1407_vm9 = vcmp.ge.f32.partialorder %v1090_v18, 0.0  ;;  %v1535_v23 = vmul.f32 0.2, %v1090_v18  ;;  %v2755_v24 = vpack.c.bf16 %v1662_v21, %v1662_v21  ;;  %v2892_v27 = vpop.f32.mrb[4].mxu0 }
  0xee   : > { %v1601_v25 = vsel %vm1345_vm6, %v2889_v9, %v1473_v19  ;;  %v1665_v26 = vsel %vm1409_vm7, %v2953_v13, %v1537_v20  ;;  %v2956_v32 = vpop.f32.mrb[4].mxu1  ;;  %v847_v33 = vpop.f32.mrb[5].mxu0  ;;  %vm1348_vm10 = vcmp.ge.f32.partialorder %v2892_v27, 0.0  ;;  %v1476_v36 = vmul.f32 0.2, %v2892_v27 }
  0xef   : > { %v2694_v28 = vpack.c.bf16 %v1601_v25, %v1601_v25  ;;  %v2758_v29 = vpack.c.bf16 %v1665_v26, %v1665_v26  ;;  %v1599_v30 = vsel %vm1343_vm8, %v834_v14, %v1471_v22  ;;  %v1663_v31 = vsel %vm1407_vm9, %v1090_v18, %v1535_v23  ;;  %2303 = vst.msk [vmem:[%s3266_s20 + $0x100] sm:$0xf] %vm2238_vm4, %v2755_v24  ;;  %v1103_v37 = vpop.f32.mrb[5].mxu1  ;;  %v2893_v38 = vpop.f32.mrb[6].mxu0 }
  0xf0   : > { %v2692_v34 = vpack.c.bf16 %v1599_v30, %v1599_v30  ;;  %v2756_v35 = vpack.c.bf16 %v1663_v31, %v1663_v31  ;;  %vm1412_vm11 = vcmp.ge.f32.partialorder %v2956_v32, 0.0  ;;  %v1540_v39 = vmul.f32 0.2, %v2956_v32  ;;  %v2957_v43 = vpop.f32.mrb[6].mxu1  ;;  %v850_v44 = vpop.f32.mrb[7].mxu0 }
  0xf1   : > { %2242 = vst.msk [vmem:[%s3266_s20 + $0xc] sm:$0xf] %vm2238_vm4, %v2694_v28  ;;  %2306 = vst.msk [vmem:[%s3266_s20 + $0x10c] sm:$0xf] %vm2238_vm4, %v2758_v29  ;;  %vm1346_vm12 = vcmp.ge.f32.partialorder %v847_v33, 0.0  ;;  %v1604_v41 = vsel %vm1348_vm10, %v2892_v27, %v1476_v36  ;;  %vm1410_vm13 = vcmp.ge.f32.partialorder %v1103_v37, 0.0 }
  0xf2   : > { %v1474_v40 = vmul.f32 0.2, %v847_v33  ;;  %2240 = vst.msk [vmem:[%s3266_s20 + $0x4] sm:$0xf] %vm2238_vm4, %v2692_v34  ;;  %2304 = vst.msk [vmem:[%s3266_s20 + $0x104] sm:$0xf] %vm2238_vm4, %v2756_v35  ;;  %v2697_v45 = vpack.c.bf16 %v1604_v41, %v1604_v41  ;;  %v1668_v46 = vsel %vm1412_vm11, %v2956_v32, %v1540_v39 }
  0xf3   : > { %v1538_v42 = vmul.f32 0.2, %v1103_v37  ;;  %vm1349_vm14 = vcmp.ge.f32.partialorder %v2893_v38, 0.0  ;;  %v1477_v48 = vmul.f32 0.2, %v2893_v38  ;;  %v1106_v49 = vpop.f32.mrb[7].mxu1  ;;  %v2761_v50 = vpack.c.bf16 %v1668_v46, %v1668_v46 }
  0xf4   : > { %v1602_v47 = vsel %vm1346_vm12, %v847_v33, %v1474_v40  ;;  %vm1413_vm15 = vcmp.ge.f32.partialorder %v2957_v43, 0.0  ;;  %2245 = vst.msk [vmem:[%s3266_s20 + $0x18] sm:$0xf] %vm2238_vm4, %v2697_v45  ;;  %v1541_v55 = vmul.f32 0.2, %v2957_v43  ;;  %vm1347_vm0 = vcmp.ge.f32.partialorder %v850_v44, 0.0 }
  0xf5   : > { %v2695_v51 = vpack.c.bf16 %v1602_v47, %v1602_v47  ;;  %v1666_v52 = vsel %vm1410_vm13, %v1103_v37, %v1538_v42  ;;  %v1605_v54 = vsel %vm1349_vm14, %v2893_v38, %v1477_v48  ;;  %2309 = vst.msk [vmem:[%s3266_s20 + $0x118] sm:$0xf] %vm2238_vm4, %v2761_v50  ;;  %v1475_v57 = vmul.f32 0.2, %v850_v44  ;;  %v2896_v59 = vpop.f32.mrb[8].mxu0 }
  0xf6   : > { %v2759_v53 = vpack.c.bf16 %v1666_v52, %v1666_v52  ;;  %v2698_v56 = vpack.c.bf16 %v1605_v54, %v1605_v54  ;;  %vm1411_vm1 = vcmp.ge.f32.partialorder %v1106_v49, 0.0  ;;  %v1539_v58 = vmul.f32 0.2, %v1106_v49  ;;  %v2960_v62 = vpop.f32.mrb[8].mxu1  ;;  %v863_v63 = vpop.f32.mrb[9].mxu0 }
  0xf7   : > { %2243 = vst.msk [vmem:[%s3266_s20 + $0x10] sm:$0xf] %vm2238_vm4, %v2695_v51  ;;  %v1669_v60 = vsel %vm1413_vm15, %v2957_v43, %v1541_v55  ;;  %vm1352_vm2 = vcmp.ge.f32.partialorder %v2896_v59, 0.0  ;;  %v1480_v61 = vmul.f32 0.2, %v2896_v59  ;;  %v1603_v1 = vsel %vm1347_vm0, %v850_v44, %v1475_v57  ;;  %v1119_v3 = vpop.f32.mrb[9].mxu1 }
  0xf8   : > { %2307 = vst.msk [vmem:[%s3266_s20 + $0x110] sm:$0xf] %vm2238_vm4, %v2759_v53  ;;  %2246 = vst.msk [vmem:[%s3266_s20 + $0x1c] sm:$0xf] %vm2238_vm4, %v2698_v56  ;;  %v2762_v0 = vpack.c.bf16 %v1669_v60, %v1669_v60  ;;  %v1667_v2 = vsel %vm1411_vm1, %v1106_v49, %v1539_v58  ;;  %vm1416_vm3 = vcmp.ge.f32.partialorder %v2960_v62, 0.0  ;;  %v2897_v4 = vpop.f32.mrb[10].mxu0  ;;  %v2696_v5 = vpack.c.bf16 %v1603_v1, %v1603_v1 }
  0xf9   : > { %v2760_v6 = vpack.c.bf16 %v1667_v2, %v1667_v2  ;;  %v1608_v7 = vsel %vm1352_vm2, %v2896_v59, %v1480_v61  ;;  %v1544_v8 = vmul.f32 0.2, %v2960_v62  ;;  %v2961_v9 = vpop.f32.mrb[10].mxu1  ;;  %v866_v10 = vpop.f32.mrb[11].mxu0  ;;  %vm1350_vm5 = vcmp.ge.f32.partialorder %v863_v63, 0.0 }
  0xfa   : > { %2310 = vst.msk [vmem:[%s3266_s20 + $0x11c] sm:$0xf] %vm2238_vm4, %v2762_v0  ;;  %v2701_v11 = vpack.c.bf16 %v1608_v7, %v1608_v7  ;;  %v1478_v12 = vmul.f32 0.2, %v863_v63  ;;  %vm1414_vm6 = vcmp.ge.f32.partialorder %v1119_v3, 0.0  ;;  %v1122_v13 = vpop.f32.mrb[11].mxu1 }
  0xfb   : > { %2244 = vst.msk [vmem:[%s3266_s20 + $0x14] sm:$0xf] %vm2238_vm4, %v2696_v5  ;;  %2308 = vst.msk [vmem:[%s3266_s20 + $0x114] sm:$0xf] %vm2238_vm4, %v2760_v6  ;;  %v1672_v14 = vsel %vm1416_vm3, %v2960_v62, %v1544_v8  ;;  %v1542_v15 = vmul.f32 0.2, %v1119_v3 }
  0xfc   : > { %vm1353_vm7 = vcmp.ge.f32.partialorder %v2897_v4, 0.0  ;;  %v1481_v16 = vmul.f32 0.2, %v2897_v4  ;;  %2249 = vst.msk [vmem:[%s3266_s20 + $0x28] sm:$0xf] %vm2238_vm4, %v2701_v11  ;;  %v2765_v17 = vpack.c.bf16 %v1672_v14, %v1672_v14  ;;  %v1606_v18 = vsel %vm1350_vm5, %v863_v63, %v1478_v12 }
  0xfd   : > { %vm1417_vm8 = vcmp.ge.f32.partialorder %v2961_v9, 0.0  ;;  %v1545_v19 = vmul.f32 0.2, %v2961_v9  ;;  %v2699_v20 = vpack.c.bf16 %v1606_v18, %v1606_v18  ;;  %v1670_v21 = vsel %vm1414_vm6, %v1119_v3, %v1542_v15  ;;  %v2900_v27 = vpop.f32.mrb[12].mxu0 }
  0xfe   : > { %v1609_v22 = vsel %vm1353_vm7, %v2897_v4, %v1481_v16  ;;  %vm1351_vm9 = vcmp.ge.f32.partialorder %v866_v10, 0.0  ;;  %2313 = vst.msk [vmem:[%s3266_s20 + $0x128] sm:$0xf] %vm2238_vm4, %v2765_v17  ;;  %v2763_v23 = vpack.c.bf16 %v1670_v21, %v1670_v21  ;;  %v1479_v26 = vmul.f32 0.2, %v866_v10  ;;  %v2964_v30 = vpop.f32.mrb[12].mxu1 }
  0xff   : > { %v2702_v24 = vpack.c.bf16 %v1609_v22, %v1609_v22  ;;  %v1673_v25 = vsel %vm1417_vm8, %v2961_v9, %v1545_v19  ;;  %2247 = vst.msk [vmem:[%s3266_s20 + $0x20] sm:$0xf] %vm2238_vm4, %v2699_v20  ;;  %vm1415_vm10 = vcmp.ge.f32.partialorder %v1122_v13, 0.0  ;;  %v1543_v29 = vmul.f32 0.2, %v1122_v13  ;;  %v879_v31 = vpop.f32.mrb[13].mxu0 }
 0x100   : > { %v2766_v28 = vpack.c.bf16 %v1673_v25, %v1673_v25  ;;  %vm1356_vm11 = vcmp.ge.f32.partialorder %v2900_v27, 0.0  ;;  %2311 = vst.msk [vmem:[%s3266_s20 + $0x120] sm:$0xf] %vm2238_vm4, %v2763_v23  ;;  %v1607_v32 = vsel %vm1351_vm9, %v866_v10, %v1479_v26  ;;  %v1484_v33 = vmul.f32 0.2, %v2900_v27  ;;  %v1135_v35 = vpop.f32.mrb[13].mxu1 }
 0x101   : > { %2250 = vst.msk [vmem:[%s3266_s20 + $0x2c] sm:$0xf] %vm2238_vm4, %v2702_v24  ;;  %vm1420_vm12 = vcmp.ge.f32.partialorder %v2964_v30, 0.0  ;;  %v1548_v34 = vmul.f32 0.2, %v2964_v30  ;;  %v2700_v36 = vpack.c.bf16 %v1607_v32, %v1607_v32  ;;  %v1671_v37 = vsel %vm1415_vm10, %v1122_v13, %v1543_v29  ;;  %v2901_v39 = vpop.f32.mrb[14].mxu0 }
 0x102   : > { %2314 = vst.msk [vmem:[%s3266_s20 + $0x12c] sm:$0xf] %vm2238_vm4, %v2766_v28  ;;  %vm1354_vm13 = vcmp.ge.f32.partialorder %v879_v31, 0.0  ;;  %v1482_v38 = vmul.f32 0.2, %v879_v31  ;;  %v2965_v40 = vpop.f32.mrb[14].mxu1  ;;  %v2764_v41 = vpack.c.bf16 %v1671_v37, %v1671_v37  ;;  %v1612_v42 = vsel %vm1356_vm11, %v2900_v27, %v1484_v33 }
 0x103   : > { %v1676_v43 = vsel %vm1420_vm12, %v2964_v30, %v1548_v34  ;;  %vm1418_vm14 = vcmp.ge.f32.partialorder %v1135_v35, 0.0  ;;  %v882_v44 = vpop.f32.mrb[15].mxu0  ;;  %v1138_v45 = vpop.f32.mrb[15].mxu1  ;;  %2248 = vst.msk [vmem:[%s3266_s20 + $0x24] sm:$0xf] %vm2238_vm4, %v2700_v36  ;;  %v2705_v46 = vpack.c.bf16 %v1612_v42, %v1612_v42  ;;  %vm1357_vm15 = vcmp.ge.f32.partialorder %v2901_v39, 0.0 }
 0x104   : > { %v2769_v47 = vpack.c.bf16 %v1676_v43, %v1676_v43  ;;  %v1610_v48 = vsel %vm1354_vm13, %v879_v31, %v1482_v38  ;;  %v1546_v49 = vmul.f32 0.2, %v1135_v35  ;;  %2312 = vst.msk [vmem:[%s3266_s20 + $0x124] sm:$0xf] %vm2238_vm4, %v2764_v41  ;;  %v1485_v51 = vmul.f32 0.2, %v2901_v39 }
 0x105   : > { %v2703_v50 = vpack.c.bf16 %v1610_v48, %v1610_v48  ;;  %vm1421_vm0 = vcmp.ge.f32.partialorder %v2965_v40, 0.0  ;;  %2253 = vst.msk [vmem:[%s3266_s20 + $0x38] sm:$0xf] %vm2238_vm4, %v2705_v46  ;;  %v1549_v53 = vmul.f32 0.2, %v2965_v40  ;;  %vm1355_vm1 = vcmp.ge.f32.partialorder %v882_v44, 0.0 }
 0x106   : > { %2317 = vst.msk [vmem:[%s3266_s20 + $0x138] sm:$0xf] %vm2238_vm4, %v2769_v47  ;;  %v1674_v52 = vsel %vm1418_vm14, %v1135_v35, %v1546_v49  ;;  %v1483_v54 = vmul.f32 0.2, %v882_v44  ;;  %v1613_v56 = vsel %vm1357_vm15, %v2901_v39, %v1485_v51  ;;  %vm1419_vm2 = vcmp.ge.f32.partialorder %v1138_v45, 0.0  ;;  %v2904_v58 = vpop.f32.mrb[16].mxu0 }
 0x107   : > { %2251 = vst.msk [vmem:[%s3266_s20 + $0x30] sm:$0xf] %vm2238_vm4, %v2703_v50  ;;  %v2767_v55 = vpack.c.bf16 %v1674_v52, %v1674_v52  ;;  %v1547_v57 = vmul.f32 0.2, %v1138_v45  ;;  %v2706_v59 = vpack.c.bf16 %v1613_v56, %v1613_v56  ;;  %v1677_v60 = vsel %vm1421_vm0, %v2965_v40, %v1549_v53  ;;  %v2968_v62 = vpop.f32.mrb[16].mxu1  ;;  %v895_v63 = vpop.f32.mrb[17].mxu0 }
 0x108   : > { %v1611_v61 = vsel %vm1355_vm1, %v882_v44, %v1483_v54  ;;  %vm1360_vm3 = vcmp.ge.f32.partialorder %v2904_v58, 0.0  ;;  %v2770_v0 = vpack.c.bf16 %v1677_v60, %v1677_v60  ;;  %v1488_v3 = vmul.f32 0.2, %v2904_v58  ;;  %v1151_v4 = vpop.f32.mrb[17].mxu1  ;;  %v2905_v5 = vpop.f32.mrb[18].mxu0 }
 0x109   : > { %2315 = vst.msk [vmem:[%s3266_s20 + $0x130] sm:$0xf] %vm2238_vm4, %v2767_v55  ;;  %v2704_v1 = vpack.c.bf16 %v1611_v61, %v1611_v61  ;;  %v1675_v2 = vsel %vm1419_vm2, %v1138_v45, %v1547_v57  ;;  %2254 = vst.msk [vmem:[%s3266_s20 + $0x3c] sm:$0xf] %vm2238_vm4, %v2706_v59  ;;  %vm1424_vm5 = vcmp.ge.f32.partialorder %v2968_v62, 0.0  ;;  %vm1358_vm6 = vcmp.ge.f32.partialorder %v895_v63, 0.0 }
 0x10a   : > { %v2768_v6 = vpack.c.bf16 %v1675_v2, %v1675_v2  ;;  %v1552_v7 = vmul.f32 0.2, %v2968_v62  ;;  %v2969_v8 = vpop.f32.mrb[18].mxu1  ;;  %v898_v9 = vpop.f32.mrb[19].mxu0  ;;  %2318 = vst.msk [vmem:[%s3266_s20 + $0x13c] sm:$0xf] %vm2238_vm4, %v2770_v0  ;;  %v1616_v10 = vsel %vm1360_vm3, %v2904_v58, %v1488_v3 }
 0x10b   : > { %2252 = vst.msk [vmem:[%s3266_s20 + $0x34] sm:$0xf] %vm2238_vm4, %v2704_v1  ;;  %v1486_v11 = vmul.f32 0.2, %v895_v63  ;;  %vm1422_vm7 = vcmp.ge.f32.partialorder %v1151_v4, 0.0  ;;  %v1154_v13 = vpop.f32.mrb[19].mxu1  ;;  %v2709_v14 = vpack.c.bf16 %v1616_v10, %v1616_v10 }
 0x10c   : > { %v1550_v12 = vmul.f32 0.2, %v1151_v4  ;;  %2316 = vst.msk [vmem:[%s3266_s20 + $0x134] sm:$0xf] %vm2238_vm4, %v2768_v6  ;;  %v1680_v15 = vsel %vm1424_vm5, %v2968_v62, %v1552_v7  ;;  %vm1361_vm8 = vcmp.ge.f32.partialorder %v2905_v5, 0.0  ;;  %vm1425_vm9 = vcmp.ge.f32.partialorder %v2969_v8, 0.0 }
 0x10d   : > { %v1489_v16 = vmul.f32 0.2, %v2905_v5  ;;  %v2773_v17 = vpack.c.bf16 %v1680_v15, %v1680_v15  ;;  %v1614_v18 = vsel %vm1358_vm6, %v895_v63, %v1486_v11  ;;  %2257 = vst.msk [vmem:[%s3266_s20 + $0x48] sm:$0xf] %vm2238_vm4, %v2709_v14  ;;  %v1553_v23 = vmul.f32 0.2, %v2969_v8 }
 0x10e   : > { %v1678_v19 = vsel %vm1422_vm7, %v1151_v4, %v1550_v12  ;;  %v2707_v20 = vpack.c.bf16 %v1614_v18, %v1614_v18  ;;  %vm1359_vm10 = vcmp.ge.f32.partialorder %v898_v9, 0.0  ;;  %v1487_v25 = vmul.f32 0.2, %v898_v9  ;;  %v2908_v26 = vpop.f32.mrb[20].mxu0  ;;  %v2972_v30 = vpop.f32.mrb[20].mxu1 }
 0x10f   : > { %v2771_v21 = vpack.c.bf16 %v1678_v19, %v1678_v19  ;;  %v1617_v22 = vsel %vm1361_vm8, %v2905_v5, %v1489_v16  ;;  %2321 = vst.msk [vmem:[%s3266_s20 + $0x148] sm:$0xf] %vm2238_vm4, %v2773_v17  ;;  %vm1423_vm11 = vcmp.ge.f32.partialorder %v1154_v13, 0.0  ;;  %v1681_v27 = vsel %vm1425_vm9, %v2969_v8, %v1553_v23  ;;  %v911_v34 = vpop.f32.mrb[21].mxu0  ;;  %v1167_v35 = vpop.f32.mrb[21].mxu1 }
 0x110   : > { %v2710_v24 = vpack.c.bf16 %v1617_v22, %v1617_v22  ;;  %2255 = vst.msk [vmem:[%s3266_s20 + $0x40] sm:$0xf] %vm2238_vm4, %v2707_v20  ;;  %v1551_v28 = vmul.f32 0.2, %v1154_v13  ;;  %vm1364_vm12 = vcmp.ge.f32.partialorder %v2908_v26, 0.0  ;;  %v2774_v31 = vpack.c.bf16 %v1681_v27, %v1681_v27  ;;  %v2909_v39 = vpop.f32.mrb[22].mxu0 }
 0x111   : > { %2319 = vst.msk [vmem:[%s3266_s20 + $0x140] sm:$0xf] %vm2238_vm4, %v2771_v21  ;;  %v1492_v29 = vmul.f32 0.2, %v2908_v26  ;;  %v1615_v32 = vsel %vm1359_vm10, %v898_v9, %v1487_v25  ;;  %vm1428_vm13 = vcmp.ge.f32.partialorder %v2972_v30, 0.0  ;;  %vm1362_vm14 = vcmp.ge.f32.partialorder %v911_v34, 0.0 }
 0x112   : > { %2258 = vst.msk [vmem:[%s3266_s20 + $0x4c] sm:$0xf] %vm2238_vm4, %v2710_v24  ;;  %v1556_v33 = vmul.f32 0.2, %v2972_v30  ;;  %v2708_v36 = vpack.c.bf16 %v1615_v32, %v1615_v32  ;;  %v1679_v37 = vsel %vm1423_vm11, %v1154_v13, %v1551_v28  ;;  %v2973_v40 = vpop.f32.mrb[22].mxu1  ;;  %v914_v45 = vpop.f32.mrb[23].mxu0 }
 0x113   : > { %v1620_v38 = vsel %vm1364_vm12, %v2908_v26, %v1492_v29  ;;  %2322 = vst.msk [vmem:[%s3266_s20 + $0x14c] sm:$0xf] %vm2238_vm4, %v2774_v31  ;;  %v2772_v41 = vpack.c.bf16 %v1679_v37, %v1679_v37  ;;  %v1490_v44 = vmul.f32 0.2, %v911_v34  ;;  %v1170_v46 = vpop.f32.mrb[23].mxu1  ;;  %vm1426_vm15 = vcmp.ge.f32.partialorder %v1167_v35, 0.0 }
 0x114   : > { %v2713_v42 = vpack.c.bf16 %v1620_v38, %v1620_v38  ;;  %v1684_v43 = vsel %vm1428_vm13, %v2972_v30, %v1556_v33  ;;  %2256 = vst.msk [vmem:[%s3266_s20 + $0x44] sm:$0xf] %vm2238_vm4, %v2708_v36  ;;  %v1554_v48 = vmul.f32 0.2, %v1167_v35  ;;  %vm1365_vm0 = vcmp.ge.f32.partialorder %v2909_v39, 0.0 }
 0x115   : > { %v2777_v47 = vpack.c.bf16 %v1684_v43, %v1684_v43  ;;  %2320 = vst.msk [vmem:[%s3266_s20 + $0x144] sm:$0xf] %vm2238_vm4, %v2772_v41  ;;  %v1618_v49 = vsel %vm1362_vm14, %v911_v34, %v1490_v44  ;;  %v1493_v50 = vmul.f32 0.2, %v2909_v39  ;;  %vm1429_vm1 = vcmp.ge.f32.partialorder %v2973_v40, 0.0  ;;  %v2912_v58 = vpop.f32.mrb[24].mxu0 }
 0x116   : > { %2261 = vst.msk [vmem:[%s3266_s20 + $0x58] sm:$0xf] %vm2238_vm4, %v2713_v42  ;;  %v1557_v51 = vmul.f32 0.2, %v2973_v40  ;;  %v2711_v52 = vpack.c.bf16 %v1618_v49, %v1618_v49  ;;  %v1682_v53 = vsel %vm1426_vm15, %v1167_v35, %v1554_v48  ;;  %vm1363_vm2 = vcmp.ge.f32.partialorder %v914_v45, 0.0  ;;  %v2976_v63 = vpop.f32.mrb[24].mxu1 }
 0x117   : > { %2325 = vst.msk [vmem:[%s3266_s20 + $0x158] sm:$0xf] %vm2238_vm4, %v2777_v47  ;;  %v1491_v54 = vmul.f32 0.2, %v914_v45  ;;  %v2775_v55 = vpack.c.bf16 %v1682_v53, %v1682_v53  ;;  %v1621_v56 = vsel %vm1365_vm0, %v2909_v39, %v1493_v50  ;;  %vm1427_vm3 = vcmp.ge.f32.partialorder %v1170_v46, 0.0  ;;  %v927_v0 = vpop.f32.mrb[25].mxu0 }
 0x118   : > { %v1685_v57 = vsel %vm1429_vm1, %v2973_v40, %v1557_v51  ;;  %2259 = vst.msk [vmem:[%s3266_s20 + $0x50] sm:$0xf] %vm2238_vm4, %v2711_v52  ;;  %v2714_v59 = vpack.c.bf16 %v1621_v56, %v1621_v56  ;;  %v1555_v62 = vmul.f32 0.2, %v1170_v46  ;;  %vm1368_vm5 = vcmp.ge.f32.partialorder %v2912_v58, 0.0  ;;  %v1183_v3 = vpop.f32.mrb[25].mxu1 }
 0x119   : > { %v2778_v60 = vpack.c.bf16 %v1685_v57, %v1685_v57  ;;  %v1619_v61 = vsel %vm1363_vm2, %v914_v45, %v1491_v54  ;;  %2323 = vst.msk [vmem:[%s3266_s20 + $0x150] sm:$0xf] %vm2238_vm4, %v2775_v55  ;;  %v1496_v2 = vmul.f32 0.2, %v2912_v58  ;;  %vm1432_vm6 = vcmp.ge.f32.partialorder %v2976_v63, 0.0  ;;  %v2913_v4 = vpop.f32.mrb[26].mxu0 }
 0x11a   : > { %v2712_v1 = vpack.c.bf16 %v1619_v61, %v1619_v61  ;;  %2262 = vst.msk [vmem:[%s3266_s20 + $0x5c] sm:$0xf] %vm2238_vm4, %v2714_v59  ;;  %v1683_v5 = vsel %vm1427_vm3, %v1170_v46, %v1555_v62  ;;  %v1560_v6 = vmul.f32 0.2, %v2976_v63  ;;  %vm1366_vm7 = vcmp.ge.f32.partialorder %v927_v0, 0.0  ;;  %v2977_v8 = vpop.f32.mrb[26].mxu1 }
 0x11b   : > { %2326 = vst.msk [vmem:[%s3266_s20 + $0x15c] sm:$0xf] %vm2238_vm4, %v2778_v60  ;;  %v1494_v7 = vmul.f32 0.2, %v927_v0  ;;  %v2776_v9 = vpack.c.bf16 %v1683_v5, %v1683_v5  ;;  %v1624_v10 = vsel %vm1368_vm5, %v2912_v58, %v1496_v2  ;;  %vm1430_vm8 = vcmp.ge.f32.partialorder %v1183_v3, 0.0  ;;  %v930_v12 = vpop.f32.mrb[27].mxu0 }
 0x11c   : > { %2260 = vst.msk [vmem:[%s3266_s20 + $0x54] sm:$0xf] %vm2238_vm4, %v2712_v1  ;;  %v1558_v11 = vmul.f32 0.2, %v1183_v3  ;;  %v1186_v13 = vpop.f32.mrb[27].mxu1  ;;  %v2717_v14 = vpack.c.bf16 %v1624_v10, %v1624_v10  ;;  %v1688_v15 = vsel %vm1432_vm6, %v2976_v63, %v1560_v6  ;;  %vm1369_vm9 = vcmp.ge.f32.partialorder %v2913_v4, 0.0 }
 0x11d   : > { %v1622_v16 = vsel %vm1366_vm7, %v927_v0, %v1494_v7  ;;  %2324 = vst.msk [vmem:[%s3266_s20 + $0x154] sm:$0xf] %vm2238_vm4, %v2776_v9  ;;  %v2781_v17 = vpack.c.bf16 %v1688_v15, %v1688_v15  ;;  %v1497_v20 = vmul.f32 0.2, %v2913_v4  ;;  %vm1433_vm10 = vcmp.ge.f32.partialorder %v2977_v8, 0.0  ;;  %v2916_v26 = vpop.f32.mrb[28].mxu0 }
 0x11e   : > { %v2715_v18 = vpack.c.bf16 %v1622_v16, %v1622_v16  ;;  %v1686_v19 = vsel %vm1430_vm8, %v1183_v3, %v1558_v11  ;;  %2265 = vst.msk [vmem:[%s3266_s20 + $0x68] sm:$0xf] %vm2238_vm4, %v2717_v14  ;;  %v1561_v22 = vmul.f32 0.2, %v2977_v8  ;;  %vm1367_vm11 = vcmp.ge.f32.partialorder %v930_v12, 0.0  ;;  %v2980_v30 = vpop.f32.mrb[28].mxu1 }
 0x11f   : > { %v2779_v21 = vpack.c.bf16 %v1686_v19, %v1686_v19  ;;  %2329 = vst.msk [vmem:[%s3266_s20 + $0x168] sm:$0xf] %vm2238_vm4, %v2781_v17  ;;  %v1625_v23 = vsel %vm1369_vm9, %v2913_v4, %v1497_v20  ;;  %v1495_v24 = vmul.f32 0.2, %v930_v12  ;;  %vm1431_vm12 = vcmp.ge.f32.partialorder %v1186_v13, 0.0  ;;  %v943_v31 = vpop.f32.mrb[29].mxu0 }
 0x120   : > { %2263 = vst.msk [vmem:[%s3266_s20 + $0x60] sm:$0xf] %vm2238_vm4, %v2715_v18  ;;  %v1559_v25 = vmul.f32 0.2, %v1186_v13  ;;  %v2718_v27 = vpack.c.bf16 %v1625_v23, %v1625_v23  ;;  %v1689_v28 = vsel %vm1433_vm10, %v2977_v8, %v1561_v22  ;;  %vm1372_vm13 = vcmp.ge.f32.partialorder %v2916_v26, 0.0  ;;  %v1199_v35 = vpop.f32.mrb[29].mxu1 }
 0x121   : > { %2327 = vst.msk [vmem:[%s3266_s20 + $0x160] sm:$0xf] %vm2238_vm4, %v2779_v21  ;;  %v1500_v29 = vmul.f32 0.2, %v2916_v26  ;;  %v2782_v32 = vpack.c.bf16 %v1689_v28, %v1689_v28  ;;  %v1623_v33 = vsel %vm1367_vm11, %v930_v12, %v1495_v24  ;;  %vm1436_vm14 = vcmp.ge.f32.partialorder %v2980_v30, 0.0  ;;  %v2917_v36 = vpop.f32.mrb[30].mxu0 }
 0x122   : > { %v1687_v34 = vsel %vm1431_vm12, %v1186_v13, %v1559_v25  ;;  %2266 = vst.msk [vmem:[%s3266_s20 + $0x6c] sm:$0xf] %vm2238_vm4, %v2718_v27  ;;  %v2716_v37 = vpack.c.bf16 %v1623_v33, %v1623_v33  ;;  %v1564_v40 = vmul.f32 0.2, %v2980_v30  ;;  %v2981_v41 = vpop.f32.mrb[30].mxu1  ;;  %v946_v42 = vpop.f32.mrb[31].mxu0 }
 0x123   : > { %v2780_v38 = vpack.c.bf16 %v1687_v34, %v1687_v34  ;;  %v1628_v39 = vsel %vm1372_vm13, %v2916_v26, %v1500_v29  ;;  %2330 = vst.msk [vmem:[%s3266_s20 + $0x16c] sm:$0xf] %vm2238_vm4, %v2782_v32  ;;  %vm1370_vm15 = vcmp.ge.f32.partialorder %v943_v31, 0.0  ;;  %v1498_v44 = vmul.f32 0.2, %v943_v31  ;;  %v1202_v45 = vpop.f32.mrb[31].mxu1 }
 0x124   : > { %v2721_v43 = vpack.c.bf16 %v1628_v39, %v1628_v39  ;;  %vm1434_vm0 = vcmp.ge.f32.partialorder %v1199_v35, 0.0  ;;  %2264 = vst.msk [vmem:[%s3266_s20 + $0x64] sm:$0xf] %vm2238_vm4, %v2716_v37  ;;  %v1692_v46 = vsel %vm1436_vm14, %v2980_v30, %v1564_v40  ;;  %v1562_v47 = vmul.f32 0.2, %v1199_v35 }
 0x125   : > { %2328 = vst.msk [vmem:[%s3266_s20 + $0x164] sm:$0xf] %vm2238_vm4, %v2780_v38  ;;  %vm1373_vm1 = vcmp.ge.f32.partialorder %v2917_v36, 0.0  ;;  %v1501_v48 = vmul.f32 0.2, %v2917_v36  ;;  %v2785_v49 = vpack.c.bf16 %v1692_v46, %v1692_v46  ;;  %v1626_v50 = vsel %vm1370_vm15, %v943_v31, %v1498_v44  ;;  %v2920_v59 = vpop.f32.mrb[32].mxu0 }
 0x126   : > { %2269 = vst.msk [vmem:[%s3266_s20 + $0x78] sm:$0xf] %vm2238_vm4, %v2721_v43  ;;  %vm1437_vm2 = vcmp.ge.f32.partialorder %v2981_v41, 0.0  ;;  %v1565_v51 = vmul.f32 0.2, %v2981_v41  ;;  %v2719_v52 = vpack.c.bf16 %v1626_v50, %v1626_v50  ;;  %v1690_v53 = vsel %vm1434_vm0, %v1199_v35, %v1562_v47  ;;  %v2984_v62 = vpop.f32.mrb[32].mxu1 }
 0x127   : > { %v1629_v54 = vsel %vm1373_vm1, %v2917_v36, %v1501_v48  ;;  %vm1371_vm3 = vcmp.ge.f32.partialorder %v946_v42, 0.0  ;;  %2333 = vst.msk [vmem:[%s3266_s20 + $0x178] sm:$0xf] %vm2238_vm4, %v2785_v49  ;;  %v2783_v55 = vpack.c.bf16 %v1690_v53, %v1690_v53  ;;  %v1499_v58 = vmul.f32 0.2, %v946_v42  ;;  %v959_v63 = vpop.f32.mrb[33].mxu0 }
 0x128   : > { %v2722_v56 = vpack.c.bf16 %v1629_v54, %v1629_v54  ;;  %v1693_v57 = vsel %vm1437_vm2, %v2981_v41, %v1565_v51  ;;  %2267 = vst.msk [vmem:[%s3266_s20 + $0x70] sm:$0xf] %vm2238_vm4, %v2719_v52  ;;  %vm1435_vm5 = vcmp.ge.f32.partialorder %v1202_v45, 0.0  ;;  %v1563_v61 = vmul.f32 0.2, %v1202_v45  ;;  %v1215_v3 = vpop.f32.mrb[33].mxu1 }
 0x129   : > { %v2786_v60 = vpack.c.bf16 %v1693_v57, %v1693_v57  ;;  %vm1376_vm6 = vcmp.ge.f32.partialorder %v2920_v59, 0.0  ;;  %2331 = vst.msk [vmem:[%s3266_s20 + $0x170] sm:$0xf] %vm2238_vm4, %v2783_v55  ;;  %v1627_v0 = vsel %vm1371_vm3, %v946_v42, %v1499_v58  ;;  %v1504_v1 = vmul.f32 0.2, %v2920_v59  ;;  %v2921_v7 = vpop.f32.mrb[34].mxu0 }
 0x12a   : > { %2270 = vst.msk [vmem:[%s3266_s20 + $0x7c] sm:$0xf] %vm2238_vm4, %v2722_v56  ;;  %vm1440_vm7 = vcmp.ge.f32.partialorder %v2984_v62, 0.0  ;;  %v1568_v2 = vmul.f32 0.2, %v2984_v62  ;;  %v2720_v4 = vpack.c.bf16 %v1627_v0, %v1627_v0  ;;  %v1691_v5 = vsel %vm1435_vm5, %v1202_v45, %v1563_v61  ;;  %v2985_v8 = vpop.f32.mrb[34].mxu1 }
 0x12b   : > { %2334 = vst.msk [vmem:[%s3266_s20 + $0x17c] sm:$0xf] %vm2238_vm4, %v2786_v60  ;;  %vm1374_vm8 = vcmp.ge.f32.partialorder %v959_v63, 0.0  ;;  %v1502_v6 = vmul.f32 0.2, %v959_v63  ;;  %v2784_v9 = vpack.c.bf16 %v1691_v5, %v1691_v5  ;;  %v1632_v10 = vsel %vm1376_vm6, %v2920_v59, %v1504_v1  ;;  %v962_v12 = vpop.f32.mrb[35].mxu0 }
 0x12c   : > { %v1696_v11 = vsel %vm1440_vm7, %v2984_v62, %v1568_v2  ;;  %vm1438_vm9 = vcmp.ge.f32.partialorder %v1215_v3, 0.0  ;;  %v1218_v13 = vpop.f32.mrb[35].mxu1  ;;  %2268 = vst.msk [vmem:[%s3266_s20 + $0x74] sm:$0xf] %vm2238_vm4, %v2720_v4  ;;  %v2725_v14 = vpack.c.bf16 %v1632_v10, %v1632_v10  ;;  %v1566_v17 = vmul.f32 0.2, %v1215_v3 }
 0x12d   : > { %v2789_v15 = vpack.c.bf16 %v1696_v11, %v1696_v11  ;;  %v1630_v16 = vsel %vm1374_vm8, %v959_v63, %v1502_v6  ;;  %2332 = vst.msk [vmem:[%s3266_s20 + $0x174] sm:$0xf] %vm2238_vm4, %v2784_v9  ;;  %vm1377_vm10 = vcmp.ge.f32.partialorder %v2921_v7, 0.0  ;;  %v1505_v19 = vmul.f32 0.2, %v2921_v7  ;;  %v2924_v26 = vpop.f32.mrb[36].mxu0 }
 0x12e   : > { %v2723_v18 = vpack.c.bf16 %v1630_v16, %v1630_v16  ;;  %vm1441_vm11 = vcmp.ge.f32.partialorder %v2985_v8, 0.0  ;;  %2273 = vst.msk [vmem:[%s3266_s20 + $0x88] sm:$0xf] %vm2238_vm4, %v2725_v14  ;;  %v1694_v20 = vsel %vm1438_vm9, %v1215_v3, %v1566_v17  ;;  %v1569_v21 = vmul.f32 0.2, %v2985_v8  ;;  %v2988_v30 = vpop.f32.mrb[36].mxu1 }
 0x12f   : > { %2337 = vst.msk [vmem:[%s3266_s20 + $0x188] sm:$0xf] %vm2238_vm4, %v2789_v15  ;;  %vm1375_vm12 = vcmp.ge.f32.partialorder %v962_v12, 0.0  ;;  %v1503_v22 = vmul.f32 0.2, %v962_v12  ;;  %v2787_v23 = vpack.c.bf16 %v1694_v20, %v1694_v20  ;;  %v1633_v24 = vsel %vm1377_vm10, %v2921_v7, %v1505_v19  ;;  %v975_v31 = vpop.f32.mrb[37].mxu0 }
 0x130   : > { %2271 = vst.msk [vmem:[%s3266_s20 + $0x80] sm:$0xf] %vm2238_vm4, %v2723_v18  ;;  %vm1439_vm13 = vcmp.ge.f32.partialorder %v1218_v13, 0.0  ;;  %v1567_v25 = vmul.f32 0.2, %v1218_v13  ;;  %v2726_v27 = vpack.c.bf16 %v1633_v24, %v1633_v24  ;;  %v1697_v28 = vsel %vm1441_vm11, %v2985_v8, %v1569_v21  ;;  %v1231_v36 = vpop.f32.mrb[37].mxu1 }
 0x131   : > { %v1631_v29 = vsel %vm1375_vm12, %v962_v12, %v1503_v22  ;;  %vm1380_vm14 = vcmp.ge.f32.partialorder %v2924_v26, 0.0  ;;  %2335 = vst.msk [vmem:[%s3266_s20 + $0x180] sm:$0xf] %vm2238_vm4, %v2787_v23  ;;  %v2790_v32 = vpack.c.bf16 %v1697_v28, %v1697_v28  ;;  %v1508_v35 = vmul.f32 0.2, %v2924_v26  ;;  %v2925_v37 = vpop.f32.mrb[38].mxu0 }
 0x132   : > { %v2724_v33 = vpack.c.bf16 %v1631_v29, %v1631_v29  ;;  %v1695_v34 = vsel %vm1439_vm13, %v1218_v13, %v1567_v25  ;;  %2274 = vst.msk [vmem:[%s3266_s20 + $0x8c] sm:$0xf] %vm2238_vm4, %v2726_v27  ;;  %vm1444_vm15 = vcmp.ge.f32.partialorder %v2988_v30, 0.0  ;;  %v1572_v39 = vmul.f32 0.2, %v2988_v30  ;;  %v2989_v40 = vpop.f32.mrb[38].mxu1 }
 0x133   : > { %v2788_v38 = vpack.c.bf16 %v1695_v34, %v1695_v34  ;;  %vm1378_vm0 = vcmp.ge.f32.partialorder %v975_v31, 0.0  ;;  %v978_v41 = vpop.f32.mrb[39].mxu0  ;;  %2338 = vst.msk [vmem:[%s3266_s20 + $0x18c] sm:$0xf] %vm2238_vm4, %v2790_v32  ;;  %v1636_v42 = vsel %vm1380_vm14, %v2924_v26, %v1508_v35  ;;  %v1506_v43 = vmul.f32 0.2, %v975_v31 }
 0x134   : > { %2272 = vst.msk [vmem:[%s3266_s20 + $0x84] sm:$0xf] %vm2238_vm4, %v2724_v33  ;;  %vm1442_vm1 = vcmp.ge.f32.partialorder %v1231_v36, 0.0  ;;  %v1570_v44 = vmul.f32 0.2, %v1231_v36  ;;  %v1234_v45 = vpop.f32.mrb[39].mxu1  ;;  %v2729_v46 = vpack.c.bf16 %v1636_v42, %v1636_v42  ;;  %v1700_v47 = vsel %vm1444_vm15, %v2988_v30, %v1572_v39 }
 0x135   : > { %2336 = vst.msk [vmem:[%s3266_s20 + $0x184] sm:$0xf] %vm2238_vm4, %v2788_v38  ;;  %vm1381_vm2 = vcmp.ge.f32.partialorder %v2925_v37, 0.0  ;;  %v1509_v48 = vmul.f32 0.2, %v2925_v37  ;;  %v2793_v49 = vpack.c.bf16 %v1700_v47, %v1700_v47  ;;  %v1634_v50 = vsel %vm1378_vm0, %v975_v31, %v1506_v43  ;;  %v2928_v58 = vpop.f32.mrb[40].mxu0 }
 0x136   : > { %v1698_v51 = vsel %vm1442_vm1, %v1231_v36, %v1570_v44  ;;  %vm1445_vm3 = vcmp.ge.f32.partialorder %v2989_v40, 0.0  ;;  %2277 = vst.msk [vmem:[%s3266_s20 + $0x98] sm:$0xf] %vm2238_vm4, %v2729_v46  ;;  %v2727_v52 = vpack.c.bf16 %v1634_v50, %v1634_v50  ;;  %v1573_v55 = vmul.f32 0.2, %v2989_v40  ;;  %v2992_v62 = vpop.f32.mrb[40].mxu1 }
 0x137   : > { %v2791_v53 = vpack.c.bf16 %v1698_v51, %v1698_v51  ;;  %v1637_v54 = vsel %vm1381_vm2, %v2925_v37, %v1509_v48  ;;  %2341 = vst.msk [vmem:[%s3266_s20 + $0x198] sm:$0xf] %vm2238_vm4, %v2793_v49  ;;  %vm1379_vm5 = vcmp.ge.f32.partialorder %v978_v41, 0.0  ;;  %v1507_v57 = vmul.f32 0.2, %v978_v41  ;;  %v991_v2 = vpop.f32.mrb[41].mxu0 }
 0x138   : > { %v2730_v56 = vpack.c.bf16 %v1637_v54, %v1637_v54  ;;  %vm1443_vm6 = vcmp.ge.f32.partialorder %v1234_v45, 0.0  ;;  %2275 = vst.msk [vmem:[%s3266_s20 + $0x90] sm:$0xf] %vm2238_vm4, %v2727_v52  ;;  %v1701_v59 = vsel %vm1445_vm3, %v2989_v40, %v1573_v55  ;;  %v1571_v60 = vmul.f32 0.2, %v1234_v45  ;;  %v1247_v3 = vpop.f32.mrb[41].mxu1 }
 0x139   : > { %2339 = vst.msk [vmem:[%s3266_s20 + $0x190] sm:$0xf] %vm2238_vm4, %v2791_v53  ;;  %vm1384_vm7 = vcmp.ge.f32.partialorder %v2928_v58, 0.0  ;;  %v1512_v61 = vmul.f32 0.2, %v2928_v58  ;;  %v2794_v63 = vpack.c.bf16 %v1701_v59, %v1701_v59  ;;  %v1635_v0 = vsel %vm1379_vm5, %v978_v41, %v1507_v57  ;;  %v2929_v7 = vpop.f32.mrb[42].mxu0 }
 0x13a   : > { %2278 = vst.msk [vmem:[%s3266_s20 + $0x9c] sm:$0xf] %vm2238_vm4, %v2730_v56  ;;  %vm1448_vm8 = vcmp.ge.f32.partialorder %v2992_v62, 0.0  ;;  %v1576_v1 = vmul.f32 0.2, %v2992_v62  ;;  %v2728_v4 = vpack.c.bf16 %v1635_v0, %v1635_v0  ;;  %v1699_v5 = vsel %vm1443_vm6, %v1234_v45, %v1571_v60  ;;  %v2993_v8 = vpop.f32.mrb[42].mxu1 }
 0x13b   : > { %v1640_v6 = vsel %vm1384_vm7, %v2928_v58, %v1512_v61  ;;  %vm1382_vm9 = vcmp.ge.f32.partialorder %v991_v2, 0.0  ;;  %2342 = vst.msk [vmem:[%s3266_s20 + $0x19c] sm:$0xf] %vm2238_vm4, %v2794_v63  ;;  %v2792_v9 = vpack.c.bf16 %v1699_v5, %v1699_v5  ;;  %v1510_v12 = vmul.f32 0.2, %v991_v2  ;;  %v994_v13 = vpop.f32.mrb[43].mxu0 }
 0x13c   : > { %v2733_v10 = vpack.c.bf16 %v1640_v6, %v1640_v6  ;;  %v1704_v11 = vsel %vm1448_vm8, %v2992_v62, %v1576_v1  ;;  %v1250_v14 = vpop.f32.mrb[43].mxu1  ;;  %2276 = vst.msk [vmem:[%s3266_s20 + $0x94] sm:$0xf] %vm2238_vm4, %v2728_v4  ;;  %vm1446_vm10 = vcmp.ge.f32.partialorder %v1247_v3, 0.0  ;;  %v1574_v16 = vmul.f32 0.2, %v1247_v3 }
 0x13d   : > { %v2797_v15 = vpack.c.bf16 %v1704_v11, %v1704_v11  ;;  %vm1385_vm11 = vcmp.ge.f32.partialorder %v2929_v7, 0.0  ;;  %2340 = vst.msk [vmem:[%s3266_s20 + $0x194] sm:$0xf] %vm2238_vm4, %v2792_v9  ;;  %v1638_v17 = vsel %vm1382_vm9, %v991_v2, %v1510_v12  ;;  %v1513_v18 = vmul.f32 0.2, %v2929_v7  ;;  %v2932_v26 = vpop.f32.mrb[44].mxu0 }
 0x13e   : > { %2281 = vst.msk [vmem:[%s3266_s20 + $0xa8] sm:$0xf] %vm2238_vm4, %v2733_v10  ;;  %vm1449_vm12 = vcmp.ge.f32.partialorder %v2993_v8, 0.0  ;;  %v1577_v19 = vmul.f32 0.2, %v2993_v8  ;;  %v2731_v20 = vpack.c.bf16 %v1638_v17, %v1638_v17  ;;  %v1702_v21 = vsel %vm1446_vm10, %v1247_v3, %v1574_v16  ;;  %v2996_v31 = vpop.f32.mrb[44].mxu1 }
 0x13f   : > { %2345 = vst.msk [vmem:[%s3266_s20 + $0x1a8] sm:$0xf] %vm2238_vm4, %v2797_v15  ;;  %vm1383_vm13 = vcmp.ge.f32.partialorder %v994_v13, 0.0  ;;  %v1511_v22 = vmul.f32 0.2, %v994_v13  ;;  %v2795_v23 = vpack.c.bf16 %v1702_v21, %v1702_v21  ;;  %v1641_v24 = vsel %vm1385_vm11, %v2929_v7, %v1513_v18  ;;  %v1007_v32 = vpop.f32.mrb[45].mxu0 }
 0x140   : > { %v1705_v25 = vsel %vm1449_vm12, %v2993_v8, %v1577_v19  ;;  %vm1447_vm14 = vcmp.ge.f32.partialorder %v1250_v14, 0.0  ;;  %2279 = vst.msk [vmem:[%s3266_s20 + $0xa0] sm:$0xf] %vm2238_vm4, %v2731_v20  ;;  %v2734_v27 = vpack.c.bf16 %v1641_v24, %v1641_v24  ;;  %v1575_v30 = vmul.f32 0.2, %v1250_v14  ;;  %v1263_v35 = vpop.f32.mrb[45].mxu1 }
 0x141   : > { %v2798_v28 = vpack.c.bf16 %v1705_v25, %v1705_v25  ;;  %v1639_v29 = vsel %vm1383_vm13, %v994_v13, %v1511_v22  ;;  %2343 = vst.msk [vmem:[%s3266_s20 + $0x1a0] sm:$0xf] %vm2238_vm4, %v2795_v23  ;;  %vm1388_vm15 = vcmp.ge.f32.partialorder %v2932_v26, 0.0  ;;  %v1516_v34 = vmul.f32 0.2, %v2932_v26  ;;  %v2933_v36 = vpop.f32.mrb[46].mxu0 }
 0x142   : > { %v2732_v33 = vpack.c.bf16 %v1639_v29, %v1639_v29  ;;  %vm1452_vm0 = vcmp.ge.f32.partialorder %v2996_v31, 0.0  ;;  %2282 = vst.msk [vmem:[%s3266_s20 + $0xac] sm:$0xf] %vm2238_vm4, %v2734_v27  ;;  %v1703_v37 = vsel %vm1447_vm14, %v1250_v14, %v1575_v30  ;;  %v1580_v38 = vmul.f32 0.2, %v2996_v31  ;;  %v2997_v40 = vpop.f32.mrb[46].mxu1 }
 0x143   : > { %2346 = vst.msk [vmem:[%s3266_s20 + $0x1ac] sm:$0xf] %vm2238_vm4, %v2798_v28  ;;  %vm1386_vm1 = vcmp.ge.f32.partialorder %v1007_v32, 0.0  ;;  %v1514_v39 = vmul.f32 0.2, %v1007_v32  ;;  %v2796_v41 = vpack.c.bf16 %v1703_v37, %v1703_v37  ;;  %v1644_v42 = vsel %vm1388_vm15, %v2932_v26, %v1516_v34  ;;  %v1010_v44 = vpop.f32.mrb[47].mxu0 }
 0x144   : > { %2280 = vst.msk [vmem:[%s3266_s20 + $0xa4] sm:$0xf] %vm2238_vm4, %v2732_v33  ;;  %vm1450_vm2 = vcmp.ge.f32.partialorder %v1263_v35, 0.0  ;;  %v1578_v43 = vmul.f32 0.2, %v1263_v35  ;;  %v1266_v45 = vpop.f32.mrb[47].mxu1  ;;  %v2737_v46 = vpack.c.bf16 %v1644_v42, %v1644_v42  ;;  %v1708_v47 = vsel %vm1452_vm0, %v2996_v31, %v1580_v38 }
 0x145   : > { %v1642_v48 = vsel %vm1386_vm1, %v1007_v32, %v1514_v39  ;;  %vm1389_vm3 = vcmp.ge.f32.partialorder %v2933_v36, 0.0  ;;  %2344 = vst.msk [vmem:[%s3266_s20 + $0x1a4] sm:$0xf] %vm2238_vm4, %v2796_v41  ;;  %v2801_v49 = vpack.c.bf16 %v1708_v47, %v1708_v47  ;;  %v1517_v52 = vmul.f32 0.2, %v2933_v36  ;;  %v2936_v58 = vpop.f32.mrb[48].mxu0 }
 0x146   : > { %v2735_v50 = vpack.c.bf16 %v1642_v48, %v1642_v48  ;;  %v1706_v51 = vsel %vm1450_vm2, %v1263_v35, %v1578_v43  ;;  %2285 = vst.msk [vmem:[%s3266_s20 + $0xb8] sm:$0xf] %vm2238_vm4, %v2737_v46  ;;  %vm1453_vm5 = vcmp.ge.f32.partialorder %v2997_v40, 0.0  ;;  %v1581_v54 = vmul.f32 0.2, %v2997_v40  ;;  %v3000_v62 = vpop.f32.mrb[48].mxu1 }
 0x147   : > { %v2799_v53 = vpack.c.bf16 %v1706_v51, %v1706_v51  ;;  %vm1387_vm6 = vcmp.ge.f32.partialorder %v1010_v44, 0.0  ;;  %2349 = vst.msk [vmem:[%s3266_s20 + $0x1b8] sm:$0xf] %vm2238_vm4, %v2801_v49  ;;  %v1645_v55 = vsel %vm1389_vm3, %v2933_v36, %v1517_v52  ;;  %v1515_v56 = vmul.f32 0.2, %v1010_v44  ;;  %v1023_v63 = vpop.f32.mrb[49].mxu0 }
 0x148   : > { %2283 = vst.msk [vmem:[%s3266_s20 + $0xb0] sm:$0xf] %vm2238_vm4, %v2735_v50  ;;  %vm1451_vm7 = vcmp.ge.f32.partialorder %v1266_v45, 0.0  ;;  %v1579_v57 = vmul.f32 0.2, %v1266_v45  ;;  %v2738_v59 = vpack.c.bf16 %v1645_v55, %v1645_v55  ;;  %v1709_v60 = vsel %vm1453_vm5, %v2997_v40, %v1581_v54  ;;  %v1279_v3 = vpop.f32.mrb[49].mxu1 }
 0x149   : > { %2347 = vst.msk [vmem:[%s3266_s20 + $0x1b0] sm:$0xf] %vm2238_vm4, %v2799_v53  ;;  %vm1392_vm8 = vcmp.ge.f32.partialorder %v2936_v58, 0.0  ;;  %v1520_v61 = vmul.f32 0.2, %v2936_v58  ;;  %v2802_v0 = vpack.c.bf16 %v1709_v60, %v1709_v60  ;;  %v1643_v1 = vsel %vm1387_vm6, %v1010_v44, %v1515_v56  ;;  %v2937_v4 = vpop.f32.mrb[50].mxu0 }
 0x14a   : > { %v1707_v2 = vsel %vm1451_vm7, %v1266_v45, %v1579_v57  ;;  %vm1456_vm9 = vcmp.ge.f32.partialorder %v3000_v62, 0.0  ;;  %2286 = vst.msk [vmem:[%s3266_s20 + $0xbc] sm:$0xf] %vm2238_vm4, %v2738_v59  ;;  %v2736_v5 = vpack.c.bf16 %v1643_v1, %v1643_v1  ;;  %v1584_v8 = vmul.f32 0.2, %v3000_v62  ;;  %v3001_v9 = vpop.f32.mrb[50].mxu1 }
 0x14b   : > { %v2800_v6 = vpack.c.bf16 %v1707_v2, %v1707_v2  ;;  %v1648_v7 = vsel %vm1392_vm8, %v2936_v58, %v1520_v61  ;;  %v1026_v10 = vpop.f32.mrb[51].mxu0  ;;  %2350 = vst.msk [vmem:[%s3266_s20 + $0x1bc] sm:$0xf] %vm2238_vm4, %v2802_v0  ;;  %vm1390_vm10 = vcmp.ge.f32.partialorder %v1023_v63, 0.0  ;;  %v1518_v12 = vmul.f32 0.2, %v1023_v63 }
 0x14c   : > { %v2741_v11 = vpack.c.bf16 %v1648_v7, %v1648_v7  ;;  %vm1454_vm11 = vcmp.ge.f32.partialorder %v1279_v3, 0.0  ;;  %v1282_v13 = vpop.f32.mrb[51].mxu1  ;;  %2284 = vst.msk [vmem:[%s3266_s20 + $0xb4] sm:$0xf] %vm2238_vm4, %v2736_v5  ;;  %v1712_v14 = vsel %vm1456_vm9, %v3000_v62, %v1584_v8  ;;  %v1582_v15 = vmul.f32 0.2, %v1279_v3 }
 0x14d   : > { %2348 = vst.msk [vmem:[%s3266_s20 + $0x1b4] sm:$0xf] %vm2238_vm4, %v2800_v6  ;;  %vm1393_vm12 = vcmp.ge.f32.partialorder %v2937_v4, 0.0  ;;  %v1521_v16 = vmul.f32 0.2, %v2937_v4  ;;  %v2805_v17 = vpack.c.bf16 %v1712_v14, %v1712_v14  ;;  %v1646_v18 = vsel %vm1390_vm10, %v1023_v63, %v1518_v12  ;;  %v2940_v27 = vpop.f32.mrb[52].mxu0 }
 0x14e   : > { %2289 = vst.msk [vmem:[%s3266_s20 + $0xc8] sm:$0xf] %vm2238_vm4, %v2741_v11  ;;  %vm1457_vm13 = vcmp.ge.f32.partialorder %v3001_v9, 0.0  ;;  %v1585_v19 = vmul.f32 0.2, %v3001_v9  ;;  %v2739_v20 = vpack.c.bf16 %v1646_v18, %v1646_v18  ;;  %v1710_v21 = vsel %vm1454_vm11, %v1279_v3, %v1582_v15  ;;  %v3004_v30 = vpop.f32.mrb[52].mxu1 }
 0x14f   : > { %v1649_v22 = vsel %vm1393_vm12, %v2937_v4, %v1521_v16  ;;  %vm1391_vm14 = vcmp.ge.f32.partialorder %v1026_v10, 0.0  ;;  %2353 = vst.msk [vmem:[%s3266_s20 + $0x1c8] sm:$0xf] %vm2238_vm4, %v2805_v17  ;;  %v2803_v23 = vpack.c.bf16 %v1710_v21, %v1710_v21  ;;  %v1519_v26 = vmul.f32 0.2, %v1026_v10  ;;  %v1039_v31 = vpop.f32.mrb[53].mxu0 }
 0x150   : > { %v2742_v24 = vpack.c.bf16 %v1649_v22, %v1649_v22  ;;  %v1713_v25 = vsel %vm1457_vm13, %v3001_v9, %v1585_v19  ;;  %2287 = vst.msk [vmem:[%s3266_s20 + $0xc0] sm:$0xf] %vm2238_vm4, %v2739_v20  ;;  %vm1455_vm15 = vcmp.ge.f32.partialorder %v1282_v13, 0.0  ;;  %v1583_v29 = vmul.f32 0.2, %v1282_v13  ;;  %v1295_v35 = vpop.f32.mrb[53].mxu1 }
 0x151   : > { %v2806_v28 = vpack.c.bf16 %v1713_v25, %v1713_v25  ;;  %vm1396_vm0 = vcmp.ge.f32.partialorder %v2940_v27, 0.0  ;;  %2351 = vst.msk [vmem:[%s3266_s20 + $0x1c0] sm:$0xf] %vm2238_vm4, %v2803_v23  ;;  %v1647_v32 = vsel %vm1391_vm14, %v1026_v10, %v1519_v26  ;;  %v1524_v33 = vmul.f32 0.2, %v2940_v27  ;;  %v2941_v39 = vpop.f32.mrb[54].mxu0 }
 0x152   : > { %2290 = vst.msk [vmem:[%s3266_s20 + $0xcc] sm:$0xf] %vm2238_vm4, %v2742_v24  ;;  %vm1460_vm1 = vcmp.ge.f32.partialorder %v3004_v30, 0.0  ;;  %v1588_v34 = vmul.f32 0.2, %v3004_v30  ;;  %v2740_v36 = vpack.c.bf16 %v1647_v32, %v1647_v32  ;;  %v1711_v37 = vsel %vm1455_vm15, %v1282_v13, %v1583_v29  ;;  %v3005_v40 = vpop.f32.mrb[54].mxu1 }
 0x153   : > { %2354 = vst.msk [vmem:[%s3266_s20 + $0x1cc] sm:$0xf] %vm2238_vm4, %v2806_v28  ;;  %vm1394_vm2 = vcmp.ge.f32.partialorder %v1039_v31, 0.0  ;;  %v1522_v38 = vmul.f32 0.2, %v1039_v31  ;;  %v2804_v41 = vpack.c.bf16 %v1711_v37, %v1711_v37  ;;  %v1652_v42 = vsel %vm1396_vm0, %v2940_v27, %v1524_v33  ;;  %v1042_v44 = vpop.f32.mrb[55].mxu0 }
 0x154   : > { %v1716_v43 = vsel %vm1460_vm1, %v3004_v30, %v1588_v34  ;;  %vm1458_vm3 = vcmp.ge.f32.partialorder %v1295_v35, 0.0  ;;  %v1298_v45 = vpop.f32.mrb[55].mxu1  ;;  %2288 = vst.msk [vmem:[%s3266_s20 + $0xc4] sm:$0xf] %vm2238_vm4, %v2740_v36  ;;  %v2745_v46 = vpack.c.bf16 %v1652_v42, %v1652_v42  ;;  %v1586_v49 = vmul.f32 0.2, %v1295_v35 }
 0x155   : > { %v2809_v47 = vpack.c.bf16 %v1716_v43, %v1716_v43  ;;  %v1650_v48 = vsel %vm1394_vm2, %v1039_v31, %v1522_v38  ;;  %2352 = vst.msk [vmem:[%s3266_s20 + $0x1c4] sm:$0xf] %vm2238_vm4, %v2804_v41  ;;  %vm1397_vm5 = vcmp.ge.f32.partialorder %v2941_v39, 0.0  ;;  %v1525_v51 = vmul.f32 0.2, %v2941_v39  ;;  %v2944_v58 = vpop.f32.mrb[56].mxu0 }
 0x156   : > { %v2743_v50 = vpack.c.bf16 %v1650_v48, %v1650_v48  ;;  %vm1461_vm6 = vcmp.ge.f32.partialorder %v3005_v40, 0.0  ;;  %2293 = vst.msk [vmem:[%s3266_s20 + $0xd8] sm:$0xf] %vm2238_vm4, %v2745_v46  ;;  %v1714_v52 = vsel %vm1458_vm3, %v1295_v35, %v1586_v49  ;;  %v1589_v53 = vmul.f32 0.2, %v3005_v40  ;;  %v3008_v62 = vpop.f32.mrb[56].mxu1 }
 0x157   : > { %2357 = vst.msk [vmem:[%s3266_s20 + $0x1d8] sm:$0xf] %vm2238_vm4, %v2809_v47  ;;  %vm1395_vm7 = vcmp.ge.f32.partialorder %v1042_v44, 0.0  ;;  %v1523_v54 = vmul.f32 0.2, %v1042_v44  ;;  %v2807_v55 = vpack.c.bf16 %v1714_v52, %v1714_v52  ;;  %v1653_v56 = vsel %vm1397_vm5, %v2941_v39, %v1525_v51  ;;  %v1055_v63 = vpop.f32.mrb[57].mxu0 }
 0x158   : > { %2291 = vst.msk [vmem:[%s3266_s20 + $0xd0] sm:$0xf] %vm2238_vm4, %v2743_v50  ;;  %vm1459_vm8 = vcmp.ge.f32.partialorder %v1298_v45, 0.0  ;;  %v1587_v57 = vmul.f32 0.2, %v1298_v45  ;;  %v2746_v59 = vpack.c.bf16 %v1653_v56, %v1653_v56  ;;  %v1717_v60 = vsel %vm1461_vm6, %v3005_v40, %v1589_v53  ;;  %v1311_v4 = vpop.f32.mrb[57].mxu1 }
 0x159   : > { %v1651_v61 = vsel %vm1395_vm7, %v1042_v44, %v1523_v54  ;;  %vm1400_vm9 = vcmp.ge.f32.partialorder %v2944_v58, 0.0  ;;  %2355 = vst.msk [vmem:[%s3266_s20 + $0x1d0] sm:$0xf] %vm2238_vm4, %v2807_v55  ;;  %v2810_v0 = vpack.c.bf16 %v1717_v60, %v1717_v60  ;;  %v1528_v3 = vmul.f32 0.2, %v2944_v58  ;;  %v2945_v5 = vpop.f32.mrb[58].mxu0 }
 0x15a   : > { %v2744_v1 = vpack.c.bf16 %v1651_v61, %v1651_v61  ;;  %v1715_v2 = vsel %vm1459_vm8, %v1298_v45, %v1587_v57  ;;  %2294 = vst.msk [vmem:[%s3266_s20 + $0xdc] sm:$0xf] %vm2238_vm4, %v2746_v59  ;;  %vm1464_vm10 = vcmp.ge.f32.partialorder %v3008_v62, 0.0  ;;  %v1592_v7 = vmul.f32 0.2, %v3008_v62  ;;  %v3009_v8 = vpop.f32.mrb[58].mxu1 }
 0x15b   : > { %v2808_v6 = vpack.c.bf16 %v1715_v2, %v1715_v2  ;;  %vm1398_vm11 = vcmp.ge.f32.partialorder %v1055_v63, 0.0  ;;  %v1058_v9 = vpop.f32.mrb[59].mxu0  ;;  %2358 = vst.msk [vmem:[%s3266_s20 + $0x1dc] sm:$0xf] %vm2238_vm4, %v2810_v0  ;;  %v1656_v10 = vsel %vm1400_vm9, %v2944_v58, %v1528_v3  ;;  %v1526_v11 = vmul.f32 0.2, %v1055_v63 }
 0x15c   : > { %2292 = vst.msk [vmem:[%s3266_s20 + $0xd4] sm:$0xf] %vm2238_vm4, %v2744_v1  ;;  %vm1462_vm12 = vcmp.ge.f32.partialorder %v1311_v4, 0.0  ;;  %v1590_v12 = vmul.f32 0.2, %v1311_v4  ;;  %v1314_v13 = vpop.f32.mrb[59].mxu1  ;;  %v2749_v14 = vpack.c.bf16 %v1656_v10, %v1656_v10  ;;  %v1720_v15 = vsel %vm1464_vm10, %v3008_v62, %v1592_v7 }
 0x15d   : > { %2356 = vst.msk [vmem:[%s3266_s20 + $0x1d4] sm:$0xf] %vm2238_vm4, %v2808_v6  ;;  %vm1401_vm13 = vcmp.ge.f32.partialorder %v2945_v5, 0.0  ;;  %v1529_v16 = vmul.f32 0.2, %v2945_v5  ;;  %v2813_v17 = vpack.c.bf16 %v1720_v15, %v1720_v15  ;;  %v1654_v18 = vsel %vm1398_vm11, %v1055_v63, %v1526_v11  ;;  %v2948_v26 = vpop.f32.mrb[60].mxu0 }
 0x15e   : > { %v1718_v19 = vsel %vm1462_vm12, %v1311_v4, %v1590_v12  ;;  %vm1465_vm14 = vcmp.ge.f32.partialorder %v3009_v8, 0.0  ;;  %2297 = vst.msk [vmem:[%s3266_s20 + $0xe8] sm:$0xf] %vm2238_vm4, %v2749_v14  ;;  %v2747_v20 = vpack.c.bf16 %v1654_v18, %v1654_v18  ;;  %v1593_v23 = vmul.f32 0.2, %v3009_v8  ;;  %v3012_v30 = vpop.f32.mrb[60].mxu1 }
 0x15f   : > { %v2811_v21 = vpack.c.bf16 %v1718_v19, %v1718_v19  ;;  %v1657_v22 = vsel %vm1401_vm13, %v2945_v5, %v1529_v16  ;;  %2361 = vst.msk [vmem:[%s3266_s20 + $0x1e8] sm:$0xf] %vm2238_vm4, %v2813_v17  ;;  %vm1399_vm15 = vcmp.ge.f32.partialorder %v1058_v9, 0.0  ;;  %v1527_v25 = vmul.f32 0.2, %v1058_v9  ;;  %v1071_v34 = vpop.f32.mrb[61].mxu0 }
 0x160   : > { %v2750_v24 = vpack.c.bf16 %v1657_v22, %v1657_v22  ;;  %vm1463_vm0 = vcmp.ge.f32.partialorder %v1314_v13, 0.0  ;;  %2295 = vst.msk [vmem:[%s3266_s20 + $0xe0] sm:$0xf] %vm2238_vm4, %v2747_v20  ;;  %v1721_v27 = vsel %vm1465_vm14, %v3009_v8, %v1593_v23  ;;  %v1591_v28 = vmul.f32 0.2, %v1314_v13  ;;  %v1327_v35 = vpop.f32.mrb[61].mxu1 }
 0x161   : > { %2359 = vst.msk [vmem:[%s3266_s20 + $0x1e0] sm:$0xf] %vm2238_vm4, %v2811_v21  ;;  %vm1404_vm1 = vcmp.ge.f32.partialorder %v2948_v26, 0.0  ;;  %v1532_v29 = vmul.f32 0.2, %v2948_v26  ;;  %v2814_v31 = vpack.c.bf16 %v1721_v27, %v1721_v27  ;;  %v1655_v32 = vsel %vm1399_vm15, %v1058_v9, %v1527_v25  ;;  %v2949_v39 = vpop.f32.mrb[62].mxu0 }
 0x162   : > { %2298 = vst.msk [vmem:[%s3266_s20 + $0xec] sm:$0xf] %vm2238_vm4, %v2750_v24  ;;  %vm1468_vm2 = vcmp.ge.f32.partialorder %v3012_v30, 0.0  ;;  %v1596_v33 = vmul.f32 0.2, %v3012_v30  ;;  %v2748_v36 = vpack.c.bf16 %v1655_v32, %v1655_v32  ;;  %v1719_v37 = vsel %vm1463_vm0, %v1314_v13, %v1591_v28  ;;  %v3013_v40 = vpop.f32.mrb[62].mxu1 }
 0x163   : > { %v1660_v38 = vsel %vm1404_vm1, %v2948_v26, %v1532_v29  ;;  %vm1402_vm3 = vcmp.ge.f32.partialorder %v1071_v34, 0.0  ;;  %2362 = vst.msk [vmem:[%s3266_s20 + $0x1ec] sm:$0xf] %vm2238_vm4, %v2814_v31  ;;  %v2812_v41 = vpack.c.bf16 %v1719_v37, %v1719_v37  ;;  %v1530_v44 = vmul.f32 0.2, %v1071_v34  ;;  %v1074_v45 = vpop.f32.mrb[63].mxu0 }
 0x164   : > { %v2753_v42 = vpack.c.bf16 %v1660_v38, %v1660_v38  ;;  %v1724_v43 = vsel %vm1468_vm2, %v3012_v30, %v1596_v33  ;;  %v1330_v46 = vpop.f32.mrb[63].mxu1  ;;  %2296 = vst.msk [vmem:[%s3266_s20 + $0xe4] sm:$0xf] %vm2238_vm4, %v2748_v36  ;;  %vm1466_vm5 = vcmp.ge.f32.partialorder %v1327_v35, 0.0  ;;  %v1594_v48 = vmul.f32 0.2, %v1327_v35 }
 0x165   : > { %v2817_v47 = vpack.c.bf16 %v1724_v43, %v1724_v43  ;;  %vm1405_vm6 = vcmp.ge.f32.partialorder %v2949_v39, 0.0  ;;  %2360 = vst.msk [vmem:[%s3266_s20 + $0x1e4] sm:$0xf] %vm2238_vm4, %v2812_v41  ;;  %v1658_v49 = vsel %vm1402_vm3, %v1071_v34, %v1530_v44  ;;  %v1533_v50 = vmul.f32 0.2, %v2949_v39 }
 0x166   : > { %2301 = vst.msk [vmem:[%s3266_s20 + $0xf8] sm:$0xf] %vm2238_vm4, %v2753_v42  ;;  %vm1469_vm7 = vcmp.ge.f32.partialorder %v3013_v40, 0.0  ;;  %v1597_v51 = vmul.f32 0.2, %v3013_v40  ;;  %v2751_v52 = vpack.c.bf16 %v1658_v49, %v1658_v49  ;;  %v1722_v53 = vsel %vm1466_vm5, %v1327_v35, %v1594_v48 }
 0x167   : > { %2365 = vst.msk [vmem:[%s3266_s20 + $0x1f8] sm:$0xf] %vm2238_vm4, %v2817_v47  ;;  %vm1403_vm8 = vcmp.ge.f32.partialorder %v1074_v45, 0.0  ;;  %v1531_v54 = vmul.f32 0.2, %v1074_v45  ;;  %v2815_v55 = vpack.c.bf16 %v1722_v53, %v1722_v53  ;;  %v1661_v56 = vsel %vm1405_vm6, %v2949_v39, %v1533_v50 }
 0x168   : > { %v1725_v57 = vsel %vm1469_vm7, %v3013_v40, %v1597_v51  ;;  %vm1467_vm9 = vcmp.ge.f32.partialorder %v1330_v46, 0.0  ;;  %2299 = vst.msk [vmem:[%s3266_s20 + $0xf0] sm:$0xf] %vm2238_vm4, %v2751_v52  ;;  %v2754_v58 = vpack.c.bf16 %v1661_v56, %v1661_v56  ;;  %v1595_v61 = vmul.f32 0.2, %v1330_v46 }
 0x169   : > { %v2818_v59 = vpack.c.bf16 %v1725_v57, %v1725_v57  ;;  %v1659_v60 = vsel %vm1403_vm8, %v1074_v45, %v1531_v54  ;;  %2363 = vst.msk [vmem:[%s3266_s20 + $0x1f0] sm:$0xf] %vm2238_vm4, %v2815_v55 }
 0x16a   : > { %v2752_v62 = vpack.c.bf16 %v1659_v60, %v1659_v60  ;;  %2302 = vst.msk [vmem:[%s3266_s20 + $0xfc] sm:$0xf] %vm2238_vm4, %v2754_v58  ;;  %v1723_v63 = vsel %vm1467_vm9, %v1330_v46, %v1595_v61 }
 0x16b   : > { %2366 = vst.msk [vmem:[%s3266_s20 + $0x1fc] sm:$0xf] %vm2238_vm4, %v2818_v59  ;;  %v2816_v0 = vpack.c.bf16 %v1723_v63, %v1723_v63 }
 0x16c   : > { %2300 = vst.msk [vmem:[%s3266_s20 + $0xf4] sm:$0xf] %vm2238_vm4, %v2752_v62 }
 0x16d   : > { %2364 = vst.msk [vmem:[%s3266_s20 + $0x1f4] sm:$0xf] %vm2238_vm4, %v2816_v0 }
 0x16e PF: > { %s12_s9 = sadd.s32 1, %s3095_s9  }
 0x16f   : > { %p9_p4 = scmp.ge.s32.totalorder %s12_s9, 4  }
 0x171   :  { %11 = sbr.rel (!%p9_p4) target bundleno = 1 (0x1), region = 58 }

// kernel: discriminator_forward.9
= control target key start
LH: loop header
LB: loop body
LE: loop exit
PB: predicated region body
PF: predicated region fallthrough
CT: control target
= control target key end

     0   :  { %vm1214_vm0 = vcmask 125952   ;;  %vm624_vm1 = vcmask 130048   ;;  %vm758_vm2 = vcmask 122880   ;;  %s2394_s1 = inlined_call_operand.vmem [shape: bf16[128,16], index: 1, kind: input, shape index: {}]   ;;  %s2395_s0 = inlined_call_operand.vmem [shape: bf16[512,128], index: 0, kind: input, shape index: {}]   ;;  %s2396_s2 = inlined_call_operand.vmem [shape: bf16[512,16], index: 2, kind: output, shape index: {0}]   ;;  %s2397_s3 = inlined_call_operand.vmem [shape: f32[1,1,16], index: 3, kind: output, shape index: {1}]   ;;  %s2398_s4 = inlined_call_operand.vmem [shape: f32[1,1,16], index: 4, kind: output, shape index: {2}]  }
   0x1   :  { %v1595_v0 = vld [vmem:[%s2394_s1] sm:$0xff]   ;;  %v1596_v1 = vld [vmem:[%s2394_s1 + $0x8] sm:$0xff]   ;;  %v1597_v2 = vld [vmem:[%s2394_s1 + $0x10] sm:$0xff]  }
   0x2   :  { %1499 = vmatprep.subr.bf16.mxu0 %v1595_v0  ;;  %1579 = vmatprep.subr.bf16.mxu1 %v1595_v0  ;;  %v1598_v3 = vld [vmem:[%s2394_s1 + $0x18] sm:$0xff]   ;;  %v1603_v4 = vld [vmem:[%s2395_s0] sm:$0xff]   ;;  %v1600_v6 = vld [vmem:[%s2394_s1 + $0x28] sm:$0xff]  }
   0x3   :  { %1500 = vmatpush3.bf16.msra.mxu0 %v1595_v0  ;;  %1587 = vmatpush3.bf16.msra.mxu1 %v1595_v0  ;;  %v1599_v5 = vld [vmem:[%s2394_s1 + $0x20] sm:$0xff]   ;;  %v1601_v7 = vld [vmem:[%s2394_s1 + $0x30] sm:$0xff]   ;;  %v1602_v8 = vld [vmem:[%s2394_s1 + $0x38] sm:$0xff]  }
   0x4   :  { %1501 = vmatprep.subr.bf16.mxu0 %v1596_v1  ;;  %1580 = vmatprep.subr.bf16.mxu1 %v1596_v1  ;;  %v1619_v9 = vld [vmem:[%s2395_s0 + $0x80] sm:$0xff]   ;;  %v1604_v10 = vld [vmem:[%s2395_s0 + $0x8] sm:$0xff]   ;;  %v1605_v11 = vld [vmem:[%s2395_s0 + $0x10] sm:$0xff]  }
   0x5   :  { %1515 = vmatprep.mubr.bf16.mxu0 %v1603_v4  ;;  %1547 = vmatprep.mubr.bf16.mxu1 %v1619_v9  ;;  %v1620_v12 = vld [vmem:[%s2395_s0 + $0x88] sm:$0xff]   ;;  %v1621_v13 = vld [vmem:[%s2395_s0 + $0x90] sm:$0xff]   ;;  %v1606_v14 = vld [vmem:[%s2395_s0 + $0x18] sm:$0xff]  }
   0x6   :  { %v1607_v15 = vld [vmem:[%s2395_s0 + $0x20] sm:$0xff]   ;;  %v1622_v16 = vld [vmem:[%s2395_s0 + $0x98] sm:$0xff]   ;;  %v1608_v18 = vld [vmem:[%s2395_s0 + $0x28] sm:$0xff]  }
   0x7   :  { %1502 = vmatpush3.bf16.msra.mxu0 %v1596_v1  ;;  %1588 = vmatpush3.bf16.msra.mxu1 %v1596_v1  ;;  %v1623_v17 = vld [vmem:[%s2395_s0 + $0xa0] sm:$0xff]   ;;  %v1624_v19 = vld [vmem:[%s2395_s0 + $0xa8] sm:$0xff]   ;;  %v1609_v20 = vld [vmem:[%s2395_s0 + $0x30] sm:$0xff]  }
   0x8   :  { %1503 = vmatprep.subr.bf16.mxu0 %v1597_v2  ;;  %1581 = vmatprep.subr.bf16.mxu1 %v1597_v2  ;;  %v1625_v21 = vld [vmem:[%s2395_s0 + $0xb0] sm:$0xff]   ;;  %v1610_v22 = vld [vmem:[%s2395_s0 + $0x38] sm:$0xff]   ;;  %v1611_v24 = vld [vmem:[%s2395_s0 + $0x40] sm:$0xff]  }
   0x9   :  { %v1626_v23 = vld [vmem:[%s2395_s0 + $0xb8] sm:$0xff]   ;;  %v1627_v25 = vld [vmem:[%s2395_s0 + $0xc0] sm:$0xff]   ;;  %v1612_v26 = vld [vmem:[%s2395_s0 + $0x48] sm:$0xff]  }
   0xa   :  { %v1628_v27 = vld [vmem:[%s2395_s0 + $0xc8] sm:$0xff]   ;;  %v1613_v28 = vld [vmem:[%s2395_s0 + $0x50] sm:$0xff]   ;;  %v1614_v30 = vld [vmem:[%s2395_s0 + $0x58] sm:$0xff]  }
   0xb   :  { %1504 = vmatpush3.bf16.msra.mxu0 %v1597_v2  ;;  %1589 = vmatpush3.bf16.msra.mxu1 %v1597_v2  ;;  %v1629_v29 = vld [vmem:[%s2395_s0 + $0xd0] sm:$0xff]   ;;  %v1630_v31 = vld [vmem:[%s2395_s0 + $0xd8] sm:$0xff]   ;;  %v1615_v32 = vld [vmem:[%s2395_s0 + $0x60] sm:$0xff]  }
   0xc   :  { %1505 = vmatprep.subr.bf16.mxu0 %v1598_v3  ;;  %1582 = vmatprep.subr.bf16.mxu1 %v1598_v3  ;;  %v1631_v33 = vld [vmem:[%s2395_s0 + $0xe0] sm:$0xff]   ;;  %v1616_v34 = vld [vmem:[%s2395_s0 + $0x68] sm:$0xff]   ;;  %v1617_v36 = vld [vmem:[%s2395_s0 + $0x70] sm:$0xff]  }
   0xd   :  { %v1632_v35 = vld [vmem:[%s2395_s0 + $0xe8] sm:$0xff]   ;;  %v1633_v37 = vld [vmem:[%s2395_s0 + $0xf0] sm:$0xff]   ;;  %v1618_v38 = vld [vmem:[%s2395_s0 + $0x78] sm:$0xff]  }
   0xe   :  { %v1634_v39 = vld [vmem:[%s2395_s0 + $0xf8] sm:$0xff]  }
   0xf   :  { %1506 = vmatpush3.bf16.msra.mxu0 %v1598_v3  ;;  %1590 = vmatpush3.bf16.msra.mxu1 %v1598_v3 }
  0x10   :  { %1507 = vmatprep.subr.bf16.mxu0 %v1599_v5  ;;  %1583 = vmatprep.subr.bf16.mxu1 %v1599_v5 }
  0x13   :  { %1508 = vmatpush3.bf16.msra.mxu0 %v1599_v5  ;;  %1591 = vmatpush3.bf16.msra.mxu1 %v1599_v5 }
  0x14   :  { %1509 = vmatprep.subr.bf16.mxu0 %v1600_v6  ;;  %1584 = vmatprep.subr.bf16.mxu1 %v1600_v6 }
  0x17   :  { %1510 = vmatpush3.bf16.msra.mxu0 %v1600_v6  ;;  %1592 = vmatpush3.bf16.msra.mxu1 %v1600_v6 }
  0x18   :  { %1511 = vmatprep.subr.bf16.mxu0 %v1601_v7  ;;  %1585 = vmatprep.subr.bf16.mxu1 %v1601_v7 }
  0x1b   :  { %1512 = vmatpush3.bf16.msra.mxu0 %v1601_v7  ;;  %1593 = vmatpush3.bf16.msra.mxu1 %v1601_v7 }
  0x1c   :  { %1513 = vmatprep.subr.bf16.mxu0 %v1602_v8  ;;  %1586 = vmatprep.subr.bf16.mxu1 %v1602_v8 }
  0x1f   :  { %1514 = vmatpush3.bf16.msra.mxu0 %v1602_v8  ;;  %1594 = vmatpush3.bf16.msra.mxu1 %v1602_v8 }
  0x22   :  { %1516 = vmatmul.mubr.bf16.vlgmr.msra.gmra.mrb[0].mxu0 %v1604_v10  ;;  %1548 = vmatmul.mubr.bf16.vlgmr.msra.gmra.mrb[0].mxu1 %v1620_v12 }
  0x23   :  { %1519 = vmatprep.mubr.bf16.mxu0 %v1605_v11  ;;  %1551 = vmatprep.mubr.bf16.mxu1 %v1621_v13 }
  0x2a   :  { %1520 = vmatmul.mubr.bf16.gmra.mrb[4].mxu0 %v1606_v14  ;;  %1552 = vmatmul.mubr.bf16.gmra.mrb[4].mxu1 %v1622_v16 }
  0x2b   :  { %1523 = vmatprep.mubr.bf16.mxu0 %v1607_v15  ;;  %1555 = vmatprep.mubr.bf16.mxu1 %v1623_v17 }
  0x32   :  { %1524 = vmatmul.mubr.bf16.gmra.mrb[8].mxu0 %v1608_v18  ;;  %1556 = vmatmul.mubr.bf16.gmra.mrb[8].mxu1 %v1624_v19 }
  0x33   :  { %1527 = vmatprep.mubr.bf16.mxu0 %v1609_v20  ;;  %1559 = vmatprep.mubr.bf16.mxu1 %v1625_v21 }
  0x3a   :  { %1528 = vmatmul.mubr.bf16.gmra.mrb[12].mxu0 %v1610_v22  ;;  %1560 = vmatmul.mubr.bf16.gmra.mrb[12].mxu1 %v1626_v23 }
  0x3b   :  { %1531 = vmatprep.mubr.bf16.mxu0 %v1611_v24  ;;  %1563 = vmatprep.mubr.bf16.mxu1 %v1627_v25 }
  0x42   :  { %1532 = vmatmul.mubr.bf16.gmra.mrb[16].mxu0 %v1612_v26  ;;  %1564 = vmatmul.mubr.bf16.gmra.mrb[16].mxu1 %v1628_v27 }
  0x43   :  { %1535 = vmatprep.mubr.bf16.mxu0 %v1613_v28  ;;  %1567 = vmatprep.mubr.bf16.mxu1 %v1629_v29 }
  0x4a   :  { %1536 = vmatmul.mubr.bf16.gmra.mrb[20].mxu0 %v1614_v30  ;;  %1568 = vmatmul.mubr.bf16.gmra.mrb[20].mxu1 %v1630_v31 }
  0x4b   :  { %1539 = vmatprep.mubr.bf16.mxu0 %v1615_v32  ;;  %1571 = vmatprep.mubr.bf16.mxu1 %v1631_v33 }
  0x52   :  { %1540 = vmatmul.mubr.bf16.gmra.mrb[24].mxu0 %v1616_v34  ;;  %1572 = vmatmul.mubr.bf16.gmra.mrb[24].mxu1 %v1632_v35 }
  0x53   :  { %1543 = vmatprep.mubr.bf16.mxu0 %v1617_v36  ;;  %1575 = vmatprep.mubr.bf16.mxu1 %v1633_v37 }
  0x5a   :  { %1544 = vmatmul.mubr.bf16.gmra.mrb[28].mxu0 %v1618_v38  ;;  %1576 = vmatmul.mubr.bf16.gmra.mrb[28].mxu1 %v1634_v39 }
  0xf5   :  { %v1517_v40 = vpop.f32.mrb[0].mxu0  ;;  %v1780_v41 = vpop.f32.mrb[0].mxu1 }
  0xf6   :  { %v1397_v42 = vpack.c.bf16 %v1517_v40, %v1517_v40  ;;  %v369_v43 = vpop.f32.mrb[1].mxu0  ;;  %v1782_v44 = vpop.f32.mrb[1].mxu1  ;;  %v762_v49 = vmul.f32 %v1517_v40, %v1517_v40  ;;  %v1429_v59 = vpack.c.bf16 %v1780_v41, %v1780_v41  ;;  %v628_v60 = vsel %vm624_vm1, %v1517_v40, 0.0 }
  0xf7   :  { %v760_v45 = vmul.f32 %v369_v43, %v369_v43  ;;  %v1395_v46 = vpack.c.bf16 %v369_v43, %v369_v43  ;;  %v1518_v47 = vpop.f32.mrb[2].mxu0  ;;  %v1784_v48 = vpop.f32.mrb[2].mxu1  ;;  %v625_v53 = vsel %vm624_vm1, %v369_v43, 0.0  ;;  %v1427_v63 = vpack.c.bf16 %v1782_v44, %v1782_v44 }
  0xf8   :  { %1217 = vst.msk [vmem:[%s2396_s2 + $0x8] sm:$0xf] %vm1214_vm0, %v1397_v42  ;;  %v1398_v50 = vpack.c.bf16 %v1518_v47, %v1518_v47  ;;  %v372_v51 = vpop.f32.mrb[3].mxu0  ;;  %v1790_v52 = vpop.f32.mrb[3].mxu1  ;;  %v763_v57 = vmul.f32 %v1518_v47, %v1518_v47  ;;  %1249 = vst.msk [vmem:[%s2396_s2 + $0x88] sm:$0xf] %vm1214_vm0, %v1429_v59  ;;  %v1430_v4 = vpack.c.bf16 %v1784_v48, %v1784_v48 }
  0xf9   :  { %1215 = vst.msk [vmem:[%s2396_s2] sm:$0xf] %vm1214_vm0, %v1395_v46  ;;  %v626_v54 = vsel %vm624_vm1, %v372_v51, 0.0  ;;  %v761_v55 = vmul.f32 %v372_v51, %v372_v51  ;;  %v1396_v56 = vpack.c.bf16 %v372_v51, %v372_v51  ;;  %v824_v61 = vsel %vm624_vm1, %v760_v45, 0.0  ;;  %1247 = vst.msk [vmem:[%s2396_s2 + $0x80] sm:$0xf] %vm1214_vm0, %v1427_v63 }
  0xfa   :  { %1218 = vst.msk [vmem:[%s2396_s2 + $0xc] sm:$0xf] %vm1214_vm0, %v1398_v50  ;;  %v627_v58 = vadd.f32 %v626_v54, %v625_v53  ;;  %v827_v2 = vsel %vm624_vm1, %v762_v49, 0.0  ;;  %v630_v6 = vsel %vm624_vm1, %v1518_v47, 0.0  ;;  %v829_v7 = vsel %vm624_vm1, %v763_v57, 0.0 }
  0xfb   :  { %v825_v62 = vsel %vm624_vm1, %v761_v55, 0.0  ;;  %1216 = vst.msk [vmem:[%s2396_s2 + $0x4] sm:$0xf] %vm1214_vm0, %v1396_v56  ;;  %1250 = vst.msk [vmem:[%s2396_s2 + $0x8c] sm:$0xf] %vm1214_vm0, %v1430_v4  ;;  %v1428_v30 = vpack.c.bf16 %v1790_v52, %v1790_v52 }
  0xfc   :  { %v629_v0 = vadd.f32 %v628_v60, %v627_v58  ;;  %v826_v1 = vadd.f32 %v825_v62, %v824_v61 }
  0xfd   :  { %v1521_v3 = vpop.f32.mrb[4].mxu0  ;;  %v1824_v5 = vpop.f32.mrb[4].mxu1  ;;  %1248 = vst.msk [vmem:[%s2396_s2 + $0x84] sm:$0xf] %vm1214_vm0, %v1428_v30 }
  0xfe   :  { %v828_v8 = vadd.f32 %v827_v2, %v826_v1  ;;  %v1401_v9 = vpack.c.bf16 %v1521_v3, %v1521_v3  ;;  %v385_v10 = vpop.f32.mrb[5].mxu0  ;;  %v1828_v11 = vpop.f32.mrb[5].mxu1  ;;  %v631_v12 = vadd.f32 %v630_v6, %v629_v0  ;;  %v766_v25 = vmul.f32 %v1521_v3, %v1521_v3 }
  0xff   :  { %v632_v13 = vsel %vm624_vm1, %v385_v10, 0.0  ;;  %v764_v14 = vmul.f32 %v385_v10, %v385_v10  ;;  %v1399_v15 = vpack.c.bf16 %v385_v10, %v385_v10  ;;  %v1522_v16 = vpop.f32.mrb[6].mxu0  ;;  %v1835_v17 = vpop.f32.mrb[6].mxu1  ;;  %v636_v31 = vsel %vm624_vm1, %v1521_v3, 0.0 }
 0x100   :  { %1221 = vst.msk [vmem:[%s2396_s2 + $0x18] sm:$0xf] %vm1214_vm0, %v1401_v9  ;;  %v830_v18 = vadd.f32 %v829_v7, %v828_v8  ;;  %v388_v19 = vpop.f32.mrb[7].mxu0  ;;  %v1841_v20 = vpop.f32.mrb[7].mxu1  ;;  %v633_v21 = vadd.f32 %v632_v13, %v631_v12  ;;  %v1402_v23 = vpack.c.bf16 %v1522_v16, %v1522_v16  ;;  %v767_v32 = vmul.f32 %v1522_v16, %v1522_v16 }
 0x101   :  { %v831_v22 = vsel %vm624_vm1, %v764_v14, 0.0  ;;  %1219 = vst.msk [vmem:[%s2396_s2 + $0x10] sm:$0xf] %vm1214_vm0, %v1399_v15  ;;  %v634_v24 = vsel %vm624_vm1, %v388_v19, 0.0  ;;  %v765_v27 = vmul.f32 %v388_v19, %v388_v19  ;;  %v1400_v28 = vpack.c.bf16 %v388_v19, %v388_v19 }
 0x102   :  { %v832_v26 = vadd.f32 %v831_v22, %v830_v18  ;;  %1222 = vst.msk [vmem:[%s2396_s2 + $0x1c] sm:$0xf] %vm1214_vm0, %v1402_v23  ;;  %v635_v29 = vadd.f32 %v634_v24, %v633_v21  ;;  %v1433_v34 = vpack.c.bf16 %v1824_v5, %v1824_v5  ;;  %v835_v39 = vsel %vm624_vm1, %v766_v25, 0.0 }
 0x103   :  { %v833_v33 = vsel %vm624_vm1, %v765_v27, 0.0  ;;  %1220 = vst.msk [vmem:[%s2396_s2 + $0x14] sm:$0xf] %vm1214_vm0, %v1400_v28  ;;  %v638_v40 = vsel %vm624_vm1, %v1522_v16, 0.0  ;;  %v837_v54 = vsel %vm624_vm1, %v767_v32, 0.0  ;;  %v1431_v4 = vpack.c.bf16 %v1828_v11, %v1828_v11 }
 0x104   :  { %v637_v35 = vadd.f32 %v636_v31, %v635_v29  ;;  %v834_v36 = vadd.f32 %v833_v33, %v832_v26  ;;  %1253 = vst.msk [vmem:[%s2396_s2 + $0x98] sm:$0xf] %vm1214_vm0, %v1433_v34  ;;  %v1434_v9 = vpack.c.bf16 %v1835_v17, %v1835_v17 }
 0x105   :  { %v1525_v37 = vpop.f32.mrb[8].mxu0  ;;  %v1867_v38 = vpop.f32.mrb[8].mxu1  ;;  %1251 = vst.msk [vmem:[%s2396_s2 + $0x90] sm:$0xf] %vm1214_vm0, %v1431_v4 }
 0x106   :  { %v1405_v42 = vpack.c.bf16 %v1525_v37, %v1525_v37  ;;  %v401_v43 = vpop.f32.mrb[9].mxu0  ;;  %v1875_v45 = vpop.f32.mrb[9].mxu1  ;;  %v836_v46 = vadd.f32 %v835_v39, %v834_v36  ;;  %v639_v47 = vadd.f32 %v638_v40, %v637_v35  ;;  %v770_v62 = vmul.f32 %v1525_v37, %v1525_v37  ;;  %1254 = vst.msk [vmem:[%s2396_s2 + $0x9c] sm:$0xf] %vm1214_vm0, %v1434_v9 }
 0x107   :  { %v640_v49 = vsel %vm624_vm1, %v401_v43, 0.0  ;;  %v768_v50 = vmul.f32 %v401_v43, %v401_v43  ;;  %v1526_v51 = vpop.f32.mrb[10].mxu0  ;;  %v1878_v53 = vpop.f32.mrb[10].mxu1  ;;  %v1403_v55 = vpack.c.bf16 %v401_v43, %v401_v43  ;;  %v644_v6 = vsel %vm624_vm1, %v1525_v37, 0.0 }
 0x108   :  { %1225 = vst.msk [vmem:[%s2396_s2 + $0x28] sm:$0xf] %vm1214_vm0, %v1405_v42  ;;  %v404_v56 = vpop.f32.mrb[11].mxu0  ;;  %v1885_v57 = vpop.f32.mrb[11].mxu1  ;;  %v641_v58 = vadd.f32 %v640_v49, %v639_v47  ;;  %v838_v59 = vadd.f32 %v837_v54, %v836_v46  ;;  %v1406_v61 = vpack.c.bf16 %v1526_v51, %v1526_v51  ;;  %v771_v7 = vmul.f32 %v1526_v51, %v1526_v51 }
 0x109   :  { %v839_v60 = vsel %vm624_vm1, %v768_v50, 0.0  ;;  %1223 = vst.msk [vmem:[%s2396_s2 + $0x20] sm:$0xf] %vm1214_vm0, %v1403_v55  ;;  %v642_v63 = vsel %vm624_vm1, %v404_v56, 0.0  ;;  %v769_v0 = vmul.f32 %v404_v56, %v404_v56  ;;  %v1404_v1 = vpack.c.bf16 %v404_v56, %v404_v56 }
 0x10a   :  { %v840_v2 = vadd.f32 %v839_v60, %v838_v59  ;;  %1226 = vst.msk [vmem:[%s2396_s2 + $0x2c] sm:$0xf] %vm1214_vm0, %v1406_v61  ;;  %v643_v3 = vadd.f32 %v642_v63, %v641_v58  ;;  %v843_v15 = vsel %vm624_vm1, %v770_v62, 0.0  ;;  %v646_v16 = vsel %vm624_vm1, %v1526_v51, 0.0 }
 0x10b   :  { %v841_v8 = vsel %vm624_vm1, %v769_v0, 0.0  ;;  %1224 = vst.msk [vmem:[%s2396_s2 + $0x24] sm:$0xf] %vm1214_vm0, %v1404_v1  ;;  %v845_v28 = vsel %vm624_vm1, %v771_v7, 0.0  ;;  %v1432_v46 = vpack.c.bf16 %v1841_v20, %v1841_v20  ;;  %v1437_v51 = vpack.c.bf16 %v1867_v38, %v1867_v38 }
 0x10c   :  { %v645_v10 = vadd.f32 %v644_v6, %v643_v3  ;;  %v842_v12 = vadd.f32 %v841_v8, %v840_v2 }
 0x10d   :  { %v1529_v13 = vpop.f32.mrb[12].mxu0  ;;  %v1911_v14 = vpop.f32.mrb[12].mxu1  ;;  %1252 = vst.msk [vmem:[%s2396_s2 + $0x94] sm:$0xf] %vm1214_vm0, %v1432_v46  ;;  %1257 = vst.msk [vmem:[%s2396_s2 + $0xa8] sm:$0xf] %vm1214_vm0, %v1437_v51 }
 0x10e   :  { %v1409_v18 = vpack.c.bf16 %v1529_v13, %v1529_v13  ;;  %v417_v19 = vpop.f32.mrb[13].mxu0  ;;  %v1919_v21 = vpop.f32.mrb[13].mxu1  ;;  %v844_v22 = vadd.f32 %v843_v15, %v842_v12  ;;  %v647_v23 = vadd.f32 %v646_v16, %v645_v10  ;;  %v774_v36 = vmul.f32 %v1529_v13, %v1529_v13 }
 0x10f   :  { %v648_v24 = vsel %vm624_vm1, %v417_v19, 0.0  ;;  %v772_v25 = vmul.f32 %v417_v19, %v417_v19  ;;  %v1530_v26 = vpop.f32.mrb[14].mxu0  ;;  %v1922_v27 = vpop.f32.mrb[14].mxu1  ;;  %v1407_v29 = vpack.c.bf16 %v417_v19, %v417_v19  ;;  %v652_v47 = vsel %vm624_vm1, %v1529_v13, 0.0 }
 0x110   :  { %1229 = vst.msk [vmem:[%s2396_s2 + $0x38] sm:$0xf] %vm1214_vm0, %v1409_v18  ;;  %v420_v30 = vpop.f32.mrb[15].mxu0  ;;  %v1929_v31 = vpop.f32.mrb[15].mxu1  ;;  %v649_v32 = vadd.f32 %v648_v24, %v647_v23  ;;  %v846_v33 = vadd.f32 %v845_v28, %v844_v22  ;;  %v1410_v35 = vpack.c.bf16 %v1530_v26, %v1530_v26  ;;  %v775_v49 = vmul.f32 %v1530_v26, %v1530_v26 }
 0x111   :  { %v847_v34 = vsel %vm624_vm1, %v772_v25, 0.0  ;;  %1227 = vst.msk [vmem:[%s2396_s2 + $0x30] sm:$0xf] %vm1214_vm0, %v1407_v29  ;;  %v650_v37 = vsel %vm624_vm1, %v420_v30, 0.0  ;;  %v773_v39 = vmul.f32 %v420_v30, %v420_v30  ;;  %v1408_v40 = vpack.c.bf16 %v420_v30, %v420_v30 }
 0x112   :  { %v848_v42 = vadd.f32 %v847_v34, %v846_v33  ;;  %1230 = vst.msk [vmem:[%s2396_s2 + $0x3c] sm:$0xf] %vm1214_vm0, %v1410_v35  ;;  %v651_v43 = vadd.f32 %v650_v37, %v649_v32  ;;  %v851_v59 = vsel %vm624_vm1, %v774_v36, 0.0  ;;  %v654_v60 = vsel %vm624_vm1, %v1530_v26, 0.0 }
 0x113   :  { %v849_v50 = vsel %vm624_vm1, %v773_v39, 0.0  ;;  %1228 = vst.msk [vmem:[%s2396_s2 + $0x34] sm:$0xf] %vm1214_vm0, %v1408_v40  ;;  %v853_v7 = vsel %vm624_vm1, %v775_v49, 0.0  ;;  %v1435_v26 = vpack.c.bf16 %v1875_v45, %v1875_v45  ;;  %v1438_v32 = vpack.c.bf16 %v1878_v53, %v1878_v53 }
 0x114   :  { %v653_v54 = vadd.f32 %v652_v47, %v651_v43  ;;  %v850_v55 = vadd.f32 %v849_v50, %v848_v42 }
 0x115   :  { %v1533_v56 = vpop.f32.mrb[16].mxu0  ;;  %v1955_v58 = vpop.f32.mrb[16].mxu1  ;;  %1255 = vst.msk [vmem:[%s2396_s2 + $0xa0] sm:$0xf] %vm1214_vm0, %v1435_v26  ;;  %1258 = vst.msk [vmem:[%s2396_s2 + $0xac] sm:$0xf] %vm1214_vm0, %v1438_v32 }
 0x116   :  { %v1413_v61 = vpack.c.bf16 %v1533_v56, %v1533_v56  ;;  %v433_v62 = vpop.f32.mrb[17].mxu0  ;;  %v1963_v63 = vpop.f32.mrb[17].mxu1  ;;  %v852_v0 = vadd.f32 %v851_v59, %v850_v55  ;;  %v655_v1 = vadd.f32 %v654_v60, %v653_v54  ;;  %v778_v18 = vmul.f32 %v1533_v56, %v1533_v56 }
 0x117   :  { %v656_v2 = vsel %vm624_vm1, %v433_v62, 0.0  ;;  %v776_v3 = vmul.f32 %v433_v62, %v433_v62  ;;  %v1534_v4 = vpop.f32.mrb[18].mxu0  ;;  %v1966_v6 = vpop.f32.mrb[18].mxu1  ;;  %v1411_v8 = vpack.c.bf16 %v433_v62, %v433_v62  ;;  %v660_v28 = vsel %vm624_vm1, %v1533_v56, 0.0 }
 0x118   :  { %1233 = vst.msk [vmem:[%s2396_s2 + $0x48] sm:$0xf] %vm1214_vm0, %v1413_v61  ;;  %v436_v9 = vpop.f32.mrb[19].mxu0  ;;  %v1973_v10 = vpop.f32.mrb[19].mxu1  ;;  %v657_v12 = vadd.f32 %v656_v2, %v655_v1  ;;  %v854_v13 = vadd.f32 %v853_v7, %v852_v0  ;;  %v1414_v16 = vpack.c.bf16 %v1534_v4, %v1534_v4  ;;  %v779_v29 = vmul.f32 %v1534_v4, %v1534_v4 }
 0x119   :  { %v855_v15 = vsel %vm624_vm1, %v776_v3, 0.0  ;;  %1231 = vst.msk [vmem:[%s2396_s2 + $0x40] sm:$0xf] %vm1214_vm0, %v1411_v8  ;;  %v658_v19 = vsel %vm624_vm1, %v436_v9, 0.0  ;;  %v777_v22 = vmul.f32 %v436_v9, %v436_v9  ;;  %v1412_v23 = vpack.c.bf16 %v436_v9, %v436_v9 }
 0x11a   :  { %v856_v24 = vadd.f32 %v855_v15, %v854_v13  ;;  %1234 = vst.msk [vmem:[%s2396_s2 + $0x4c] sm:$0xf] %vm1214_vm0, %v1414_v16  ;;  %v659_v25 = vadd.f32 %v658_v19, %v657_v12  ;;  %v859_v37 = vsel %vm624_vm1, %v778_v18, 0.0  ;;  %v662_v39 = vsel %vm624_vm1, %v1534_v4, 0.0 }
 0x11b   :  { %v857_v30 = vsel %vm624_vm1, %v777_v22, 0.0  ;;  %1232 = vst.msk [vmem:[%s2396_s2 + $0x44] sm:$0xf] %vm1214_vm0, %v1412_v23  ;;  %v861_v55 = vsel %vm624_vm1, %v779_v29, 0.0  ;;  %v1436_v12 = vpack.c.bf16 %v1885_v57, %v1885_v57  ;;  %v1441_v18 = vpack.c.bf16 %v1911_v14, %v1911_v14 }
 0x11c   :  { %v661_v33 = vadd.f32 %v660_v28, %v659_v25  ;;  %v858_v34 = vadd.f32 %v857_v30, %v856_v24 }
 0x11d   :  { %v1537_v35 = vpop.f32.mrb[20].mxu0  ;;  %v1999_v36 = vpop.f32.mrb[20].mxu1  ;;  %1256 = vst.msk [vmem:[%s2396_s2 + $0xa4] sm:$0xf] %vm1214_vm0, %v1436_v12  ;;  %1261 = vst.msk [vmem:[%s2396_s2 + $0xb8] sm:$0xf] %vm1214_vm0, %v1441_v18 }
 0x11e   :  { %v1417_v40 = vpack.c.bf16 %v1537_v35, %v1537_v35  ;;  %v449_v42 = vpop.f32.mrb[21].mxu0  ;;  %v2007_v43 = vpop.f32.mrb[21].mxu1  ;;  %v860_v46 = vadd.f32 %v859_v37, %v858_v34  ;;  %v663_v47 = vadd.f32 %v662_v39, %v661_v33  ;;  %v782_v2 = vmul.f32 %v1537_v35, %v1537_v35 }
 0x11f   :  { %v664_v49 = vsel %vm624_vm1, %v449_v42, 0.0  ;;  %v780_v50 = vmul.f32 %v449_v42, %v449_v42  ;;  %v1538_v51 = vpop.f32.mrb[22].mxu0  ;;  %v2010_v54 = vpop.f32.mrb[22].mxu1  ;;  %v1415_v56 = vpack.c.bf16 %v449_v42, %v449_v42  ;;  %v668_v13 = vsel %vm624_vm1, %v1537_v35, 0.0 }
 0x120   :  { %1237 = vst.msk [vmem:[%s2396_s2 + $0x58] sm:$0xf] %vm1214_vm0, %v1417_v40  ;;  %v452_v59 = vpop.f32.mrb[23].mxu0  ;;  %v2017_v60 = vpop.f32.mrb[23].mxu1  ;;  %v665_v61 = vadd.f32 %v664_v49, %v663_v47  ;;  %v862_v62 = vadd.f32 %v861_v55, %v860_v46  ;;  %v1418_v1 = vpack.c.bf16 %v1538_v51, %v1538_v51  ;;  %v783_v15 = vmul.f32 %v1538_v51, %v1538_v51 }
 0x121   :  { %v863_v0 = vsel %vm624_vm1, %v780_v50, 0.0  ;;  %1235 = vst.msk [vmem:[%s2396_s2 + $0x50] sm:$0xf] %vm1214_vm0, %v1415_v56  ;;  %v666_v3 = vsel %vm624_vm1, %v452_v59, 0.0  ;;  %v781_v4 = vmul.f32 %v452_v59, %v452_v59  ;;  %v1416_v7 = vpack.c.bf16 %v452_v59, %v452_v59 }
 0x122   :  { %v864_v8 = vadd.f32 %v863_v0, %v862_v62  ;;  %1238 = vst.msk [vmem:[%s2396_s2 + $0x5c] sm:$0xf] %vm1214_vm0, %v1418_v1  ;;  %v667_v9 = vadd.f32 %v666_v3, %v665_v61  ;;  %v867_v25 = vsel %vm624_vm1, %v782_v2, 0.0  ;;  %v670_v26 = vsel %vm624_vm1, %v1538_v51, 0.0 }
 0x123   :  { %v865_v16 = vsel %vm624_vm1, %v781_v4, 0.0  ;;  %1236 = vst.msk [vmem:[%s2396_s2 + $0x54] sm:$0xf] %vm1214_vm0, %v1416_v7  ;;  %v869_v40 = vsel %vm624_vm1, %v783_v15, 0.0  ;;  %v1439_v2 = vpack.c.bf16 %v1919_v21, %v1919_v21 }
 0x124   :  { %v669_v19 = vadd.f32 %v668_v13, %v667_v9  ;;  %v866_v22 = vadd.f32 %v865_v16, %v864_v8  ;;  %v1442_v8 = vpack.c.bf16 %v1922_v27, %v1922_v27 }
 0x125   :  { %v1541_v23 = vpop.f32.mrb[24].mxu0  ;;  %v2043_v24 = vpop.f32.mrb[24].mxu1  ;;  %1259 = vst.msk [vmem:[%s2396_s2 + $0xb0] sm:$0xf] %vm1214_vm0, %v1439_v2 }
 0x126   :  { %v1421_v28 = vpack.c.bf16 %v1541_v23, %v1541_v23  ;;  %v465_v29 = vpop.f32.mrb[25].mxu0  ;;  %v2051_v30 = vpop.f32.mrb[25].mxu1  ;;  %v868_v32 = vadd.f32 %v867_v25, %v866_v22  ;;  %v671_v33 = vadd.f32 %v670_v26, %v669_v19  ;;  %v786_v56 = vmul.f32 %v1541_v23, %v1541_v23  ;;  %1262 = vst.msk [vmem:[%s2396_s2 + $0xbc] sm:$0xf] %vm1214_vm0, %v1442_v8 }
 0x127   :  { %v672_v34 = vsel %vm624_vm1, %v465_v29, 0.0  ;;  %v784_v35 = vmul.f32 %v465_v29, %v465_v29  ;;  %v1542_v37 = vpop.f32.mrb[26].mxu0  ;;  %v2054_v39 = vpop.f32.mrb[26].mxu1  ;;  %v1419_v42 = vpack.c.bf16 %v465_v29, %v465_v29  ;;  %v676_v3 = vsel %vm624_vm1, %v1541_v23, 0.0 }
 0x128   :  { %1241 = vst.msk [vmem:[%s2396_s2 + $0x68] sm:$0xf] %vm1214_vm0, %v1421_v28  ;;  %v468_v46 = vpop.f32.mrb[27].mxu0  ;;  %v2061_v47 = vpop.f32.mrb[27].mxu1  ;;  %v673_v49 = vadd.f32 %v672_v34, %v671_v33  ;;  %v870_v50 = vadd.f32 %v869_v40, %v868_v32  ;;  %v1422_v55 = vpack.c.bf16 %v1542_v37, %v1542_v37  ;;  %v787_v4 = vmul.f32 %v1542_v37, %v1542_v37 }
 0x129   :  { %v871_v51 = vsel %vm624_vm1, %v784_v35, 0.0  ;;  %1239 = vst.msk [vmem:[%s2396_s2 + $0x60] sm:$0xf] %vm1214_vm0, %v1419_v42  ;;  %v674_v59 = vsel %vm624_vm1, %v468_v46, 0.0  ;;  %v785_v61 = vmul.f32 %v468_v46, %v468_v46  ;;  %v1420_v62 = vpack.c.bf16 %v468_v46, %v468_v46 }
 0x12a   :  { %v872_v0 = vadd.f32 %v871_v51, %v870_v50  ;;  %1242 = vst.msk [vmem:[%s2396_s2 + $0x6c] sm:$0xf] %vm1214_vm0, %v1422_v55  ;;  %v675_v1 = vadd.f32 %v674_v59, %v673_v49  ;;  %v875_v16 = vsel %vm624_vm1, %v786_v56, 0.0  ;;  %v678_v18 = vsel %vm624_vm1, %v1542_v37, 0.0 }
 0x12b   :  { %v873_v7 = vsel %vm624_vm1, %v785_v61, 0.0  ;;  %1240 = vst.msk [vmem:[%s2396_s2 + $0x64] sm:$0xf] %vm1214_vm0, %v1420_v62  ;;  %v877_v34 = vsel %vm624_vm1, %v787_v4, 0.0 }
 0x12c   :  { %v677_v9 = vadd.f32 %v676_v3, %v675_v1  ;;  %v874_v12 = vadd.f32 %v873_v7, %v872_v0  ;;  %v792_v0 = vmul.f32 %v1782_v44, %v1782_v44  ;;  %v1440_v1 = vpack.c.bf16 %v1929_v31, %v1929_v31 }
 0x12d   :  { %v1545_v13 = vpop.f32.mrb[28].mxu0  ;;  %v2087_v15 = vpop.f32.mrb[28].mxu1  ;;  %v1445_v7 = vpack.c.bf16 %v1955_v58, %v1955_v58 }
 0x12e   :  { %v1425_v19 = vpack.c.bf16 %v1545_v13, %v1545_v13  ;;  %v481_v22 = vpop.f32.mrb[29].mxu0  ;;  %v2095_v23 = vpop.f32.mrb[29].mxu1  ;;  %v876_v25 = vadd.f32 %v875_v16, %v874_v12  ;;  %v679_v26 = vadd.f32 %v678_v18, %v677_v9  ;;  %v790_v51 = vmul.f32 %v1545_v13, %v1545_v13  ;;  %1260 = vst.msk [vmem:[%s2396_s2 + $0xb4] sm:$0xf] %vm1214_vm0, %v1440_v1 }
 0x12f   :  { %v680_v28 = vsel %vm624_vm1, %v481_v22, 0.0  ;;  %v788_v29 = vmul.f32 %v481_v22, %v481_v22  ;;  %v1546_v32 = vpop.f32.mrb[30].mxu0  ;;  %v2098_v33 = vpop.f32.mrb[30].mxu1  ;;  %v1423_v35 = vpack.c.bf16 %v481_v22, %v481_v22  ;;  %v684_v2 = vsel %vm624_vm1, %v1545_v13, 0.0  ;;  %1265 = vst.msk [vmem:[%s2396_s2 + $0xc8] sm:$0xf] %vm1214_vm0, %v1445_v7 }
 0x130   :  { %1245 = vst.msk [vmem:[%s2396_s2 + $0x78] sm:$0xf] %vm1214_vm0, %v1425_v19  ;;  %v484_v37 = vpop.f32.mrb[31].mxu0  ;;  %v2105_v40 = vpop.f32.mrb[31].mxu1  ;;  %v681_v42 = vadd.f32 %v680_v28, %v679_v26  ;;  %v878_v46 = vadd.f32 %v877_v34, %v876_v25  ;;  %v1426_v50 = vpack.c.bf16 %v1546_v32, %v1546_v32  ;;  %v791_v3 = vmul.f32 %v1546_v32, %v1546_v32 }
 0x131   :  { %v879_v49 = vsel %vm624_vm1, %v788_v29, 0.0  ;;  %1243 = vst.msk [vmem:[%s2396_s2 + $0x70] sm:$0xf] %vm1214_vm0, %v1423_v35  ;;  %v682_v55 = vsel %vm624_vm1, %v484_v37, 0.0  ;;  %v789_v56 = vmul.f32 %v484_v37, %v484_v37  ;;  %v1424_v59 = vpack.c.bf16 %v484_v37, %v484_v37 }
 0x132   :  { %v880_v61 = vadd.f32 %v879_v49, %v878_v46  ;;  %1246 = vst.msk [vmem:[%s2396_s2 + $0x7c] sm:$0xf] %vm1214_vm0, %v1426_v50  ;;  %v683_v62 = vadd.f32 %v682_v55, %v681_v42  ;;  %v883_v12 = vsel %vm624_vm1, %v790_v51, 0.0  ;;  %v686_v13 = vsel %vm624_vm1, %v1546_v32, 0.0 }
 0x133   :  { %v881_v4 = vsel %vm624_vm1, %v789_v56, 0.0  ;;  %1244 = vst.msk [vmem:[%s2396_s2 + $0x74] sm:$0xf] %vm1214_vm0, %v1424_v59  ;;  %v688_v16 = vsel %vm624_vm1, %v1782_v44, 0.0  ;;  %v1443_v18 = vpack.c.bf16 %v1963_v63, %v1963_v63  ;;  %v1446_v25 = vpack.c.bf16 %v1966_v6, %v1966_v6 }
 0x134   :  { %v685_v8 = vadd.f32 %v684_v2, %v683_v62  ;;  %v882_v9 = vadd.f32 %v881_v4, %v880_v61  ;;  %v885_v26 = vsel %vm624_vm1, %v791_v3, 0.0  ;;  %v887_v28 = vsel %vm624_vm1, %v792_v0, 0.0 }
 0x135   :  { %v793_v44 = vmul.f32 %v1790_v52, %v1790_v52  ;;  %1263 = vst.msk [vmem:[%s2396_s2 + $0xc0] sm:$0xf] %vm1214_vm0, %v1443_v18  ;;  %v1444_v29 = vpack.c.bf16 %v1973_v10, %v1973_v10  ;;  %1266 = vst.msk [vmem:[%s2396_s2 + $0xcc] sm:$0xf] %vm1214_vm0, %v1446_v25  ;;  %v794_v35 = vmul.f32 %v1780_v41, %v1780_v41  ;;  %v690_v37 = vsel %vm624_vm1, %v1790_v52, 0.0 }
 0x136   :  { %v884_v19 = vadd.f32 %v883_v12, %v882_v9  ;;  %v687_v22 = vadd.f32 %v686_v13, %v685_v8  ;;  %v1449_v42 = vpack.c.bf16 %v1999_v36, %v1999_v36  ;;  %v692_v46 = vsel %vm624_vm1, %v1780_v41, 0.0 }
 0x137   :  { %1264 = vst.msk [vmem:[%s2396_s2 + $0xc4] sm:$0xf] %vm1214_vm0, %v1444_v29  ;;  %v1447_v51 = vpack.c.bf16 %v2007_v43, %v2007_v43  ;;  %v795_v55 = vmul.f32 %v1784_v48, %v1784_v48  ;;  %v889_v52 = vsel %vm624_vm1, %v793_v44, 0.0  ;;  %v796_v56 = vmul.f32 %v1828_v11, %v1828_v11 }
 0x138   :  { %v689_v32 = vadd.f32 %v688_v16, %v687_v22  ;;  %v886_v34 = vadd.f32 %v885_v26, %v884_v19  ;;  %1269 = vst.msk [vmem:[%s2396_s2 + $0xd8] sm:$0xf] %vm1214_vm0, %v1449_v42  ;;  %v1450_v41 = vpack.c.bf16 %v2010_v54, %v2010_v54  ;;  %v891_v62 = vsel %vm624_vm1, %v794_v35, 0.0 }
 0x139   :  { %1267 = vst.msk [vmem:[%s2396_s2 + $0xd0] sm:$0xf] %vm1214_vm0, %v1447_v51  ;;  %v694_v0 = vsel %vm624_vm1, %v1784_v48, 0.0  ;;  %v696_v1 = vsel %vm624_vm1, %v1828_v11, 0.0  ;;  %v1448_v2 = vpack.c.bf16 %v2017_v60, %v2017_v60  ;;  %v1453_v7 = vpack.c.bf16 %v2043_v24, %v2043_v24 }
 0x13a   :  { %v888_v49 = vadd.f32 %v887_v28, %v886_v34  ;;  %v691_v50 = vadd.f32 %v690_v37, %v689_v32  ;;  %1270 = vst.msk [vmem:[%s2396_s2 + $0xdc] sm:$0xf] %vm1214_vm0, %v1450_v41  ;;  %v893_v8 = vsel %vm624_vm1, %v795_v55, 0.0  ;;  %v895_v48 = vsel %vm624_vm1, %v796_v56, 0.0 }
 0x13b   :  { %v797_v11 = vmul.f32 %v1841_v20, %v1841_v20  ;;  %1268 = vst.msk [vmem:[%s2396_s2 + $0xd4] sm:$0xf] %vm1214_vm0, %v1448_v2  ;;  %v1451_v9 = vpack.c.bf16 %v2051_v30, %v2051_v30  ;;  %1273 = vst.msk [vmem:[%s2396_s2 + $0xe8] sm:$0xf] %vm1214_vm0, %v1453_v7  ;;  %v798_v16 = vmul.f32 %v1824_v5, %v1824_v5  ;;  %v698_v18 = vsel %vm624_vm1, %v1841_v20, 0.0 }
 0x13c   :  { %v693_v59 = vadd.f32 %v692_v46, %v691_v50  ;;  %v890_v61 = vadd.f32 %v889_v52, %v888_v49  ;;  %v1454_v19 = vpack.c.bf16 %v2054_v39, %v2054_v39  ;;  %v700_v22 = vsel %vm624_vm1, %v1824_v5, 0.0 }
 0x13d   :  { %1271 = vst.msk [vmem:[%s2396_s2 + $0xe0] sm:$0xf] %vm1214_vm0, %v1451_v9  ;;  %v1452_v28 = vpack.c.bf16 %v2061_v47, %v2061_v47  ;;  %v799_v44 = vmul.f32 %v1835_v17, %v1835_v17  ;;  %v897_v20 = vsel %vm624_vm1, %v797_v11, 0.0  ;;  %v800_v29 = vmul.f32 %v1875_v45, %v1875_v45 }
 0x13e   :  { %v892_v3 = vadd.f32 %v891_v62, %v890_v61  ;;  %v695_v4 = vadd.f32 %v694_v0, %v693_v59  ;;  %1274 = vst.msk [vmem:[%s2396_s2 + $0xec] sm:$0xf] %vm1214_vm0, %v1454_v19  ;;  %v1457_v5 = vpack.c.bf16 %v2087_v15, %v2087_v15  ;;  %v899_v35 = vsel %vm624_vm1, %v798_v16, 0.0 }
 0x13f   :  { %1272 = vst.msk [vmem:[%s2396_s2 + $0xe4] sm:$0xf] %vm1214_vm0, %v1452_v28  ;;  %v702_v37 = vsel %vm624_vm1, %v1835_v17, 0.0  ;;  %v704_v42 = vsel %vm624_vm1, %v1875_v45, 0.0  ;;  %v1455_v46 = vpack.c.bf16 %v2095_v23, %v2095_v23  ;;  %v1458_v51 = vpack.c.bf16 %v2098_v33, %v2098_v33 }
 0x140   :  { %v697_v12 = vadd.f32 %v696_v1, %v695_v4  ;;  %v894_v13 = vadd.f32 %v893_v8, %v892_v3  ;;  %1277 = vst.msk [vmem:[%s2396_s2 + $0xf8] sm:$0xf] %vm1214_vm0, %v1457_v5  ;;  %v901_v55 = vsel %vm624_vm1, %v799_v44, 0.0  ;;  %v903_v17 = vsel %vm624_vm1, %v800_v29, 0.0 }
 0x141   :  { %v801_v45 = vmul.f32 %v1885_v57, %v1885_v57  ;;  %1275 = vst.msk [vmem:[%s2396_s2 + $0xf0] sm:$0xf] %vm1214_vm0, %v1455_v46  ;;  %1278 = vst.msk [vmem:[%s2396_s2 + $0xfc] sm:$0xf] %vm1214_vm0, %v1458_v51  ;;  %v1456_v41 = vpack.c.bf16 %v2105_v40, %v2105_v40  ;;  %v802_v59 = vmul.f32 %v1867_v38, %v1867_v38  ;;  %v706_v61 = vsel %vm624_vm1, %v1885_v57, 0.0 }
 0x142   :  { %v896_v25 = vadd.f32 %v895_v48, %v894_v13  ;;  %v699_v26 = vadd.f32 %v698_v18, %v697_v12  ;;  %v708_v1 = vsel %vm624_vm1, %v1867_v38, 0.0  ;;  %v803_v2 = vmul.f32 %v1878_v53, %v1878_v53 }
 0x143   :  { %1276 = vst.msk [vmem:[%s2396_s2 + $0xf4] sm:$0xf] %vm1214_vm0, %v1456_v41  ;;  %v905_v3 = vsel %vm624_vm1, %v801_v45, 0.0  ;;  %v804_v4 = vmul.f32 %v1919_v21, %v1919_v21  ;;  %v907_v8 = vsel %vm624_vm1, %v802_v59, 0.0  ;;  %v710_v48 = vsel %vm624_vm1, %v1878_v53, 0.0 }
 0x144   :  { %v701_v32 = vadd.f32 %v700_v22, %v699_v26  ;;  %v898_v34 = vadd.f32 %v897_v20, %v896_v25  ;;  %v712_v11 = vsel %vm624_vm1, %v1919_v21, 0.0  ;;  %v909_v12 = vsel %vm624_vm1, %v803_v2, 0.0 }
 0x145   :  { %v911_v13 = vsel %vm624_vm1, %v804_v4, 0.0  ;;  %v805_v16 = vmul.f32 %v1929_v31, %v1929_v31  ;;  %v806_v22 = vmul.f32 %v1911_v14, %v1911_v14  ;;  %v714_v53 = vsel %vm624_vm1, %v1929_v31, 0.0 }
 0x146   :  { %v900_v49 = vadd.f32 %v899_v35, %v898_v34  ;;  %v703_v50 = vadd.f32 %v702_v37, %v701_v32  ;;  %v716_v21 = vsel %vm624_vm1, %v1911_v14, 0.0  ;;  %v807_v28 = vmul.f32 %v1922_v27, %v1922_v27 }
 0x147   :  { %v913_v44 = vsel %vm624_vm1, %v805_v16, 0.0  ;;  %v808_v20 = vmul.f32 %v1963_v63, %v1963_v63  ;;  %v915_v32 = vsel %vm624_vm1, %v806_v22, 0.0  ;;  %v718_v31 = vsel %vm624_vm1, %v1922_v27, 0.0 }
 0x148   :  { %v705_v52 = vadd.f32 %v704_v42, %v703_v50  ;;  %v902_v56 = vadd.f32 %v901_v55, %v900_v49  ;;  %v720_v34 = vsel %vm624_vm1, %v1963_v63, 0.0  ;;  %v917_v37 = vsel %vm624_vm1, %v807_v28, 0.0 }
 0x149   :  { %v919_v42 = vsel %vm624_vm1, %v808_v20, 0.0  ;;  %v809_v46 = vmul.f32 %v1973_v10, %v1973_v10  ;;  %v810_v51 = vmul.f32 %v1955_v58, %v1955_v58  ;;  %v722_v27 = vsel %vm624_vm1, %v1973_v10, 0.0 }
 0x14a   :  { %v904_v62 = vadd.f32 %v903_v17, %v902_v56  ;;  %v707_v0 = vadd.f32 %v706_v61, %v705_v52  ;;  %v724_v63 = vsel %vm624_vm1, %v1955_v58, 0.0  ;;  %v811_v45 = vmul.f32 %v1966_v6, %v1966_v6 }
 0x14b   :  { %v921_v52 = vsel %vm624_vm1, %v809_v46, 0.0  ;;  %v812_v56 = vmul.f32 %v2007_v43, %v2007_v43  ;;  %v923_v61 = vsel %vm624_vm1, %v810_v51, 0.0  ;;  %v726_v10 = vsel %vm624_vm1, %v1966_v6, 0.0 }
 0x14c   :  { %v709_v7 = vadd.f32 %v708_v1, %v707_v0  ;;  %v906_v57 = vadd.f32 %v905_v3, %v904_v62  ;;  %v728_v62 = vsel %vm624_vm1, %v2007_v43, 0.0  ;;  %v925_v1 = vsel %vm624_vm1, %v811_v45, 0.0 }
 0x14d   :  { %v927_v2 = vsel %vm624_vm1, %v812_v56, 0.0  ;;  %v813_v3 = vmul.f32 %v2017_v60, %v2017_v60  ;;  %v730_v6 = vsel %vm624_vm1, %v2017_v60, 0.0  ;;  %v732_v43 = vsel %vm624_vm1, %v1999_v36, 0.0 }
 0x14e   :  { %v908_v9 = vadd.f32 %v907_v8, %v906_v57  ;;  %v711_v38 = vadd.f32 %v710_v48, %v709_v7  ;;  %v814_v57 = vmul.f32 %v1999_v36, %v1999_v36  ;;  %v734_v60 = vsel %vm624_vm1, %v2010_v54, 0.0 }
 0x14f   :  { %v818_v28 = vmul.f32 %v2043_v24, %v2043_v24 }
 0x150   :  { %v713_v18 = vadd.f32 %v712_v11, %v711_v38  ;;  %v910_v19 = vadd.f32 %v909_v12, %v908_v9  ;;  %v815_v11 = vmul.f32 %v2010_v54, %v2010_v54  ;;  %v929_v9 = vsel %vm624_vm1, %v813_v3, 0.0 }
 0x151   :  { %v816_v38 = vmul.f32 %v2051_v30, %v2051_v30  ;;  %v931_v16 = vsel %vm624_vm1, %v814_v57, 0.0  ;;  %v738_v54 = vsel %vm624_vm1, %v2061_v47, 0.0 }
 0x152   :  { %v912_v25 = vadd.f32 %v911_v13, %v910_v19  ;;  %v715_v26 = vadd.f32 %v714_v53, %v713_v18  ;;  %v736_v18 = vsel %vm624_vm1, %v2051_v30, 0.0  ;;  %v933_v22 = vsel %vm624_vm1, %v815_v11, 0.0 }
 0x153   :  { %v935_v53 = vsel %vm624_vm1, %v816_v38, 0.0  ;;  %v740_v30 = vsel %vm624_vm1, %v2043_v24, 0.0 }
 0x154   :  { %v717_v29 = vadd.f32 %v716_v21, %v715_v26  ;;  %v914_v5 = vadd.f32 %v913_v44, %v912_v25  ;;  %v817_v25 = vmul.f32 %v2061_v47, %v2061_v47  ;;  %v742_v47 = vsel %vm624_vm1, %v2054_v39, 0.0 }
 0x156   :  { %v916_v35 = vadd.f32 %v915_v32, %v914_v5  ;;  %v719_v14 = vadd.f32 %v718_v31, %v717_v29  ;;  %v819_v29 = vmul.f32 %v2054_v39, %v2054_v39  ;;  %v937_v5 = vsel %vm624_vm1, %v817_v25, 0.0 }
 0x157   :  { %v820_v32 = vmul.f32 %v2095_v23, %v2095_v23  ;;  %v746_v39 = vsel %vm624_vm1, %v2105_v40, 0.0 }
 0x158   :  { %v721_v49 = vadd.f32 %v720_v34, %v719_v14  ;;  %v918_v50 = vadd.f32 %v917_v37, %v916_v35  ;;  %v939_v35 = vsel %vm624_vm1, %v818_v28, 0.0  ;;  %v744_v14 = vsel %vm624_vm1, %v2095_v23, 0.0 }
 0x159   :  { %v943_v46 = vsel %vm624_vm1, %v820_v32, 0.0  ;;  %v748_v23 = vsel %vm624_vm1, %v2087_v15, 0.0 }
 0x15a   :  { %v920_v55 = vadd.f32 %v919_v42, %v918_v50  ;;  %v723_v17 = vadd.f32 %v722_v27, %v721_v49  ;;  %v941_v42 = vsel %vm624_vm1, %v819_v29, 0.0  ;;  %v821_v49 = vmul.f32 %v2105_v40, %v2105_v40 }
 0x15b   :  { %v822_v27 = vmul.f32 %v2087_v15, %v2087_v15 }
 0x15c   :  { %v725_v41 = vadd.f32 %v724_v63, %v723_v17  ;;  %v922_v59 = vadd.f32 %v921_v52, %v920_v55  ;;  %v823_v63 = vmul.f32 %v2098_v33, %v2098_v33  ;;  %v945_v45 = vsel %vm624_vm1, %v821_v49, 0.0 }
 0x15e   :  { %v924_v0 = vadd.f32 %v923_v61, %v922_v59  ;;  %v727_v58 = vadd.f32 %v726_v10, %v725_v41  ;;  %v947_v41 = vsel %vm624_vm1, %v822_v27, 0.0  ;;  %v750_v59 = vsel %vm624_vm1, %v2098_v33, 0.0 }
 0x15f   :  { %v949_v40 = vsel %vm624_vm1, %v823_v63, 0.0 }
 0x160   :  { %v729_v4 = vadd.f32 %v728_v62, %v727_v58  ;;  %v926_v7 = vadd.f32 %v925_v1, %v924_v0 }
 0x162   :  { %v928_v8 = vadd.f32 %v927_v2, %v926_v7  ;;  %v731_v48 = vadd.f32 %v730_v6, %v729_v4 }
 0x164   :  { %v733_v12 = vadd.f32 %v732_v43, %v731_v48  ;;  %v930_v13 = vadd.f32 %v929_v9, %v928_v8 }
 0x166   :  { %v932_v19 = vadd.f32 %v931_v16, %v930_v13  ;;  %v735_v36 = vadd.f32 %v734_v60, %v733_v12 }
 0x168   :  { %v737_v26 = vadd.f32 %v736_v18, %v735_v36  ;;  %v934_v21 = vadd.f32 %v933_v22, %v932_v19 }
 0x16a   :  { %v936_v44 = vadd.f32 %v935_v53, %v934_v21  ;;  %v739_v20 = vadd.f32 %v738_v54, %v737_v26 }
 0x16c   :  { %v741_v31 = vadd.f32 %v740_v30, %v739_v20  ;;  %v938_v34 = vadd.f32 %v937_v5, %v936_v44 }
 0x16e   :  { %v940_v37 = vadd.f32 %v939_v35, %v938_v34  ;;  %v743_v24 = vadd.f32 %v742_v47, %v741_v31 }
 0x170   :  { %v745_v50 = vadd.f32 %v744_v14, %v743_v24  ;;  %v942_v51 = vadd.f32 %v941_v42, %v940_v37 }
 0x172   :  { %v944_v55 = vadd.f32 %v943_v46, %v942_v51  ;;  %v747_v17 = vadd.f32 %v746_v39, %v745_v50 }
 0x174   :  { %v749_v52 = vadd.f32 %v748_v23, %v747_v17  ;;  %v946_v56 = vadd.f32 %v945_v45, %v944_v55 }
 0x176   :  { %v751_v61 = vadd.f32 %v750_v59, %v749_v52  ;;  %v948_v10 = vadd.f32 %v947_v41, %v946_v56 }
 0x178   :  { %v752_v62 = vrot.slane %v751_v61, 4  ;;  %v950_v0 = vadd.f32 %v949_v40, %v948_v10 }
 0x17a   :  { %v753_v58 = vadd.f32 %v752_v62, %v751_v61  ;;  %v951_v15 = vrot.slane %v950_v0, 4 }
 0x17c   :  { %v754_v1 = vrot.slane %v753_v58, 2  ;;  %v952_v2 = vadd.f32 %v951_v15, %v950_v0 }
 0x17e   :  { %v755_v3 = vadd.f32 %v754_v1, %v753_v58  ;;  %v953_v4 = vrot.slane %v952_v2, 2 }
 0x180   :  { %v756_v7 = vrot.slane %v755_v3, 1  ;;  %v954_v57 = vadd.f32 %v953_v4, %v952_v2 }
 0x182   :  { %v757_v6 = vadd.f32 %v756_v7, %v755_v3  ;;  %v955_v8 = vrot.slane %v954_v57, 1 }
 0x184   :  { %759 = vst.msk [vmem:[%s2397_s3] sm:$0x1] %vm758_vm2, %v757_v6  ;;  %v956_v33 = vadd.f32 %v955_v8, %v954_v57 }
 0x186   :  { %957 = vst.msk [vmem:[%s2398_s4] sm:$0x1] %vm758_vm2, %v956_v33 }

// kernel: discriminator_forward.10
= control target key start
LH: loop header
LB: loop body
LE: loop exit
PB: predicated region body
PF: predicated region fallthrough
CT: control target
= control target key end

     0   :  { %vm732_vm0 = vcmask 125952   ;;  %s1608_s0 = inlined_call_operand.vmem [shape: bf16[512,16], index: 0, kind: input, shape index: {}]   ;;  %s1609_s1 = inlined_call_operand.vmem [shape: f32[1,16], index: 1, kind: input, shape index: {}]   ;;  %s1610_s2 = inlined_call_operand.vmem [shape: f32[1,16], index: 2, kind: input, shape index: {}]   ;;  %s1611_s3 = inlined_call_operand.vmem [shape: bf16[512,16], index: 3, kind: output, shape index: {}]  }
   0x1   :  { %v932_v0 = vld [vmem:[%s1608_s0] sm:$0xff]   ;;  %v1059_v4 = vld [vmem:[%s1608_s0 + $0x8] sm:$0xff]   ;;  %v1060_v5 = vld [vmem:[%s1608_s0 + $0x10] sm:$0xff]  }
   0x2   :  { %v1118_v1 = vld [vmem:[%s1609_s1] ss:$0 sm:$0xff]  ;;  %v933_v2 = vunpack.c.l.bf16 %v932_v0  ;;  %v934_v3 = vunpack.c.h.bf16 %v932_v0  ;;  %v1061_v6 = vld [vmem:[%s1608_s0 + $0x18] sm:$0xff]   ;;  %v937_v8 = vunpack.c.l.bf16 %v1059_v4  ;;  %v938_v9 = vunpack.c.h.bf16 %v1059_v4  ;;  %v1063_v40 = vld [vmem:[%s1608_s0 + $0x28] sm:$0xff]  }
   0x3   :  { %v1132_v7 = vld [vmem:[%s1610_s2] ss:$0 sm:$0xff]  ;;  %v941_v10 = vunpack.c.l.bf16 %v1060_v5  ;;  %v942_v11 = vunpack.c.h.bf16 %v1060_v5  ;;  %v945_v14 = vunpack.c.l.bf16 %v1061_v6  ;;  %v946_v15 = vunpack.c.h.bf16 %v1061_v6  ;;  %v1064_v52 = vld [vmem:[%s1608_s0 + $0x30] sm:$0xff]  }
   0x4   :  { %v149_v12 = vmul.f32 %v933_v2, %v1118_v1  ;;  %v150_v13 = vmul.f32 %v934_v3, %v1118_v1  ;;  %v151_v16 = vmul.f32 %v937_v8, %v1118_v1  ;;  %v152_v17 = vmul.f32 %v938_v9, %v1118_v1  ;;  %v1062_v39 = vld [vmem:[%s1608_s0 + $0x20] sm:$0xff]  }
   0x5   :  { %v153_v18 = vmul.f32 %v941_v10, %v1118_v1  ;;  %v154_v19 = vmul.f32 %v942_v11, %v1118_v1  ;;  %v155_v22 = vmul.f32 %v945_v14, %v1118_v1  ;;  %v156_v23 = vmul.f32 %v946_v15, %v1118_v1 }
   0x6   :  { %v220_v20 = vadd.f32 %v1132_v7, %v149_v12  ;;  %v221_v21 = vadd.f32 %v1132_v7, %v150_v13  ;;  %v222_v24 = vadd.f32 %v1132_v7, %v151_v16  ;;  %v223_v25 = vadd.f32 %v1132_v7, %v152_v17  ;;  %v1065_v17 = vld [vmem:[%s1608_s0 + $0x38] sm:$0xff]  }
   0x7   :  { %v224_v26 = vadd.f32 %v1132_v7, %v153_v18  ;;  %v225_v27 = vadd.f32 %v1132_v7, %v154_v19  ;;  %v226_v46 = vadd.f32 %v1132_v7, %v155_v22  ;;  %v227_v47 = vadd.f32 %v1132_v7, %v156_v23  ;;  %v1066_v18 = vld [vmem:[%s1608_s0 + $0x40] sm:$0xff]   ;;  %v1067_v23 = vld [vmem:[%s1608_s0 + $0x48] sm:$0xff]  }
   0x8   :  { %vm284_vm1 = vcmp.ge.f32.partialorder %v220_v20, 0.0  ;;  %v348_v28 = vmul.f32 0.2, %v220_v20  ;;  %vm285_vm2 = vcmp.ge.f32.partialorder %v221_v21, 0.0  ;;  %v349_v29 = vmul.f32 0.2, %v221_v21 }
   0x9   :  { %vm286_vm3 = vcmp.ge.f32.partialorder %v222_v24, 0.0  ;;  %v350_v30 = vmul.f32 0.2, %v222_v24  ;;  %vm287_vm4 = vcmp.ge.f32.partialorder %v223_v25, 0.0  ;;  %v351_v31 = vmul.f32 0.2, %v223_v25 }
   0xa   :  { %v412_v32 = vsel %vm284_vm1, %v220_v20, %v348_v28  ;;  %v413_v33 = vsel %vm285_vm2, %v221_v21, %v349_v29  ;;  %vm288_vm5 = vcmp.ge.f32.partialorder %v224_v26, 0.0  ;;  %v352_v34 = vmul.f32 0.2, %v224_v26 }
   0xb   :  { %v867_v35 = vpack.c.bf16 %v412_v32, %v412_v32  ;;  %v868_v36 = vpack.c.bf16 %v413_v33, %v413_v33  ;;  %v414_v37 = vsel %vm286_vm3, %v222_v24, %v350_v30  ;;  %v415_v38 = vsel %vm287_vm4, %v223_v25, %v351_v31 }
   0xc   :  { %v869_v41 = vpack.c.bf16 %v414_v37, %v414_v37  ;;  %v870_v42 = vpack.c.bf16 %v415_v38, %v415_v38  ;;  %v416_v43 = vsel %vm288_vm5, %v224_v26, %v352_v34  ;;  %vm289_vm6 = vcmp.ge.f32.partialorder %v225_v27, 0.0 }
   0xd   :  { %733 = vst.msk [vmem:[%s1611_s3] sm:$0xf] %vm732_vm0, %v867_v35  ;;  %734 = vst.msk [vmem:[%s1611_s3 + $0x4] sm:$0xf] %vm732_vm0, %v868_v36  ;;  %v871_v44 = vpack.c.bf16 %v416_v43, %v416_v43  ;;  %v353_v45 = vmul.f32 0.2, %v225_v27  ;;  %v949_v48 = vunpack.c.l.bf16 %v1062_v39  ;;  %v950_v49 = vunpack.c.h.bf16 %v1062_v39 }
   0xe   :  { %735 = vst.msk [vmem:[%s1611_s3 + $0x8] sm:$0xf] %vm732_vm0, %v869_v41  ;;  %736 = vst.msk [vmem:[%s1611_s3 + $0xc] sm:$0xf] %vm732_vm0, %v870_v42  ;;  %v953_v50 = vunpack.c.l.bf16 %v1063_v40  ;;  %v954_v51 = vunpack.c.h.bf16 %v1063_v40  ;;  %vm290_vm7 = vcmp.ge.f32.partialorder %v226_v46, 0.0  ;;  %vm291_vm8 = vcmp.ge.f32.partialorder %v227_v47, 0.0 }
   0xf   :  { %737 = vst.msk [vmem:[%s1611_s3 + $0x10] sm:$0xf] %vm732_vm0, %v871_v44  ;;  %v417_v53 = vsel %vm289_vm6, %v225_v27, %v353_v45  ;;  %v354_v54 = vmul.f32 0.2, %v226_v46  ;;  %v355_v56 = vmul.f32 0.2, %v227_v47  ;;  %v157_v57 = vmul.f32 %v949_v48, %v1118_v1 }
  0x10   :  { %v872_v55 = vpack.c.bf16 %v417_v53, %v417_v53  ;;  %v158_v58 = vmul.f32 %v950_v49, %v1118_v1  ;;  %v159_v60 = vmul.f32 %v953_v50, %v1118_v1  ;;  %v160_v61 = vmul.f32 %v954_v51, %v1118_v1 }
  0x11   :  { %v418_v59 = vsel %vm290_vm7, %v226_v46, %v354_v54  ;;  %v957_v62 = vunpack.c.l.bf16 %v1064_v52  ;;  %v419_v0 = vsel %vm291_vm8, %v227_v47, %v355_v56  ;;  %v228_v2 = vadd.f32 %v1132_v7, %v157_v57  ;;  %v1068_v57 = vld [vmem:[%s1608_s0 + $0x50] sm:$0xff]  }
  0x12   :  { %738 = vst.msk [vmem:[%s1611_s3 + $0x14] sm:$0xf] %vm732_vm0, %v872_v55  ;;  %v873_v63 = vpack.c.bf16 %v418_v59, %v418_v59  ;;  %v229_v3 = vadd.f32 %v1132_v7, %v158_v58  ;;  %v874_v4 = vpack.c.bf16 %v419_v0, %v419_v0  ;;  %v230_v5 = vadd.f32 %v1132_v7, %v159_v60 }
  0x13   :  { %v231_v6 = vadd.f32 %v1132_v7, %v160_v61  ;;  %v161_v8 = vmul.f32 %v957_v62, %v1118_v1  ;;  %vm292_vm9 = vcmp.ge.f32.partialorder %v228_v2, 0.0  ;;  %v356_v9 = vmul.f32 0.2, %v228_v2  ;;  %v1069_v62 = vld [vmem:[%s1608_s0 + $0x58] sm:$0xff]  }
  0x14   :  { %739 = vst.msk [vmem:[%s1611_s3 + $0x18] sm:$0xf] %vm732_vm0, %v873_v63  ;;  %vm293_vm10 = vcmp.ge.f32.partialorder %v229_v3, 0.0  ;;  %v357_v10 = vmul.f32 0.2, %v229_v3  ;;  %vm294_vm11 = vcmp.ge.f32.partialorder %v230_v5, 0.0  ;;  %v958_v16 = vunpack.c.h.bf16 %v1064_v52 }
  0x15   :  { %740 = vst.msk [vmem:[%s1611_s3 + $0x1c] sm:$0xf] %vm732_vm0, %v874_v4  ;;  %v358_v11 = vmul.f32 0.2, %v230_v5  ;;  %vm295_vm12 = vcmp.ge.f32.partialorder %v231_v6, 0.0  ;;  %v420_v13 = vsel %vm292_vm9, %v228_v2, %v356_v9  ;;  %v232_v15 = vadd.f32 %v1132_v7, %v161_v8 }
  0x16   :  { %v359_v12 = vmul.f32 0.2, %v231_v6  ;;  %v421_v14 = vsel %vm293_vm10, %v229_v3, %v357_v10  ;;  %v875_v19 = vpack.c.bf16 %v420_v13, %v420_v13  ;;  %v162_v27 = vmul.f32 %v958_v16, %v1118_v1  ;;  %v1070_v3 = vld [vmem:[%s1608_s0 + $0x60] sm:$0xff]   ;;  %v1071_v13 = vld [vmem:[%s1608_s0 + $0x68] sm:$0xff]  }
  0x17   :  { %v876_v20 = vpack.c.bf16 %v421_v14, %v421_v14  ;;  %v422_v21 = vsel %vm294_vm11, %v230_v5, %v358_v11  ;;  %vm296_vm13 = vcmp.ge.f32.partialorder %v232_v15, 0.0  ;;  %v360_v26 = vmul.f32 0.2, %v232_v15 }
  0x18   :  { %v423_v22 = vsel %vm295_vm12, %v231_v6, %v359_v12  ;;  %v877_v24 = vpack.c.bf16 %v422_v21, %v422_v21  ;;  %741 = vst.msk [vmem:[%s1611_s3 + $0x20] sm:$0xf] %vm732_vm0, %v875_v19  ;;  %v961_v28 = vunpack.c.l.bf16 %v1065_v17  ;;  %v962_v29 = vunpack.c.h.bf16 %v1065_v17 }
  0x19   :  { %v878_v25 = vpack.c.bf16 %v423_v22, %v423_v22  ;;  %742 = vst.msk [vmem:[%s1611_s3 + $0x24] sm:$0xf] %vm732_vm0, %v876_v20  ;;  %v965_v30 = vunpack.c.l.bf16 %v1066_v18  ;;  %v424_v31 = vsel %vm296_vm13, %v232_v15, %v360_v26  ;;  %v966_v32 = vunpack.c.h.bf16 %v1066_v18 }
  0x1a   :  { %743 = vst.msk [vmem:[%s1611_s3 + $0x28] sm:$0xf] %vm732_vm0, %v877_v24  ;;  %v969_v33 = vunpack.c.l.bf16 %v1067_v23  ;;  %v970_v34 = vunpack.c.h.bf16 %v1067_v23  ;;  %v879_v35 = vpack.c.bf16 %v424_v31, %v424_v31  ;;  %v233_v36 = vadd.f32 %v1132_v7, %v162_v27 }
  0x1b   :  { %744 = vst.msk [vmem:[%s1611_s3 + $0x2c] sm:$0xf] %vm732_vm0, %v878_v25  ;;  %v163_v37 = vmul.f32 %v961_v28, %v1118_v1  ;;  %v164_v38 = vmul.f32 %v962_v29, %v1118_v1  ;;  %v165_v39 = vmul.f32 %v965_v30, %v1118_v1  ;;  %v166_v40 = vmul.f32 %v966_v32, %v1118_v1 }
  0x1c   :  { %v167_v41 = vmul.f32 %v969_v33, %v1118_v1  ;;  %v168_v42 = vmul.f32 %v970_v34, %v1118_v1  ;;  %745 = vst.msk [vmem:[%s1611_s3 + $0x30] sm:$0xf] %vm732_vm0, %v879_v35  ;;  %vm297_vm14 = vcmp.ge.f32.partialorder %v233_v36, 0.0  ;;  %v361_v43 = vmul.f32 0.2, %v233_v36 }
  0x1d   :  { %v234_v44 = vadd.f32 %v1132_v7, %v163_v37  ;;  %v235_v45 = vadd.f32 %v1132_v7, %v164_v38  ;;  %v236_v46 = vadd.f32 %v1132_v7, %v165_v39  ;;  %v237_v47 = vadd.f32 %v1132_v7, %v166_v40 }
  0x1e   :  { %v238_v48 = vadd.f32 %v1132_v7, %v167_v41  ;;  %v239_v49 = vadd.f32 %v1132_v7, %v168_v42  ;;  %v425_v50 = vsel %vm297_vm14, %v233_v36, %v361_v43  ;;  %v973_v8 = vunpack.c.l.bf16 %v1068_v57  ;;  %v1072_v41 = vld [vmem:[%s1608_s0 + $0x70] sm:$0xff]  }
  0x1f   :  { %vm298_vm15 = vcmp.ge.f32.partialorder %v234_v44, 0.0  ;;  %v362_v51 = vmul.f32 0.2, %v234_v44  ;;  %vm299_vm1 = vcmp.ge.f32.partialorder %v235_v45, 0.0  ;;  %v880_v52 = vpack.c.bf16 %v425_v50, %v425_v50 }
  0x20   :  { %v363_v53 = vmul.f32 0.2, %v235_v45  ;;  %vm300_vm2 = vcmp.ge.f32.partialorder %v236_v46, 0.0  ;;  %v364_v54 = vmul.f32 0.2, %v236_v46  ;;  %vm301_vm3 = vcmp.ge.f32.partialorder %v237_v47, 0.0 }
  0x21   :  { %v426_v55 = vsel %vm298_vm15, %v234_v44, %v362_v51  ;;  %v365_v56 = vmul.f32 0.2, %v237_v47  ;;  %vm302_vm4 = vcmp.ge.f32.partialorder %v238_v48, 0.0  ;;  %746 = vst.msk [vmem:[%s1611_s3 + $0x34] sm:$0xf] %vm732_vm0, %v880_v52  ;;  %vm303_vm5 = vcmp.ge.f32.partialorder %v239_v49, 0.0 }
  0x22   :  { %v881_v58 = vpack.c.bf16 %v426_v55, %v426_v55  ;;  %v427_v59 = vsel %vm299_vm1, %v235_v45, %v363_v53  ;;  %v428_v60 = vsel %vm300_vm2, %v236_v46, %v364_v54  ;;  %v366_v61 = vmul.f32 0.2, %v238_v48  ;;  %v1073_v45 = vld [vmem:[%s1608_s0 + $0x78] sm:$0xff]  }
  0x23   :  { %v882_v63 = vpack.c.bf16 %v427_v59, %v427_v59  ;;  %v883_v0 = vpack.c.bf16 %v428_v60, %v428_v60  ;;  %v429_v2 = vsel %vm301_vm3, %v237_v47, %v365_v56  ;;  %v367_v6 = vmul.f32 0.2, %v239_v49 }
  0x24   :  { %747 = vst.msk [vmem:[%s1611_s3 + $0x38] sm:$0xf] %vm732_vm0, %v881_v58  ;;  %v884_v4 = vpack.c.bf16 %v429_v2, %v429_v2  ;;  %v430_v5 = vsel %vm302_vm4, %v238_v48, %v366_v61  ;;  %v974_v10 = vunpack.c.h.bf16 %v1068_v57  ;;  %v977_v11 = vunpack.c.l.bf16 %v1069_v62 }
  0x25   :  { %748 = vst.msk [vmem:[%s1611_s3 + $0x3c] sm:$0xf] %vm732_vm0, %v882_v63  ;;  %749 = vst.msk [vmem:[%s1611_s3 + $0x40] sm:$0xf] %vm732_vm0, %v883_v0  ;;  %v885_v9 = vpack.c.bf16 %v430_v5, %v430_v5  ;;  %v978_v12 = vunpack.c.h.bf16 %v1069_v62  ;;  %v431_v14 = vsel %vm303_vm5, %v239_v49, %v367_v6  ;;  %v169_v15 = vmul.f32 %v973_v8, %v1118_v1  ;;  %v1074_v62 = vld [vmem:[%s1608_s0 + $0x80] sm:$0xff]  }
  0x26   :  { %750 = vst.msk [vmem:[%s1611_s3 + $0x44] sm:$0xf] %vm732_vm0, %v884_v4  ;;  %v981_v16 = vunpack.c.l.bf16 %v1070_v3  ;;  %v982_v17 = vunpack.c.h.bf16 %v1070_v3  ;;  %v886_v18 = vpack.c.bf16 %v431_v14, %v431_v14  ;;  %v170_v19 = vmul.f32 %v974_v10, %v1118_v1 }
  0x27   :  { %751 = vst.msk [vmem:[%s1611_s3 + $0x48] sm:$0xf] %vm732_vm0, %v885_v9  ;;  %v171_v20 = vmul.f32 %v977_v11, %v1118_v1  ;;  %v172_v21 = vmul.f32 %v978_v12, %v1118_v1  ;;  %v240_v22 = vadd.f32 %v1132_v7, %v169_v15  ;;  %v985_v25 = vunpack.c.l.bf16 %v1071_v13 }
  0x28   :  { %v173_v23 = vmul.f32 %v981_v16, %v1118_v1  ;;  %v174_v24 = vmul.f32 %v982_v17, %v1118_v1  ;;  %752 = vst.msk [vmem:[%s1611_s3 + $0x4c] sm:$0xf] %vm732_vm0, %v886_v18  ;;  %v241_v26 = vadd.f32 %v1132_v7, %v170_v19  ;;  %v986_v29 = vunpack.c.h.bf16 %v1071_v13  ;;  %v1075_v16 = vld [vmem:[%s1608_s0 + $0x88] sm:$0xff]  }
  0x29   :  { %v242_v27 = vadd.f32 %v1132_v7, %v171_v20  ;;  %v243_v28 = vadd.f32 %v1132_v7, %v172_v21  ;;  %vm304_vm6 = vcmp.ge.f32.partialorder %v240_v22, 0.0  ;;  %v368_v30 = vmul.f32 0.2, %v240_v22 }
  0x2a   :  { %v244_v31 = vadd.f32 %v1132_v7, %v173_v23  ;;  %v245_v32 = vadd.f32 %v1132_v7, %v174_v24  ;;  %vm305_vm7 = vcmp.ge.f32.partialorder %v241_v26, 0.0  ;;  %v369_v33 = vmul.f32 0.2, %v241_v26  ;;  %v1076_v24 = vld [vmem:[%s1608_s0 + $0x90] sm:$0xff]  }
  0x2b   :  { %vm306_vm8 = vcmp.ge.f32.partialorder %v242_v27, 0.0  ;;  %v370_v34 = vmul.f32 0.2, %v242_v27  ;;  %v432_v35 = vsel %vm304_vm6, %v240_v22, %v368_v30  ;;  %vm307_vm9 = vcmp.ge.f32.partialorder %v243_v28, 0.0 }
  0x2c   :  { %v371_v36 = vmul.f32 0.2, %v243_v28  ;;  %vm308_vm10 = vcmp.ge.f32.partialorder %v244_v31, 0.0  ;;  %v887_v37 = vpack.c.bf16 %v432_v35, %v432_v35  ;;  %v433_v38 = vsel %vm305_vm7, %v241_v26, %v369_v33 }
  0x2d   :  { %v434_v39 = vsel %vm306_vm8, %v242_v27, %v370_v34  ;;  %v372_v40 = vmul.f32 0.2, %v244_v31  ;;  %v888_v42 = vpack.c.bf16 %v433_v38, %v433_v38  ;;  %vm309_vm11 = vcmp.ge.f32.partialorder %v245_v32, 0.0 }
  0x2e   :  { %v889_v43 = vpack.c.bf16 %v434_v39, %v434_v39  ;;  %v435_v44 = vsel %vm307_vm9, %v243_v28, %v371_v36  ;;  %753 = vst.msk [vmem:[%s1611_s3 + $0x50] sm:$0xf] %vm732_vm0, %v887_v37  ;;  %v373_v48 = vmul.f32 0.2, %v245_v32  ;;  %v175_v49 = vmul.f32 %v985_v25, %v1118_v1 }
  0x2f   :  { %v890_v46 = vpack.c.bf16 %v435_v44, %v435_v44  ;;  %v436_v47 = vsel %vm308_vm10, %v244_v31, %v372_v40  ;;  %754 = vst.msk [vmem:[%s1611_s3 + $0x54] sm:$0xf] %vm732_vm0, %v888_v42  ;;  %v176_v51 = vmul.f32 %v986_v29, %v1118_v1  ;;  %v989_v52 = vunpack.c.l.bf16 %v1072_v41  ;;  %v1359_v29 = vld [vmem:[%s1608_s0 + $0x98] sm:$0xff]  }
  0x30   :  { %755 = vst.msk [vmem:[%s1611_s3 + $0x58] sm:$0xf] %vm732_vm0, %v889_v43  ;;  %v891_v50 = vpack.c.bf16 %v436_v47, %v436_v47  ;;  %v990_v53 = vunpack.c.h.bf16 %v1072_v41  ;;  %v437_v54 = vsel %vm309_vm11, %v245_v32, %v373_v48  ;;  %v246_v55 = vadd.f32 %v1132_v7, %v175_v49 }
  0x31   :  { %756 = vst.msk [vmem:[%s1611_s3 + $0x5c] sm:$0xf] %vm732_vm0, %v890_v46  ;;  %v993_v56 = vunpack.c.l.bf16 %v1073_v45  ;;  %v994_v57 = vunpack.c.h.bf16 %v1073_v45  ;;  %v892_v58 = vpack.c.bf16 %v437_v54, %v437_v54  ;;  %v247_v59 = vadd.f32 %v1132_v7, %v176_v51 }
  0x32   :  { %757 = vst.msk [vmem:[%s1611_s3 + $0x60] sm:$0xf] %vm732_vm0, %v891_v50  ;;  %v177_v60 = vmul.f32 %v989_v52, %v1118_v1  ;;  %v178_v61 = vmul.f32 %v990_v53, %v1118_v1  ;;  %vm310_vm12 = vcmp.ge.f32.partialorder %v246_v55, 0.0  ;;  %v374_v63 = vmul.f32 0.2, %v246_v55 }
  0x33   :  { %v179_v0 = vmul.f32 %v993_v56, %v1118_v1  ;;  %v180_v2 = vmul.f32 %v994_v57, %v1118_v1  ;;  %758 = vst.msk [vmem:[%s1611_s3 + $0x64] sm:$0xf] %vm732_vm0, %v892_v58  ;;  %vm311_vm13 = vcmp.ge.f32.partialorder %v247_v59, 0.0  ;;  %v375_v3 = vmul.f32 0.2, %v247_v59  ;;  %v1078_v58 = vld [vmem:[%s1608_s0 + $0xa0] sm:$0xff]  }
  0x34   :  { %v248_v4 = vadd.f32 %v1132_v7, %v177_v60  ;;  %v249_v5 = vadd.f32 %v1132_v7, %v178_v61  ;;  %v438_v6 = vsel %vm310_vm12, %v246_v55, %v374_v63  ;;  %v997_v10 = vunpack.c.l.bf16 %v1074_v62 }
  0x35   :  { %v250_v8 = vadd.f32 %v1132_v7, %v179_v0  ;;  %v251_v9 = vadd.f32 %v1132_v7, %v180_v2  ;;  %v893_v11 = vpack.c.bf16 %v438_v6, %v438_v6  ;;  %v439_v12 = vsel %vm311_vm13, %v247_v59, %v375_v3  ;;  %v1080_v6 = vld [vmem:[%s1608_s0 + $0xb0] sm:$0xff]  }
  0x36   :  { %vm312_vm14 = vcmp.ge.f32.partialorder %v248_v4, 0.0  ;;  %v376_v13 = vmul.f32 0.2, %v248_v4  ;;  %v894_v14 = vpack.c.bf16 %v439_v12, %v439_v12  ;;  %vm313_vm15 = vcmp.ge.f32.partialorder %v249_v5, 0.0  ;;  %v1081_v12 = vld [vmem:[%s1608_s0 + $0xb8] sm:$0xff]  }
  0x37   :  { %v377_v15 = vmul.f32 0.2, %v249_v5  ;;  %vm314_vm1 = vcmp.ge.f32.partialorder %v250_v8, 0.0  ;;  %759 = vst.msk [vmem:[%s1611_s3 + $0x68] sm:$0xf] %vm732_vm0, %v893_v11  ;;  %vm315_vm2 = vcmp.ge.f32.partialorder %v251_v9, 0.0  ;;  %v181_v22 = vmul.f32 %v997_v10, %v1118_v1 }
  0x38   :  { %v440_v17 = vsel %vm312_vm14, %v248_v4, %v376_v13  ;;  %v378_v18 = vmul.f32 0.2, %v250_v8  ;;  %v379_v19 = vmul.f32 0.2, %v251_v9  ;;  %760 = vst.msk [vmem:[%s1611_s3 + $0x6c] sm:$0xf] %vm732_vm0, %v894_v14  ;;  %v998_v23 = vunpack.c.h.bf16 %v1074_v62 }
  0x39   :  { %v895_v20 = vpack.c.bf16 %v440_v17, %v440_v17  ;;  %v441_v21 = vsel %vm313_vm15, %v249_v5, %v377_v15  ;;  %v1001_v28 = vunpack.c.l.bf16 %v1075_v16  ;;  %v252_v32 = vadd.f32 %v1132_v7, %v181_v22  ;;  %v1079_v5 = vld [vmem:[%s1608_s0 + $0xa8] sm:$0xff]  }
  0x3a   :  { %v896_v25 = vpack.c.bf16 %v441_v21, %v441_v21  ;;  %v442_v26 = vsel %vm314_vm1, %v250_v8, %v378_v18  ;;  %v443_v27 = vsel %vm315_vm2, %v251_v9, %v379_v19  ;;  %v182_v33 = vmul.f32 %v998_v23, %v1118_v1 }
  0x3b   :  { %761 = vst.msk [vmem:[%s1611_s3 + $0x70] sm:$0xf] %vm732_vm0, %v895_v20  ;;  %v897_v30 = vpack.c.bf16 %v442_v26, %v442_v26  ;;  %v898_v31 = vpack.c.bf16 %v443_v27, %v443_v27  ;;  %v183_v34 = vmul.f32 %v1001_v28, %v1118_v1  ;;  %v1002_v35 = vunpack.c.h.bf16 %v1075_v16 }
  0x3c   :  { %762 = vst.msk [vmem:[%s1611_s3 + $0x74] sm:$0xf] %vm732_vm0, %v896_v25  ;;  %v1005_v36 = vunpack.c.l.bf16 %v1076_v24  ;;  %v1006_v37 = vunpack.c.h.bf16 %v1076_v24  ;;  %vm316_vm3 = vcmp.ge.f32.partialorder %v252_v32, 0.0  ;;  %v380_v38 = vmul.f32 0.2, %v252_v32 }
  0x3d   :  { %763 = vst.msk [vmem:[%s1611_s3 + $0x78] sm:$0xf] %vm732_vm0, %v897_v30  ;;  %764 = vst.msk [vmem:[%s1611_s3 + $0x7c] sm:$0xf] %vm732_vm0, %v898_v31  ;;  %v253_v39 = vadd.f32 %v1132_v7, %v182_v33  ;;  %v1009_v40 = vunpack.c.l.bf16 %v1359_v29  ;;  %v254_v41 = vadd.f32 %v1132_v7, %v183_v34  ;;  %v184_v42 = vmul.f32 %v1002_v35, %v1118_v1 }
  0x3e   :  { %v185_v43 = vmul.f32 %v1005_v36, %v1118_v1  ;;  %v186_v44 = vmul.f32 %v1006_v37, %v1118_v1  ;;  %v444_v45 = vsel %vm316_vm3, %v252_v32, %v380_v38  ;;  %v1010_v3 = vunpack.c.h.bf16 %v1359_v29 }
  0x3f   :  { %vm317_vm4 = vcmp.ge.f32.partialorder %v253_v39, 0.0  ;;  %v381_v46 = vmul.f32 0.2, %v253_v39  ;;  %v187_v47 = vmul.f32 %v1009_v40, %v1118_v1  ;;  %v899_v48 = vpack.c.bf16 %v444_v45, %v444_v45 }
  0x40   :  { %vm318_vm5 = vcmp.ge.f32.partialorder %v254_v41, 0.0  ;;  %v382_v49 = vmul.f32 0.2, %v254_v41  ;;  %v255_v50 = vadd.f32 %v1132_v7, %v184_v42  ;;  %v256_v52 = vadd.f32 %v1132_v7, %v185_v43 }
  0x41   :  { %v445_v51 = vsel %vm317_vm4, %v253_v39, %v381_v46  ;;  %v257_v53 = vadd.f32 %v1132_v7, %v186_v44  ;;  %v258_v54 = vadd.f32 %v1132_v7, %v187_v47  ;;  %765 = vst.msk [vmem:[%s1611_s3 + $0x80] sm:$0xf] %vm732_vm0, %v899_v48  ;;  %v1013_v4 = vunpack.c.l.bf16 %v1078_v58 }
  0x42   :  { %v900_v55 = vpack.c.bf16 %v445_v51, %v445_v51  ;;  %v446_v56 = vsel %vm318_vm5, %v254_v41, %v382_v49  ;;  %vm319_vm6 = vcmp.ge.f32.partialorder %v255_v50, 0.0  ;;  %v383_v57 = vmul.f32 0.2, %v255_v50  ;;  %v1082_v41 = vld [vmem:[%s1608_s0 + $0xc0] sm:$0xff]  }
  0x43   :  { %v901_v59 = vpack.c.bf16 %v446_v56, %v446_v56  ;;  %vm320_vm7 = vcmp.ge.f32.partialorder %v256_v52, 0.0  ;;  %v384_v60 = vmul.f32 0.2, %v256_v52  ;;  %vm321_vm8 = vcmp.ge.f32.partialorder %v257_v53, 0.0 }
  0x44   :  { %766 = vst.msk [vmem:[%s1611_s3 + $0x84] sm:$0xf] %vm732_vm0, %v900_v55  ;;  %v447_v61 = vsel %vm319_vm6, %v255_v50, %v383_v57  ;;  %v385_v62 = vmul.f32 0.2, %v257_v53  ;;  %vm322_vm9 = vcmp.ge.f32.partialorder %v258_v54, 0.0  ;;  %v1014_v11 = vunpack.c.h.bf16 %v1078_v58 }
  0x45   :  { %v386_v63 = vmul.f32 0.2, %v258_v54  ;;  %767 = vst.msk [vmem:[%s1611_s3 + $0x88] sm:$0xf] %vm732_vm0, %v901_v59  ;;  %v902_v0 = vpack.c.bf16 %v447_v61, %v447_v61  ;;  %v448_v2 = vsel %vm320_vm7, %v256_v52, %v384_v60  ;;  %v188_v15 = vmul.f32 %v1010_v3, %v1118_v1  ;;  %v1083_v52 = vld [vmem:[%s1608_s0 + $0xc8] sm:$0xff]  }
  0x46   :  { %v903_v8 = vpack.c.bf16 %v448_v2, %v448_v2  ;;  %v449_v9 = vsel %vm321_vm8, %v257_v53, %v385_v62  ;;  %v189_v16 = vmul.f32 %v1013_v4, %v1118_v1  ;;  %v190_v17 = vmul.f32 %v1014_v11, %v1118_v1 }
  0x47   :  { %v450_v10 = vsel %vm322_vm9, %v258_v54, %v386_v63  ;;  %768 = vst.msk [vmem:[%s1611_s3 + $0x8c] sm:$0xf] %vm732_vm0, %v902_v0  ;;  %v904_v13 = vpack.c.bf16 %v449_v9, %v449_v9  ;;  %v1017_v18 = vunpack.c.l.bf16 %v1079_v5  ;;  %v1018_v19 = vunpack.c.h.bf16 %v1079_v5  ;;  %v1084_v9 = vld [vmem:[%s1608_s0 + $0xd0] sm:$0xff]  }
  0x48   :  { %v905_v14 = vpack.c.bf16 %v450_v10, %v450_v10  ;;  %769 = vst.msk [vmem:[%s1611_s3 + $0x90] sm:$0xf] %vm732_vm0, %v903_v8  ;;  %v1021_v20 = vunpack.c.l.bf16 %v1080_v6  ;;  %v259_v21 = vadd.f32 %v1132_v7, %v188_v15  ;;  %v260_v22 = vadd.f32 %v1132_v7, %v189_v16 }
  0x49   :  { %770 = vst.msk [vmem:[%s1611_s3 + $0x94] sm:$0xf] %vm732_vm0, %v904_v13  ;;  %v1022_v23 = vunpack.c.h.bf16 %v1080_v6  ;;  %v1025_v24 = vunpack.c.l.bf16 %v1081_v12  ;;  %v261_v25 = vadd.f32 %v1132_v7, %v190_v17  ;;  %v191_v26 = vmul.f32 %v1017_v18, %v1118_v1 }
  0x4a   :  { %771 = vst.msk [vmem:[%s1611_s3 + $0x98] sm:$0xf] %vm732_vm0, %v905_v14  ;;  %v192_v27 = vmul.f32 %v1018_v19, %v1118_v1  ;;  %v193_v28 = vmul.f32 %v1021_v20, %v1118_v1  ;;  %vm323_vm10 = vcmp.ge.f32.partialorder %v259_v21, 0.0  ;;  %v387_v29 = vmul.f32 0.2, %v259_v21 }
  0x4b   :  { %vm324_vm11 = vcmp.ge.f32.partialorder %v260_v22, 0.0  ;;  %v388_v30 = vmul.f32 0.2, %v260_v22  ;;  %vm325_vm12 = vcmp.ge.f32.partialorder %v261_v25, 0.0  ;;  %v389_v31 = vmul.f32 0.2, %v261_v25 }
  0x4c   :  { %v262_v32 = vadd.f32 %v1132_v7, %v191_v26  ;;  %v263_v33 = vadd.f32 %v1132_v7, %v192_v27  ;;  %v451_v34 = vsel %vm323_vm10, %v259_v21, %v387_v29  ;;  %v264_v36 = vadd.f32 %v1132_v7, %v193_v28 }
  0x4d   :  { %v452_v35 = vsel %vm324_vm11, %v260_v22, %v388_v30  ;;  %v194_v37 = vmul.f32 %v1022_v23, %v1118_v1  ;;  %v906_v38 = vpack.c.bf16 %v451_v34, %v451_v34  ;;  %v453_v40 = vsel %vm325_vm12, %v261_v25, %v389_v31  ;;  %v1085_v23 = vld [vmem:[%s1608_s0 + $0xd8] sm:$0xff]   ;;  %v1086_v30 = vld [vmem:[%s1608_s0 + $0xe0] sm:$0xff]  }
  0x4e   :  { %v907_v39 = vpack.c.bf16 %v452_v35, %v452_v35  ;;  %vm326_vm13 = vcmp.ge.f32.partialorder %v262_v32, 0.0  ;;  %v908_v42 = vpack.c.bf16 %v453_v40, %v453_v40  ;;  %v390_v43 = vmul.f32 0.2, %v262_v32 }
  0x4f   :  { %vm327_vm14 = vcmp.ge.f32.partialorder %v263_v33, 0.0  ;;  %v391_v44 = vmul.f32 0.2, %v263_v33  ;;  %772 = vst.msk [vmem:[%s1611_s3 + $0x9c] sm:$0xf] %vm732_vm0, %v906_v38  ;;  %vm328_vm15 = vcmp.ge.f32.partialorder %v264_v36, 0.0  ;;  %v265_v46 = vadd.f32 %v1132_v7, %v194_v37 }
  0x50   :  { %773 = vst.msk [vmem:[%s1611_s3 + $0xa0] sm:$0xf] %vm732_vm0, %v907_v39  ;;  %v392_v45 = vmul.f32 0.2, %v264_v36  ;;  %v195_v47 = vmul.f32 %v1025_v24, %v1118_v1  ;;  %774 = vst.msk [vmem:[%s1611_s3 + $0xa4] sm:$0xf] %vm732_vm0, %v908_v42  ;;  %v454_v48 = vsel %vm326_vm13, %v262_v32, %v390_v43  ;;  %v1026_v50 = vunpack.c.h.bf16 %v1081_v12 }
  0x51   :  { %v455_v49 = vsel %vm327_vm14, %v263_v33, %v391_v44  ;;  %v1029_v51 = vunpack.c.l.bf16 %v1082_v41  ;;  %v909_v53 = vpack.c.bf16 %v454_v48, %v454_v48  ;;  %vm329_vm1 = vcmp.ge.f32.partialorder %v265_v46, 0.0  ;;  %v1087_v39 = vld [vmem:[%s1608_s0 + $0xe8] sm:$0xff]  }
  0x52   :  { %v910_v54 = vpack.c.bf16 %v455_v49, %v455_v49  ;;  %v456_v55 = vsel %vm328_vm15, %v264_v36, %v392_v45  ;;  %v393_v57 = vmul.f32 0.2, %v265_v46  ;;  %v266_v58 = vadd.f32 %v1132_v7, %v195_v47 }
  0x53   :  { %v911_v56 = vpack.c.bf16 %v456_v55, %v456_v55  ;;  %v196_v59 = vmul.f32 %v1026_v50, %v1118_v1  ;;  %775 = vst.msk [vmem:[%s1611_s3 + $0xa8] sm:$0xf] %vm732_vm0, %v909_v53  ;;  %v197_v60 = vmul.f32 %v1029_v51, %v1118_v1  ;;  %v1030_v61 = vunpack.c.h.bf16 %v1082_v41 }
  0x54   :  { %776 = vst.msk [vmem:[%s1611_s3 + $0xac] sm:$0xf] %vm732_vm0, %v910_v54  ;;  %v1033_v62 = vunpack.c.l.bf16 %v1083_v52  ;;  %v1034_v63 = vunpack.c.h.bf16 %v1083_v52  ;;  %v457_v0 = vsel %vm329_vm1, %v265_v46, %v393_v57  ;;  %vm330_vm2 = vcmp.ge.f32.partialorder %v266_v58, 0.0 }
  0x55   :  { %777 = vst.msk [vmem:[%s1611_s3 + $0xb0] sm:$0xf] %vm732_vm0, %v911_v56  ;;  %v394_v2 = vmul.f32 0.2, %v266_v58  ;;  %v267_v3 = vadd.f32 %v1132_v7, %v196_v59  ;;  %v912_v4 = vpack.c.bf16 %v457_v0, %v457_v0  ;;  %v268_v5 = vadd.f32 %v1132_v7, %v197_v60  ;;  %v1088_v0 = vld [vmem:[%s1608_s0 + $0xf0] sm:$0xff]  }
  0x56   :  { %v198_v6 = vmul.f32 %v1030_v61, %v1118_v1  ;;  %v199_v8 = vmul.f32 %v1033_v62, %v1118_v1  ;;  %v200_v12 = vmul.f32 %v1034_v63, %v1118_v1  ;;  %v1037_v19 = vunpack.c.l.bf16 %v1084_v9 }
  0x57   :  { %v458_v10 = vsel %vm330_vm2, %v266_v58, %v394_v2  ;;  %vm331_vm3 = vcmp.ge.f32.partialorder %v267_v3, 0.0  ;;  %v395_v11 = vmul.f32 0.2, %v267_v3  ;;  %778 = vst.msk [vmem:[%s1611_s3 + $0xb4] sm:$0xf] %vm732_vm0, %v912_v4  ;;  %vm332_vm4 = vcmp.ge.f32.partialorder %v268_v5, 0.0 }
  0x58   :  { %v913_v13 = vpack.c.bf16 %v458_v10, %v458_v10  ;;  %v396_v14 = vmul.f32 0.2, %v268_v5  ;;  %v269_v15 = vadd.f32 %v1132_v7, %v198_v6  ;;  %v270_v17 = vadd.f32 %v1132_v7, %v199_v8 }
  0x59   :  { %v459_v16 = vsel %vm331_vm3, %v267_v3, %v395_v11  ;;  %v271_v18 = vadd.f32 %v1132_v7, %v200_v12  ;;  %v201_v28 = vmul.f32 %v1037_v19, %v1118_v1  ;;  %v1038_v29 = vunpack.c.h.bf16 %v1084_v9 }
  0x5a   :  { %779 = vst.msk [vmem:[%s1611_s3 + $0xb8] sm:$0xf] %vm732_vm0, %v913_v13  ;;  %v914_v20 = vpack.c.bf16 %v459_v16, %v459_v16  ;;  %v460_v21 = vsel %vm332_vm4, %v268_v5, %v396_v14  ;;  %vm333_vm5 = vcmp.ge.f32.partialorder %v269_v15, 0.0  ;;  %v397_v22 = vmul.f32 0.2, %v269_v15  ;;  %v1089_v13 = vld [vmem:[%s1608_s0 + $0xf8] sm:$0xff]  }
  0x5b   :  { %v915_v24 = vpack.c.bf16 %v460_v21, %v460_v21  ;;  %vm334_vm6 = vcmp.ge.f32.partialorder %v270_v17, 0.0  ;;  %v398_v25 = vmul.f32 0.2, %v270_v17  ;;  %vm335_vm7 = vcmp.ge.f32.partialorder %v271_v18, 0.0 }
  0x5c   :  { %780 = vst.msk [vmem:[%s1611_s3 + $0xbc] sm:$0xf] %vm732_vm0, %v914_v20  ;;  %v461_v26 = vsel %vm333_vm5, %v269_v15, %v397_v22  ;;  %v399_v27 = vmul.f32 0.2, %v271_v18  ;;  %v1041_v33 = vunpack.c.l.bf16 %v1085_v23  ;;  %v1042_v34 = vunpack.c.h.bf16 %v1085_v23 }
  0x5d   :  { %781 = vst.msk [vmem:[%s1611_s3 + $0xc0] sm:$0xf] %vm732_vm0, %v915_v24  ;;  %v916_v31 = vpack.c.bf16 %v461_v26, %v461_v26  ;;  %v462_v32 = vsel %vm334_vm6, %v270_v17, %v398_v25  ;;  %v272_v37 = vadd.f32 %v1132_v7, %v201_v28  ;;  %v202_v38 = vmul.f32 %v1038_v29, %v1118_v1 }
  0x5e   :  { %v917_v35 = vpack.c.bf16 %v462_v32, %v462_v32  ;;  %v463_v36 = vsel %vm335_vm7, %v271_v18, %v399_v27  ;;  %v203_v41 = vmul.f32 %v1041_v33, %v1118_v1  ;;  %v204_v42 = vmul.f32 %v1042_v34, %v1118_v1  ;;  %v1090_v27 = vld [vmem:[%s1609_s1] ss:$0 sm:$0xff] }
  0x5f   :  { %782 = vst.msk [vmem:[%s1611_s3 + $0xc4] sm:$0xf] %vm732_vm0, %v916_v31  ;;  %v918_v40 = vpack.c.bf16 %v463_v36, %v463_v36  ;;  %v1045_v43 = vunpack.c.l.bf16 %v1086_v30  ;;  %vm336_vm8 = vcmp.ge.f32.partialorder %v272_v37, 0.0  ;;  %v400_v44 = vmul.f32 0.2, %v272_v37 }
  0x60   :  { %783 = vst.msk [vmem:[%s1611_s3 + $0xc8] sm:$0xf] %vm732_vm0, %v917_v35  ;;  %v273_v45 = vadd.f32 %v1132_v7, %v202_v38  ;;  %v1046_v46 = vunpack.c.h.bf16 %v1086_v30  ;;  %v274_v47 = vadd.f32 %v1132_v7, %v203_v41  ;;  %v275_v48 = vadd.f32 %v1132_v7, %v204_v42 }
  0x61   :  { %784 = vst.msk [vmem:[%s1611_s3 + $0xcc] sm:$0xf] %vm732_vm0, %v918_v40  ;;  %v205_v49 = vmul.f32 %v1045_v43, %v1118_v1  ;;  %v1049_v50 = vunpack.c.l.bf16 %v1087_v39  ;;  %v464_v51 = vsel %vm336_vm8, %v272_v37, %v400_v44  ;;  %v1050_v63 = vunpack.c.h.bf16 %v1087_v39 }
  0x62   :  { %vm337_vm9 = vcmp.ge.f32.partialorder %v273_v45, 0.0  ;;  %v401_v52 = vmul.f32 0.2, %v273_v45  ;;  %v206_v53 = vmul.f32 %v1046_v46, %v1118_v1  ;;  %v919_v54 = vpack.c.bf16 %v464_v51, %v464_v51 }
  0x63   :  { %vm338_vm10 = vcmp.ge.f32.partialorder %v274_v47, 0.0  ;;  %v402_v55 = vmul.f32 0.2, %v274_v47  ;;  %vm339_vm11 = vcmp.ge.f32.partialorder %v275_v48, 0.0  ;;  %v403_v57 = vmul.f32 0.2, %v275_v48 }
  0x64   :  { %v465_v56 = vsel %vm337_vm9, %v273_v45, %v401_v52  ;;  %v276_v58 = vadd.f32 %v1132_v7, %v205_v49  ;;  %v277_v59 = vadd.f32 %v1132_v7, %v206_v53  ;;  %785 = vst.msk [vmem:[%s1611_s3 + $0xd0] sm:$0xf] %vm732_vm0, %v919_v54  ;;  %v207_v62 = vmul.f32 %v1049_v50, %v1118_v1 }
  0x65   :  { %v920_v60 = vpack.c.bf16 %v465_v56, %v465_v56  ;;  %v466_v61 = vsel %vm338_vm10, %v274_v47, %v402_v55  ;;  %v467_v3 = vsel %vm339_vm11, %v275_v48, %v403_v57  ;;  %v208_v10 = vmul.f32 %v1050_v63, %v1118_v1 }
  0x66   :  { %v921_v2 = vpack.c.bf16 %v466_v61, %v466_v61  ;;  %vm340_vm12 = vcmp.ge.f32.partialorder %v276_v58, 0.0  ;;  %v404_v4 = vmul.f32 0.2, %v276_v58  ;;  %v922_v5 = vpack.c.bf16 %v467_v3, %v467_v3 }
  0x67   :  { %786 = vst.msk [vmem:[%s1611_s3 + $0xd4] sm:$0xf] %vm732_vm0, %v920_v60  ;;  %vm341_vm13 = vcmp.ge.f32.partialorder %v277_v59, 0.0  ;;  %v405_v6 = vmul.f32 0.2, %v277_v59  ;;  %v278_v8 = vadd.f32 %v1132_v7, %v207_v62  ;;  %v1053_v11 = vunpack.c.l.bf16 %v1088_v0 }
  0x68   :  { %787 = vst.msk [vmem:[%s1611_s3 + $0xd8] sm:$0xf] %vm732_vm0, %v921_v2  ;;  %v468_v9 = vsel %vm340_vm12, %v276_v58, %v404_v4  ;;  %v1054_v12 = vunpack.c.h.bf16 %v1088_v0  ;;  %788 = vst.msk [vmem:[%s1611_s3 + $0xdc] sm:$0xf] %vm732_vm0, %v922_v5  ;;  %v279_v18 = vadd.f32 %v1132_v7, %v208_v10  ;;  %v1057_v22 = vunpack.c.l.bf16 %v1089_v13 }
  0x69   :  { %v923_v14 = vpack.c.bf16 %v468_v9, %v468_v9  ;;  %v469_v15 = vsel %vm341_vm13, %v277_v59, %v405_v6  ;;  %vm342_vm14 = vcmp.ge.f32.partialorder %v278_v8, 0.0  ;;  %v406_v16 = vmul.f32 0.2, %v278_v8 }
  0x6a   :  { %v924_v17 = vpack.c.bf16 %v469_v15, %v469_v15  ;;  %v209_v19 = vmul.f32 %v1053_v11, %v1118_v1  ;;  %v210_v20 = vmul.f32 %v1054_v12, %v1118_v1  ;;  %v1058_v23 = vunpack.c.h.bf16 %v1089_v13 }
  0x6b   :  { %789 = vst.msk [vmem:[%s1611_s3 + $0xe0] sm:$0xf] %vm732_vm0, %v923_v14  ;;  %v470_v21 = vsel %vm342_vm14, %v278_v8, %v406_v16  ;;  %vm343_vm15 = vcmp.ge.f32.partialorder %v279_v18, 0.0  ;;  %v407_v25 = vmul.f32 0.2, %v279_v18  ;;  %v211_v28 = vmul.f32 %v1090_v27, %v1057_v22 }
  0x6c   :  { %790 = vst.msk [vmem:[%s1611_s3 + $0xe4] sm:$0xf] %vm732_vm0, %v924_v17  ;;  %v925_v24 = vpack.c.bf16 %v470_v21, %v470_v21  ;;  %v280_v26 = vadd.f32 %v1132_v7, %v209_v19  ;;  %v281_v1 = vadd.f32 %v1132_v7, %v210_v20  ;;  %v212_v29 = vmul.f32 %v1090_v27, %v1058_v23  ;;  %v1091_v7 = vld [vmem:[%s1610_s2] ss:$0 sm:$0xff] }
  0x6d   :  { %v471_v30 = vsel %vm343_vm15, %v279_v18, %v407_v25  ;;  %v282_v34 = vadd.f32 %v1091_v7, %v211_v28 }
  0x6e   :  { %791 = vst.msk [vmem:[%s1611_s3 + $0xe8] sm:$0xf] %vm732_vm0, %v925_v24  ;;  %vm344_vm1 = vcmp.ge.f32.partialorder %v280_v26, 0.0  ;;  %v408_v31 = vmul.f32 0.2, %v280_v26  ;;  %v926_v32 = vpack.c.bf16 %v471_v30, %v471_v30  ;;  %vm345_vm2 = vcmp.ge.f32.partialorder %v281_v1, 0.0 }
  0x6f   :  { %v409_v33 = vmul.f32 0.2, %v281_v1  ;;  %v283_v36 = vadd.f32 %v1091_v7, %v212_v29  ;;  %vm346_vm3 = vcmp.ge.f32.partialorder %v282_v34, 0.0  ;;  %v410_v39 = vmul.f32 0.2, %v282_v34 }
  0x70   :  { %v472_v35 = vsel %vm344_vm1, %v280_v26, %v408_v31  ;;  %792 = vst.msk [vmem:[%s1611_s3 + $0xec] sm:$0xf] %vm732_vm0, %v926_v32 }
  0x71   :  { %v927_v37 = vpack.c.bf16 %v472_v35, %v472_v35  ;;  %v473_v38 = vsel %vm345_vm2, %v281_v1, %v409_v33  ;;  %vm347_vm4 = vcmp.ge.f32.partialorder %v283_v36, 0.0  ;;  %v411_v41 = vmul.f32 0.2, %v283_v36 }
  0x72   :  { %v928_v40 = vpack.c.bf16 %v473_v38, %v473_v38  ;;  %v474_v42 = vsel %vm346_vm3, %v282_v34, %v410_v39 }
  0x73   :  { %793 = vst.msk [vmem:[%s1611_s3 + $0xf0] sm:$0xf] %vm732_vm0, %v927_v37  ;;  %v929_v43 = vpack.c.bf16 %v474_v42, %v474_v42  ;;  %v475_v44 = vsel %vm347_vm4, %v283_v36, %v411_v41 }
  0x74   :  { %794 = vst.msk [vmem:[%s1611_s3 + $0xf4] sm:$0xf] %vm732_vm0, %v928_v40  ;;  %v930_v45 = vpack.c.bf16 %v475_v44, %v475_v44 }
  0x75   :  { %795 = vst.msk [vmem:[%s1611_s3 + $0xf8] sm:$0xf] %vm732_vm0, %v929_v43 }
  0x76   :  { %796 = vst.msk [vmem:[%s1611_s3 + $0xfc] sm:$0xf] %vm732_vm0, %v930_v45 }

// kernel: discriminator_forward.11
= control target key start
LH: loop header
LB: loop body
LE: loop exit
PB: predicated region body
PF: predicated region fallthrough
CT: control target
= control target key end

     0   :  { %vm336_vm0 = vcmask 261120   ;;  %vm494_vm1 = vcmask 257024   ;;  %vm374_vm2 = vcmask 253952   ;;  %s965_s1 = inlined_call_operand.vmem [shape: bf16[256,32], index: 1, kind: input, shape index: {}]   ;;  %s966_s0 = inlined_call_operand.vmem [shape: bf16[128,256], index: 0, kind: input, shape index: {}]   ;;  %s967_s2 = inlined_call_operand.vmem [shape: bf16[128,32], index: 2, kind: output, shape index: {0}]   ;;  %s968_s3 = inlined_call_operand.vmem [shape: f32[1,1,32], index: 3, kind: output, shape index: {1}]   ;;  %s969_s4 = inlined_call_operand.vmem [shape: f32[1,1,32], index: 4, kind: output, shape index: {2}]  }
   0x1   :  { %v667_v0 = vld [vmem:[%s965_s1 + $0x40] sm:$0xff]   ;;  %v669_v2 = vld [vmem:[%s965_s1 + $0x48] sm:$0xff]   ;;  %v671_v4 = vld [vmem:[%s965_s1 + $0x50] sm:$0xff]  }
   0x2   :  { %v668_v1 = vld [vmem:[%s965_s1] sm:$0xff]   ;;  %587 = vmatprep.subr.bf16.mxu0 %v667_v0  ;;  %651 = vmatprep.subr.bf16.mxu1 %v667_v0  ;;  %v670_v3 = vld [vmem:[%s965_s1 + $0x8] sm:$0xff]   ;;  %v672_v5 = vld [vmem:[%s965_s1 + $0x10] sm:$0xff]  }
   0x3   :  { %588 = vmatpush3.bf16.msra.mxu0 %v668_v1  ;;  %659 = vmatpush3.bf16.msra.mxu1 %v668_v1  ;;  %v673_v6 = vld [vmem:[%s965_s1 + $0x58] sm:$0xff]   ;;  %v675_v8 = vld [vmem:[%s965_s1 + $0x60] sm:$0xff]   ;;  %v677_v10 = vld [vmem:[%s965_s1 + $0x68] sm:$0xff]  }
   0x4   :  { %589 = vmatprep.subr.bf16.mxu0 %v669_v2  ;;  %652 = vmatprep.subr.bf16.mxu1 %v669_v2  ;;  %v674_v7 = vld [vmem:[%s965_s1 + $0x18] sm:$0xff]   ;;  %v676_v9 = vld [vmem:[%s965_s1 + $0x20] sm:$0xff]   ;;  %v678_v12 = vld [vmem:[%s965_s1 + $0x28] sm:$0xff]  }
   0x5   :  { %v685_v11 = vld [vmem:[%s966_s0 + $0x4] ss:$8 sps:$4 sm:$0xff]   ;;  %v679_v14 = vld [vmem:[%s965_s1 + $0x70] sm:$0xff]   ;;  %v681_v16 = vld [vmem:[%s965_s1 + $0x78] sm:$0xff]  }
   0x6   :  { %v691_v13 = vld [vmem:[%s966_s0 + $0x44] ss:$8 sps:$4 sm:$0xff]   ;;  %271 = vmatprep.mubr.bf16.mxu0 %v685_v11  ;;  %v680_v15 = vld [vmem:[%s965_s1 + $0x30] sm:$0xff]   ;;  %v682_v17 = vld [vmem:[%s965_s1 + $0x38] sm:$0xff]  }
   0x7   :  { %590 = vmatpush3.bf16.msra.mxu0 %v670_v3  ;;  %660 = vmatpush3.bf16.msra.mxu1 %v670_v3  ;;  %v683_v18 = vld [vmem:[%s966_s0] ss:$8 sps:$4 sm:$0xff]   ;;  %v686_v20 = vld [vmem:[%s966_s0 + $0x14] ss:$8 sps:$4 sm:$0xff]   ;;  %v688_v22 = vld [vmem:[%s966_s0 + $0x10] ss:$8 sps:$4 sm:$0xff]  }
   0x8   :  { %591 = vmatprep.subr.bf16.mxu0 %v671_v4  ;;  %653 = vmatprep.subr.bf16.mxu1 %v671_v4  ;;  %v689_v19 = vld [vmem:[%s966_s0 + $0x40] ss:$8 sps:$4 sm:$0xff]   ;;  %v695_v21 = vld [vmem:[%s966_s0 + $0x54] ss:$8 sps:$4 sm:$0xff]   ;;  %v697_v23 = vld [vmem:[%s966_s0 + $0x50] ss:$8 sps:$4 sm:$0xff]  }
   0x9   :  { %303 = vmatprep.mubr.bf16.mxu1 %v691_v13  ;;  %v692_v24 = vld [vmem:[%s966_s0 + $0x24] ss:$8 sps:$4 sm:$0xff]   ;;  %v694_v26 = vld [vmem:[%s966_s0 + $0x20] ss:$8 sps:$4 sm:$0xff]   ;;  %v698_v28 = vld [vmem:[%s966_s0 + $0x34] ss:$8 sps:$4 sm:$0xff]  }
   0xa   :  { %v701_v25 = vld [vmem:[%s966_s0 + $0x64] ss:$8 sps:$4 sm:$0xff]   ;;  %v703_v27 = vld [vmem:[%s966_s0 + $0x60] ss:$8 sps:$4 sm:$0xff]   ;;  %v704_v29 = vld [vmem:[%s966_s0 + $0x74] ss:$8 sps:$4 sm:$0xff]  }
   0xb   :  { %592 = vmatpush3.bf16.msra.mxu0 %v672_v5  ;;  %661 = vmatpush3.bf16.msra.mxu1 %v672_v5  ;;  %v700_v30 = vld [vmem:[%s966_s0 + $0x30] ss:$8 sps:$4 sm:$0xff]  }
   0xc   :  { %593 = vmatprep.subr.bf16.mxu0 %v673_v6  ;;  %654 = vmatprep.subr.bf16.mxu1 %v673_v6  ;;  %v706_v31 = vld [vmem:[%s966_s0 + $0x70] ss:$8 sps:$4 sm:$0xff]  }
   0xf   :  { %594 = vmatpush3.bf16.msra.mxu0 %v674_v7  ;;  %662 = vmatpush3.bf16.msra.mxu1 %v674_v7 }
  0x10   :  { %595 = vmatprep.subr.bf16.mxu0 %v675_v8  ;;  %655 = vmatprep.subr.bf16.mxu1 %v675_v8 }
  0x13   :  { %596 = vmatpush3.bf16.msra.mxu0 %v676_v9  ;;  %663 = vmatpush3.bf16.msra.mxu1 %v676_v9 }
  0x14   :  { %597 = vmatprep.subr.bf16.mxu0 %v677_v10  ;;  %656 = vmatprep.subr.bf16.mxu1 %v677_v10 }
  0x17   :  { %598 = vmatpush3.bf16.msra.mxu0 %v678_v12  ;;  %664 = vmatpush3.bf16.msra.mxu1 %v678_v12 }
  0x18   :  { %599 = vmatprep.subr.bf16.mxu0 %v679_v14  ;;  %657 = vmatprep.subr.bf16.mxu1 %v679_v14 }
  0x1b   :  { %600 = vmatpush3.bf16.msra.mxu0 %v680_v15  ;;  %665 = vmatpush3.bf16.msra.mxu1 %v680_v15 }
  0x1c   :  { %601 = vmatprep.subr.bf16.mxu0 %v681_v16  ;;  %658 = vmatprep.subr.bf16.mxu1 %v681_v16 }
  0x1f   :  { %602 = vmatpush3.bf16.msra.mxu0 %v682_v17  ;;  %666 = vmatpush3.bf16.msra.mxu1 %v682_v17 }
  0x22   :  { %272 = vmatmul.mubr.bf16.vlgmr.msra.gmra.mrb[0].mxu0 %v683_v18  ;;  %304 = vmatmul.mubr.bf16.vlgmr.msra.gmra.mrb[0].mxu1 %v689_v19 }
  0x23   :  { %279 = vmatprep.mubr.bf16.mxu0 %v686_v20  ;;  %311 = vmatprep.mubr.bf16.mxu1 %v695_v21 }
  0x2a   :  { %280 = vmatmul.mubr.bf16.gmra.mrb[4].mxu0 %v688_v22  ;;  %312 = vmatmul.mubr.bf16.gmra.mrb[4].mxu1 %v697_v23 }
  0x2b   :  { %287 = vmatprep.mubr.bf16.mxu0 %v692_v24  ;;  %319 = vmatprep.mubr.bf16.mxu1 %v701_v25 }
  0x32   :  { %288 = vmatmul.mubr.bf16.gmra.mrb[8].mxu0 %v694_v26  ;;  %320 = vmatmul.mubr.bf16.gmra.mrb[8].mxu1 %v703_v27 }
  0x33   :  { %295 = vmatprep.mubr.bf16.mxu0 %v698_v28  ;;  %327 = vmatprep.mubr.bf16.mxu1 %v704_v29 }
  0x3a   :  { %296 = vmatmul.mubr.bf16.gmra.mrb[12].mxu0 %v700_v30  ;;  %328 = vmatmul.mubr.bf16.gmra.mrb[12].mxu1 %v706_v31 }
  0xf5   :  { %v603_v32 = vpop.f32.mrb[0].mxu0  ;;  %v627_v33 = vpop.f32.mrb[0].mxu1 }
  0xf6   :  { %v604_v34 = vpop.f32.mrb[1].mxu0  ;;  %v628_v35 = vpop.f32.mrb[1].mxu1 }
  0xf7   :  { %v605_v36 = vadd.f32 %v604_v34, %v603_v32  ;;  %v606_v37 = vpop.f32.mrb[2].mxu0  ;;  %v828_v38 = vadd.f32 %v628_v35, %v627_v33  ;;  %v630_v39 = vpop.f32.mrb[2].mxu1 }
  0xf8   :  { %v607_v40 = vpop.f32.mrb[3].mxu0  ;;  %v631_v41 = vpop.f32.mrb[3].mxu1 }
  0xf9   :  { %v376_v42 = vmul.f32 %v605_v36, %v605_v36  ;;  %v571_v43 = vpack.c.bf16 %v605_v36, %v605_v36  ;;  %v608_v44 = vadd.f32 %v607_v40, %v606_v37  ;;  %v579_v45 = vpack.c.bf16 %v828_v38, %v828_v38 }
  0xfa   :  { %v832_v46 = vadd.f32 %v631_v41, %v630_v39  ;;  %v337_v47 = vsel %vm336_vm0, %v605_v36, 0.0 }
  0xfb   :  { %495 = vst.msk [vmem:[%s967_s2] sm:$0xf] %vm494_vm1, %v571_v43  ;;  %v338_v48 = vsel %vm336_vm0, %v608_v44, 0.0  ;;  %v377_v49 = vmul.f32 %v608_v44, %v608_v44  ;;  %v572_v50 = vpack.c.bf16 %v608_v44, %v608_v44  ;;  %503 = vst.msk [vmem:[%s967_s2 + $0x20] sm:$0xf] %vm494_vm1, %v579_v45  ;;  %v392_v52 = vsel %vm336_vm0, %v376_v42, 0.0 }
  0xfc   :  { %v339_v51 = vadd.f32 %v338_v48, %v337_v47  ;;  %v580_v55 = vpack.c.bf16 %v832_v46, %v832_v46 }
  0xfd   :  { %v393_v53 = vsel %vm336_vm0, %v377_v49, 0.0  ;;  %496 = vst.msk [vmem:[%s967_s2 + $0x4] sm:$0xf] %vm494_vm1, %v572_v50  ;;  %v609_v54 = vpop.f32.mrb[4].mxu0  ;;  %v633_v56 = vpop.f32.mrb[4].mxu1 }
  0xfe   :  { %v394_v57 = vadd.f32 %v393_v53, %v392_v52  ;;  %v610_v58 = vpop.f32.mrb[5].mxu0  ;;  %v634_v59 = vpop.f32.mrb[5].mxu1  ;;  %504 = vst.msk [vmem:[%s967_s2 + $0x24] sm:$0xf] %vm494_vm1, %v580_v55 }
  0xff   :  { %v611_v60 = vadd.f32 %v610_v58, %v609_v54  ;;  %v612_v61 = vpop.f32.mrb[6].mxu0  ;;  %v856_v62 = vadd.f32 %v634_v59, %v633_v56  ;;  %v636_v63 = vpop.f32.mrb[6].mxu1 }
 0x100   :  { %v613_v0 = vpop.f32.mrb[7].mxu0  ;;  %v637_v1 = vpop.f32.mrb[7].mxu1 }
 0x101   :  { %v340_v2 = vsel %vm336_vm0, %v611_v60, 0.0  ;;  %v378_v3 = vmul.f32 %v611_v60, %v611_v60  ;;  %v573_v4 = vpack.c.bf16 %v611_v60, %v611_v60  ;;  %v614_v5 = vadd.f32 %v613_v0, %v612_v61 }
 0x102   :  { %v341_v6 = vadd.f32 %v340_v2, %v339_v51  ;;  %v581_v7 = vpack.c.bf16 %v856_v62, %v856_v62  ;;  %v871_v14 = vadd.f32 %v637_v1, %v636_v63  ;;  %v384_v60 = vmul.f32 %v828_v38, %v828_v38 }
 0x103   :  { %v395_v8 = vsel %vm336_vm0, %v378_v3, 0.0  ;;  %497 = vst.msk [vmem:[%s967_s2 + $0x8] sm:$0xf] %vm494_vm1, %v573_v4  ;;  %v342_v9 = vsel %vm336_vm0, %v614_v5, 0.0  ;;  %v379_v10 = vmul.f32 %v614_v5, %v614_v5  ;;  %v574_v11 = vpack.c.bf16 %v614_v5, %v614_v5 }
 0x104   :  { %v396_v12 = vadd.f32 %v395_v8, %v394_v57  ;;  %v343_v13 = vadd.f32 %v342_v9, %v341_v6  ;;  %505 = vst.msk [vmem:[%s967_s2 + $0x28] sm:$0xf] %vm494_vm1, %v581_v7  ;;  %v582_v20 = vpack.c.bf16 %v871_v14, %v871_v14  ;;  %v352_v7 = vsel %vm336_vm0, %v828_v38, 0.0 }
 0x105   :  { %v397_v15 = vsel %vm336_vm0, %v379_v10, 0.0  ;;  %498 = vst.msk [vmem:[%s967_s2 + $0xc] sm:$0xf] %vm494_vm1, %v574_v11  ;;  %v615_v16 = vpop.f32.mrb[8].mxu0  ;;  %v639_v17 = vpop.f32.mrb[8].mxu1  ;;  %v385_v8 = vmul.f32 %v832_v46, %v832_v46  ;;  %v386_v38 = vmul.f32 %v856_v62, %v856_v62 }
 0x106   :  { %v398_v18 = vadd.f32 %v397_v15, %v396_v12  ;;  %v616_v19 = vpop.f32.mrb[9].mxu0  ;;  %v640_v21 = vpop.f32.mrb[9].mxu1  ;;  %506 = vst.msk [vmem:[%s967_s2 + $0x2c] sm:$0xf] %vm494_vm1, %v582_v20  ;;  %v407_v12 = vsel %vm336_vm0, %v384_v60, 0.0  ;;  %v387_v20 = vmul.f32 %v871_v14, %v871_v14 }
 0x107   :  { %v617_v22 = vadd.f32 %v616_v19, %v615_v16  ;;  %v618_v23 = vpop.f32.mrb[10].mxu0  ;;  %v880_v24 = vadd.f32 %v640_v21, %v639_v17  ;;  %v642_v25 = vpop.f32.mrb[10].mxu1  ;;  %v356_v19 = vsel %vm336_vm0, %v856_v62, 0.0 }
 0x108   :  { %v619_v26 = vpop.f32.mrb[11].mxu0  ;;  %v643_v27 = vpop.f32.mrb[11].mxu1 }
 0x109   :  { %v344_v28 = vsel %vm336_vm0, %v617_v22, 0.0  ;;  %v380_v29 = vmul.f32 %v617_v22, %v617_v22  ;;  %v575_v30 = vpack.c.bf16 %v617_v22, %v617_v22  ;;  %v620_v31 = vadd.f32 %v619_v26, %v618_v23 }
 0x10a   :  { %v345_v32 = vadd.f32 %v344_v28, %v343_v13  ;;  %v583_v33 = vpack.c.bf16 %v880_v24, %v880_v24  ;;  %v644_v41 = vadd.f32 %v643_v27, %v642_v25  ;;  %v354_v13 = vsel %vm336_vm0, %v832_v46, 0.0 }
 0x10b   :  { %v399_v34 = vsel %vm336_vm0, %v380_v29, 0.0  ;;  %499 = vst.msk [vmem:[%s967_s2 + $0x10] sm:$0xf] %vm494_vm1, %v575_v30  ;;  %v346_v35 = vsel %vm336_vm0, %v620_v31, 0.0  ;;  %v381_v36 = vmul.f32 %v620_v31, %v620_v31  ;;  %v576_v37 = vpack.c.bf16 %v620_v31, %v620_v31 }
 0x10c   :  { %v400_v39 = vadd.f32 %v399_v34, %v398_v18  ;;  %v347_v40 = vadd.f32 %v346_v35, %v345_v32  ;;  %507 = vst.msk [vmem:[%s967_s2 + $0x30] sm:$0xf] %vm494_vm1, %v583_v33  ;;  %v584_v48 = vpack.c.bf16 %v644_v41, %v644_v41  ;;  %v409_v18 = vsel %vm336_vm0, %v385_v8, 0.0 }
 0x10d   :  { %v401_v42 = vsel %vm336_vm0, %v381_v36, 0.0  ;;  %500 = vst.msk [vmem:[%s967_s2 + $0x14] sm:$0xf] %vm494_vm1, %v576_v37  ;;  %v621_v43 = vpop.f32.mrb[12].mxu0  ;;  %v645_v44 = vpop.f32.mrb[12].mxu1  ;;  %v411_v22 = vsel %vm336_vm0, %v386_v38, 0.0  ;;  %v388_v25 = vmul.f32 %v880_v24, %v880_v24  ;;  %v389_v29 = vmul.f32 %v644_v41, %v644_v41 }
 0x10e   :  { %v402_v45 = vadd.f32 %v401_v42, %v400_v39  ;;  %v622_v47 = vpop.f32.mrb[13].mxu0  ;;  %v646_v49 = vpop.f32.mrb[13].mxu1  ;;  %508 = vst.msk [vmem:[%s967_s2 + $0x34] sm:$0xf] %vm494_vm1, %v584_v48  ;;  %v358_v23 = vsel %vm336_vm0, %v871_v14, 0.0  ;;  %v413_v27 = vsel %vm336_vm0, %v387_v20, 0.0 }
 0x10f   :  { %v623_v50 = vadd.f32 %v622_v47, %v621_v43  ;;  %v624_v51 = vpop.f32.mrb[14].mxu0  ;;  %v647_v52 = vadd.f32 %v646_v49, %v645_v44  ;;  %v648_v53 = vpop.f32.mrb[14].mxu1  ;;  %v360_v28 = vsel %vm336_vm0, %v880_v24, 0.0  ;;  %v415_v33 = vsel %vm336_vm0, %v388_v25, 0.0 }
 0x110   :  { %v625_v54 = vpop.f32.mrb[15].mxu0  ;;  %v649_v55 = vpop.f32.mrb[15].mxu1  ;;  %v362_v34 = vsel %vm336_vm0, %v644_v41, 0.0  ;;  %v417_v37 = vsel %vm336_vm0, %v389_v29, 0.0 }
 0x111   :  { %v348_v56 = vsel %vm336_vm0, %v623_v50, 0.0  ;;  %v382_v57 = vmul.f32 %v623_v50, %v623_v50  ;;  %v577_v58 = vpack.c.bf16 %v623_v50, %v623_v50  ;;  %v626_v59 = vadd.f32 %v625_v54, %v624_v51 }
 0x112   :  { %v349_v61 = vadd.f32 %v348_v56, %v347_v40  ;;  %v585_v63 = vpack.c.bf16 %v647_v52, %v647_v52  ;;  %v650_v6 = vadd.f32 %v649_v55, %v648_v53  ;;  %v390_v30 = vmul.f32 %v647_v52, %v647_v52 }
 0x113   :  { %v403_v0 = vsel %vm336_vm0, %v382_v57, 0.0  ;;  %501 = vst.msk [vmem:[%s967_s2 + $0x18] sm:$0xf] %vm494_vm1, %v577_v58  ;;  %v350_v1 = vsel %vm336_vm0, %v626_v59, 0.0  ;;  %v383_v2 = vmul.f32 %v626_v59, %v626_v59  ;;  %v578_v3 = vpack.c.bf16 %v626_v59, %v626_v59 }
 0x114   :  { %v404_v4 = vadd.f32 %v403_v0, %v402_v45  ;;  %v351_v5 = vadd.f32 %v350_v1, %v349_v61  ;;  %509 = vst.msk [vmem:[%s967_s2 + $0x38] sm:$0xf] %vm494_vm1, %v585_v63  ;;  %v586_v15 = vpack.c.bf16 %v650_v6, %v650_v6  ;;  %v364_v14 = vsel %vm336_vm0, %v647_v52, 0.0 }
 0x115   :  { %v405_v9 = vsel %vm336_vm0, %v383_v2, 0.0  ;;  %502 = vst.msk [vmem:[%s967_s2 + $0x1c] sm:$0xf] %vm494_vm1, %v578_v3  ;;  %v419_v39 = vsel %vm336_vm0, %v390_v30, 0.0  ;;  %v391_v40 = vmul.f32 %v650_v6, %v650_v6  ;;  %v366_v24 = vsel %vm336_vm0, %v650_v6, 0.0 }
 0x116   :  { %v353_v10 = vadd.f32 %v352_v7, %v351_v5  ;;  %v406_v11 = vadd.f32 %v405_v9, %v404_v4  ;;  %510 = vst.msk [vmem:[%s967_s2 + $0x3c] sm:$0xf] %vm494_vm1, %v586_v15 }
 0x117   :  { %v421_v47 = vsel %vm336_vm0, %v391_v40, 0.0 }
 0x118   :  { %v355_v16 = vadd.f32 %v354_v13, %v353_v10  ;;  %v408_v17 = vadd.f32 %v407_v12, %v406_v11 }
 0x11a   :  { %v410_v46 = vadd.f32 %v409_v18, %v408_v17  ;;  %v357_v21 = vadd.f32 %v356_v19, %v355_v16 }
 0x11c   :  { %v359_v26 = vadd.f32 %v358_v23, %v357_v21  ;;  %v412_v62 = vadd.f32 %v411_v22, %v410_v46 }
 0x11e   :  { %v361_v31 = vadd.f32 %v360_v28, %v359_v26  ;;  %v414_v32 = vadd.f32 %v413_v27, %v412_v62 }
 0x120   :  { %v416_v35 = vadd.f32 %v415_v33, %v414_v32  ;;  %v363_v36 = vadd.f32 %v362_v34, %v361_v31 }
 0x122   :  { %v418_v42 = vadd.f32 %v417_v37, %v416_v35  ;;  %v365_v43 = vadd.f32 %v364_v14, %v363_v36 }
 0x124   :  { %v420_v44 = vadd.f32 %v419_v39, %v418_v42  ;;  %v367_v45 = vadd.f32 %v366_v24, %v365_v43 }
 0x126   :  { %v368_v48 = vrot.slane %v367_v45, 4  ;;  %v422_v49 = vadd.f32 %v421_v47, %v420_v44 }
 0x128   :  { %v369_v41 = vadd.f32 %v368_v48, %v367_v45  ;;  %v423_v50 = vrot.slane %v422_v49, 4 }
 0x12a   :  { %v370_v51 = vrot.slane %v369_v41, 2  ;;  %v424_v52 = vadd.f32 %v423_v50, %v422_v49 }
 0x12c   :  { %v371_v53 = vadd.f32 %v370_v51, %v369_v41  ;;  %v425_v54 = vrot.slane %v424_v52, 2 }
 0x12e   :  { %v372_v55 = vrot.slane %v371_v53, 1  ;;  %v426_v56 = vadd.f32 %v425_v54, %v424_v52 }
 0x130   :  { %v373_v57 = vadd.f32 %v372_v55, %v371_v53  ;;  %v427_v58 = vrot.slane %v426_v56, 1 }
 0x132   :  { %375 = vst.msk [vmem:[%s968_s3] sm:$0x1] %vm374_vm2, %v373_v57  ;;  %v428_v59 = vadd.f32 %v427_v58, %v426_v56 }
 0x134   :  { %429 = vst.msk [vmem:[%s969_s4] sm:$0x1] %vm374_vm2, %v428_v59 }

// kernel: discriminator_forward.12
= control target key start
LH: loop header
LB: loop body
LE: loop exit
PB: predicated region body
PF: predicated region fallthrough
CT: control target
= control target key end

     0   :  { %vm204_vm0 = vcmask 257024   ;;  %s448_s0 = inlined_call_operand.vmem [shape: bf16[128,32], index: 0, kind: input, shape index: {}]   ;;  %s449_s1 = inlined_call_operand.vmem [shape: f32[1,32], index: 1, kind: input, shape index: {}]   ;;  %s450_s2 = inlined_call_operand.vmem [shape: f32[1,32], index: 2, kind: input, shape index: {}]   ;;  %s451_s3 = inlined_call_operand.vmem [shape: bf16[128,32], index: 3, kind: output, shape index: {}]  }
   0x1   :  { %v260_v0 = vld [vmem:[%s448_s0] sm:$0xff]   ;;  %v291_v4 = vld [vmem:[%s448_s0 + $0x8] sm:$0xff]   ;;  %v292_v5 = vld [vmem:[%s448_s0 + $0x10] sm:$0xff]  }
   0x2   :  { %v324_v1 = vld [vmem:[%s449_s1] ss:$0 sm:$0xff]  ;;  %v261_v2 = vunpack.c.l.bf16 %v260_v0  ;;  %v262_v3 = vunpack.c.h.bf16 %v260_v0  ;;  %v293_v6 = vld [vmem:[%s448_s0 + $0x18] sm:$0xff]   ;;  %v265_v8 = vunpack.c.l.bf16 %v291_v4  ;;  %v266_v9 = vunpack.c.h.bf16 %v291_v4  ;;  %v295_v40 = vld [vmem:[%s448_s0 + $0x28] sm:$0xff]  }
   0x3   :  { %v338_v7 = vld [vmem:[%s450_s2] ss:$0 sm:$0xff]  ;;  %v269_v10 = vunpack.c.l.bf16 %v292_v5  ;;  %v270_v11 = vunpack.c.h.bf16 %v292_v5  ;;  %v273_v14 = vunpack.c.l.bf16 %v293_v6  ;;  %v274_v15 = vunpack.c.h.bf16 %v293_v6  ;;  %v296_v52 = vld [vmem:[%s448_s0 + $0x30] sm:$0xff]  }
   0x4   :  { %v53_v12 = vmul.f32 %v261_v2, %v324_v1  ;;  %v54_v13 = vmul.f32 %v262_v3, %v324_v1  ;;  %v55_v16 = vmul.f32 %v265_v8, %v324_v1  ;;  %v56_v17 = vmul.f32 %v266_v9, %v324_v1  ;;  %v294_v39 = vld [vmem:[%s448_s0 + $0x20] sm:$0xff]  }
   0x5   :  { %v57_v18 = vmul.f32 %v269_v10, %v324_v1  ;;  %v58_v19 = vmul.f32 %v270_v11, %v324_v1  ;;  %v59_v22 = vmul.f32 %v273_v14, %v324_v1  ;;  %v60_v23 = vmul.f32 %v274_v15, %v324_v1 }
   0x6   :  { %v76_v20 = vadd.f32 %v338_v7, %v53_v12  ;;  %v77_v21 = vadd.f32 %v338_v7, %v54_v13  ;;  %v78_v24 = vadd.f32 %v338_v7, %v55_v16  ;;  %v79_v25 = vadd.f32 %v338_v7, %v56_v17  ;;  %v297_v17 = vld [vmem:[%s448_s0 + $0x38] sm:$0xff]  }
   0x7   :  { %v80_v26 = vadd.f32 %v338_v7, %v57_v18  ;;  %v81_v27 = vadd.f32 %v338_v7, %v58_v19  ;;  %v82_v46 = vadd.f32 %v338_v7, %v59_v22  ;;  %v83_v47 = vadd.f32 %v338_v7, %v60_v23 }
   0x8   :  { %vm92_vm1 = vcmp.ge.f32.partialorder %v76_v20, 0.0  ;;  %v108_v28 = vmul.f32 0.2, %v76_v20  ;;  %vm93_vm2 = vcmp.ge.f32.partialorder %v77_v21, 0.0  ;;  %v109_v29 = vmul.f32 0.2, %v77_v21 }
   0x9   :  { %vm94_vm3 = vcmp.ge.f32.partialorder %v78_v24, 0.0  ;;  %v110_v30 = vmul.f32 0.2, %v78_v24  ;;  %vm95_vm4 = vcmp.ge.f32.partialorder %v79_v25, 0.0  ;;  %v111_v31 = vmul.f32 0.2, %v79_v25 }
   0xa   :  { %v124_v32 = vsel %vm92_vm1, %v76_v20, %v108_v28  ;;  %v125_v33 = vsel %vm93_vm2, %v77_v21, %v109_v29  ;;  %vm96_vm5 = vcmp.ge.f32.partialorder %v80_v26, 0.0  ;;  %v112_v34 = vmul.f32 0.2, %v80_v26 }
   0xb   :  { %v243_v35 = vpack.c.bf16 %v124_v32, %v124_v32  ;;  %v244_v36 = vpack.c.bf16 %v125_v33, %v125_v33  ;;  %v126_v37 = vsel %vm94_vm3, %v78_v24, %v110_v30  ;;  %v127_v38 = vsel %vm95_vm4, %v79_v25, %v111_v31 }
   0xc   :  { %v245_v41 = vpack.c.bf16 %v126_v37, %v126_v37  ;;  %v246_v42 = vpack.c.bf16 %v127_v38, %v127_v38  ;;  %v128_v43 = vsel %vm96_vm5, %v80_v26, %v112_v34  ;;  %vm97_vm6 = vcmp.ge.f32.partialorder %v81_v27, 0.0 }
   0xd   :  { %205 = vst.msk [vmem:[%s451_s3] sm:$0xf] %vm204_vm0, %v243_v35  ;;  %206 = vst.msk [vmem:[%s451_s3 + $0x4] sm:$0xf] %vm204_vm0, %v244_v36  ;;  %v247_v44 = vpack.c.bf16 %v128_v43, %v128_v43  ;;  %v113_v45 = vmul.f32 0.2, %v81_v27  ;;  %v277_v48 = vunpack.c.l.bf16 %v294_v39  ;;  %v278_v49 = vunpack.c.h.bf16 %v294_v39 }
   0xe   :  { %207 = vst.msk [vmem:[%s451_s3 + $0x8] sm:$0xf] %vm204_vm0, %v245_v41  ;;  %208 = vst.msk [vmem:[%s451_s3 + $0xc] sm:$0xf] %vm204_vm0, %v246_v42  ;;  %v281_v50 = vunpack.c.l.bf16 %v295_v40  ;;  %v282_v51 = vunpack.c.h.bf16 %v295_v40  ;;  %vm98_vm7 = vcmp.ge.f32.partialorder %v82_v46, 0.0  ;;  %vm99_vm8 = vcmp.ge.f32.partialorder %v83_v47, 0.0 }
   0xf   :  { %209 = vst.msk [vmem:[%s451_s3 + $0x10] sm:$0xf] %vm204_vm0, %v247_v44  ;;  %v129_v53 = vsel %vm97_vm6, %v81_v27, %v113_v45  ;;  %v114_v54 = vmul.f32 0.2, %v82_v46  ;;  %v115_v56 = vmul.f32 0.2, %v83_v47  ;;  %v61_v57 = vmul.f32 %v277_v48, %v324_v1 }
  0x10   :  { %v248_v55 = vpack.c.bf16 %v129_v53, %v129_v53  ;;  %v62_v58 = vmul.f32 %v278_v49, %v324_v1  ;;  %v63_v60 = vmul.f32 %v281_v50, %v324_v1  ;;  %v64_v61 = vmul.f32 %v282_v51, %v324_v1 }
  0x11   :  { %v130_v59 = vsel %vm98_vm7, %v82_v46, %v114_v54  ;;  %v285_v62 = vunpack.c.l.bf16 %v296_v52  ;;  %v131_v0 = vsel %vm99_vm8, %v83_v47, %v115_v56  ;;  %v84_v2 = vadd.f32 %v338_v7, %v61_v57 }
  0x12   :  { %210 = vst.msk [vmem:[%s451_s3 + $0x14] sm:$0xf] %vm204_vm0, %v248_v55  ;;  %v249_v63 = vpack.c.bf16 %v130_v59, %v130_v59  ;;  %v85_v3 = vadd.f32 %v338_v7, %v62_v58  ;;  %v250_v4 = vpack.c.bf16 %v131_v0, %v131_v0  ;;  %v86_v5 = vadd.f32 %v338_v7, %v63_v60 }
  0x13   :  { %v87_v6 = vadd.f32 %v338_v7, %v64_v61  ;;  %v65_v8 = vmul.f32 %v285_v62, %v324_v1  ;;  %vm100_vm9 = vcmp.ge.f32.partialorder %v84_v2, 0.0  ;;  %v116_v9 = vmul.f32 0.2, %v84_v2 }
  0x14   :  { %211 = vst.msk [vmem:[%s451_s3 + $0x18] sm:$0xf] %vm204_vm0, %v249_v63  ;;  %vm101_vm10 = vcmp.ge.f32.partialorder %v85_v3, 0.0  ;;  %v117_v10 = vmul.f32 0.2, %v85_v3  ;;  %vm102_vm11 = vcmp.ge.f32.partialorder %v86_v5, 0.0  ;;  %v286_v16 = vunpack.c.h.bf16 %v296_v52 }
  0x15   :  { %212 = vst.msk [vmem:[%s451_s3 + $0x1c] sm:$0xf] %vm204_vm0, %v250_v4  ;;  %v118_v11 = vmul.f32 0.2, %v86_v5  ;;  %vm103_vm12 = vcmp.ge.f32.partialorder %v87_v6, 0.0  ;;  %v132_v13 = vsel %vm100_vm9, %v84_v2, %v116_v9  ;;  %v88_v15 = vadd.f32 %v338_v7, %v65_v8 }
  0x16   :  { %v119_v12 = vmul.f32 0.2, %v87_v6  ;;  %v133_v14 = vsel %vm101_vm10, %v85_v3, %v117_v10  ;;  %v251_v18 = vpack.c.bf16 %v132_v13, %v132_v13  ;;  %v66_v25 = vmul.f32 %v286_v16, %v324_v1 }
  0x17   :  { %v252_v19 = vpack.c.bf16 %v133_v14, %v133_v14  ;;  %v134_v20 = vsel %vm102_vm11, %v86_v5, %v118_v11  ;;  %vm104_vm13 = vcmp.ge.f32.partialorder %v88_v15, 0.0  ;;  %v120_v24 = vmul.f32 0.2, %v88_v15 }
  0x18   :  { %v135_v21 = vsel %vm103_vm12, %v87_v6, %v119_v12  ;;  %v253_v22 = vpack.c.bf16 %v134_v20, %v134_v20  ;;  %213 = vst.msk [vmem:[%s451_s3 + $0x20] sm:$0xf] %vm204_vm0, %v251_v18  ;;  %v289_v26 = vunpack.c.l.bf16 %v297_v17  ;;  %v290_v27 = vunpack.c.h.bf16 %v297_v17 }
  0x19   :  { %v254_v23 = vpack.c.bf16 %v135_v21, %v135_v21  ;;  %214 = vst.msk [vmem:[%s451_s3 + $0x24] sm:$0xf] %vm204_vm0, %v252_v19  ;;  %v136_v28 = vsel %vm104_vm13, %v88_v15, %v120_v24  ;;  %v89_v30 = vadd.f32 %v338_v7, %v66_v25 }
  0x1a   :  { %215 = vst.msk [vmem:[%s451_s3 + $0x28] sm:$0xf] %vm204_vm0, %v253_v22  ;;  %v255_v29 = vpack.c.bf16 %v136_v28, %v136_v28  ;;  %v67_v31 = vmul.f32 %v289_v26, %v324_v1  ;;  %v68_v32 = vmul.f32 %v290_v27, %v324_v1 }
  0x1b   :  { %216 = vst.msk [vmem:[%s451_s3 + $0x2c] sm:$0xf] %vm204_vm0, %v254_v23  ;;  %vm105_vm14 = vcmp.ge.f32.partialorder %v89_v30, 0.0  ;;  %v121_v33 = vmul.f32 0.2, %v89_v30 }
  0x1c   :  { %217 = vst.msk [vmem:[%s451_s3 + $0x30] sm:$0xf] %vm204_vm0, %v255_v29  ;;  %v90_v34 = vadd.f32 %v338_v7, %v67_v31  ;;  %v91_v35 = vadd.f32 %v338_v7, %v68_v32 }
  0x1d   :  { %v137_v36 = vsel %vm105_vm14, %v89_v30, %v121_v33 }
  0x1e   :  { %vm106_vm15 = vcmp.ge.f32.partialorder %v90_v34, 0.0  ;;  %v122_v37 = vmul.f32 0.2, %v90_v34  ;;  %vm107_vm1 = vcmp.ge.f32.partialorder %v91_v35, 0.0  ;;  %v256_v38 = vpack.c.bf16 %v137_v36, %v137_v36 }
  0x1f   :  { %v123_v39 = vmul.f32 0.2, %v91_v35 }
  0x20   :  { %v138_v40 = vsel %vm106_vm15, %v90_v34, %v122_v37  ;;  %218 = vst.msk [vmem:[%s451_s3 + $0x34] sm:$0xf] %vm204_vm0, %v256_v38 }
  0x21   :  { %v257_v1 = vpack.c.bf16 %v138_v40, %v138_v40  ;;  %v139_v41 = vsel %vm107_vm1, %v91_v35, %v123_v39 }
  0x22   :  { %v258_v42 = vpack.c.bf16 %v139_v41, %v139_v41 }
  0x23   :  { %219 = vst.msk [vmem:[%s451_s3 + $0x38] sm:$0xf] %vm204_vm0, %v257_v1 }
  0x24   :  { %220 = vst.msk [vmem:[%s451_s3 + $0x3c] sm:$0xf] %vm204_vm0, %v258_v42 }

// kernel: discriminator_forward.14
= control target key start
LH: loop header
LB: loop body
LE: loop exit
PB: predicated region body
PF: predicated region fallthrough
CT: control target
= control target key end

     0   :  { %vm72_vm4 = vcmask 519168   ;;  %s144_s0 = inlined_call_operand.vmem [shape: bf16[32,64], index: 0, kind: input, shape index: {}]   ;;  %s145_s1 = inlined_call_operand.vmem [shape: f32[1,64], index: 1, kind: input, shape index: {}]   ;;  %s146_s2 = inlined_call_operand.vmem [shape: f32[1,64], index: 2, kind: input, shape index: {}]   ;;  %s147_s3 = inlined_call_operand.vmem [shape: bf16[32,64], index: 3, kind: output, shape index: {}]  }
   0x1   :  { %v92_v0 = vld [vmem:[%s144_s0] sm:$0xff]   ;;  %v99_v4 = vld [vmem:[%s144_s0 + $0x8] sm:$0xff]  }
   0x2   :  { %v81_v1 = vld [vmem:[%s145_s1] ss:$0 sm:$0xff]  ;;  %v93_v2 = vunpack.c.l.bf16 %v92_v0  ;;  %v94_v3 = vunpack.c.h.bf16 %v92_v0  ;;  %v97_v6 = vunpack.c.l.bf16 %v99_v4  ;;  %v98_v7 = vunpack.c.h.bf16 %v99_v4 }
   0x3   :  { %v82_v5 = vld [vmem:[%s146_s2] ss:$0 sm:$0xff] }
   0x4   :  { %v29_v8 = vmul.f32 %v93_v2, %v81_v1  ;;  %v30_v9 = vmul.f32 %v94_v3, %v81_v1  ;;  %v31_v10 = vmul.f32 %v97_v6, %v81_v1  ;;  %v32_v11 = vmul.f32 %v98_v7, %v81_v1 }
   0x6   :  { %v40_v12 = vadd.f32 %v82_v5, %v29_v8  ;;  %v41_v13 = vadd.f32 %v82_v5, %v30_v9  ;;  %v42_v14 = vadd.f32 %v82_v5, %v31_v10  ;;  %v43_v15 = vadd.f32 %v82_v5, %v32_v11 }
   0x8   :  { %vm44_vm0 = vcmp.ge.f32.partialorder %v40_v12, 0.0  ;;  %v48_v16 = vmul.f32 0.2, %v40_v12  ;;  %vm45_vm1 = vcmp.ge.f32.partialorder %v41_v13, 0.0  ;;  %v49_v17 = vmul.f32 0.2, %v41_v13 }
   0x9   :  { %vm46_vm2 = vcmp.ge.f32.partialorder %v42_v14, 0.0  ;;  %v50_v18 = vmul.f32 0.2, %v42_v14  ;;  %vm47_vm3 = vcmp.ge.f32.partialorder %v43_v15, 0.0  ;;  %v51_v19 = vmul.f32 0.2, %v43_v15 }
   0xa   :  { %v52_v20 = vsel %vm44_vm0, %v40_v12, %v48_v16  ;;  %v53_v21 = vsel %vm45_vm1, %v41_v13, %v49_v17 }
   0xb   :  { %v87_v22 = vpack.c.bf16 %v52_v20, %v52_v20  ;;  %v88_v23 = vpack.c.bf16 %v53_v21, %v53_v21  ;;  %v54_v24 = vsel %vm46_vm2, %v42_v14, %v50_v18  ;;  %v55_v25 = vsel %vm47_vm3, %v43_v15, %v51_v19 }
   0xc   :  { %v89_v26 = vpack.c.bf16 %v54_v24, %v54_v24  ;;  %v90_v27 = vpack.c.bf16 %v55_v25, %v55_v25 }
   0xd   :  { %73 = vst.msk [vmem:[%s147_s3] sm:$0xf] %vm72_vm4, %v87_v22  ;;  %74 = vst.msk [vmem:[%s147_s3 + $0x4] sm:$0xf] %vm72_vm4, %v88_v23 }
   0xe   :  { %75 = vst.msk [vmem:[%s147_s3 + $0x8] sm:$0xf] %vm72_vm4, %v89_v26  ;;  %76 = vst.msk [vmem:[%s147_s3 + $0xc] sm:$0xf] %vm72_vm4, %v90_v27 }

// kernel: discriminator_forward.13
= control target key start
LH: loop header
LB: loop body
LE: loop exit
PB: predicated region body
PF: predicated region fallthrough
CT: control target
= control target key end

     0   :  { %vm417_vm0 = vcmask 523264   ;;  %vm467_vm1 = vcmask 519168   ;;  %vm431_vm2 = vcmask 516096   ;;  %s807_s1 = inlined_call_operand.vmem [shape: bf16[512,64], index: 1, kind: input, shape index: {}]   ;;  %s808_s0 = inlined_call_operand.vmem [shape: bf16[32,512], index: 0, kind: input, shape index: {}]   ;;  %s809_s2 = inlined_call_operand.vmem [shape: bf16[32,64], index: 2, kind: output, shape index: {0}]   ;;  %s810_s3 = inlined_call_operand.vmem [shape: f32[1,1,64], index: 3, kind: output, shape index: {1}]   ;;  %s811_s4 = inlined_call_operand.vmem [shape: f32[1,1,64], index: 4, kind: output, shape index: {2}]  }
   0x1   :  { %v588_v0 = vld [vmem:[%s807_s1 + $0x40] sm:$0xff]   ;;  %v592_v4 = vld [vmem:[%s807_s1 + $0x48] sm:$0xff]   ;;  %v596_v8 = vld [vmem:[%s807_s1 + $0x50] sm:$0xff]  }
   0x2   :  { %v589_v1 = vld [vmem:[%s807_s1 + $0xc0] sm:$0xff]   ;;  %532 = vmatprep.subr.bf16.mxu0 %v588_v0  ;;  %v593_v5 = vld [vmem:[%s807_s1 + $0xc8] sm:$0xff]   ;;  %v597_v9 = vld [vmem:[%s807_s1 + $0xd0] sm:$0xff]  }
   0x3   :  { %v590_v2 = vld [vmem:[%s807_s1] sm:$0xff]   ;;  %560 = vmatprep.subr.bf16.mxu1 %v589_v1  ;;  %v594_v6 = vld [vmem:[%s807_s1 + $0x8] sm:$0xff]   ;;  %v598_v10 = vld [vmem:[%s807_s1 + $0x10] sm:$0xff]  }
   0x4   :  { %v591_v3 = vld [vmem:[%s807_s1 + $0x80] sm:$0xff]   ;;  %533 = vmatpush3.bf16.msra.mxu0 %v590_v2  ;;  %v595_v7 = vld [vmem:[%s807_s1 + $0x88] sm:$0xff]   ;;  %v599_v11 = vld [vmem:[%s807_s1 + $0x90] sm:$0xff]  }
   0x5   :  { %561 = vmatpush3.bf16.msra.mxu1 %v591_v3  ;;  %534 = vmatprep.subr.bf16.mxu0 %v592_v4  ;;  %v600_v12 = vld [vmem:[%s807_s1 + $0x58] sm:$0xff]   ;;  %v604_v16 = vld [vmem:[%s807_s1 + $0x60] sm:$0xff]   ;;  %v608_v20 = vld [vmem:[%s807_s1 + $0x68] sm:$0xff]  }
   0x6   :  { %562 = vmatprep.subr.bf16.mxu1 %v593_v5  ;;  %v601_v13 = vld [vmem:[%s807_s1 + $0xd8] sm:$0xff]   ;;  %v605_v17 = vld [vmem:[%s807_s1 + $0xe0] sm:$0xff]   ;;  %v609_v21 = vld [vmem:[%s807_s1 + $0xe8] sm:$0xff]  }
   0x7   :  { %v602_v14 = vld [vmem:[%s807_s1 + $0x18] sm:$0xff]   ;;  %v606_v18 = vld [vmem:[%s807_s1 + $0x20] sm:$0xff]   ;;  %v610_v22 = vld [vmem:[%s807_s1 + $0x28] sm:$0xff]  }
   0x8   :  { %535 = vmatpush3.bf16.msra.mxu0 %v594_v6  ;;  %v603_v15 = vld [vmem:[%s807_s1 + $0x98] sm:$0xff]   ;;  %v607_v19 = vld [vmem:[%s807_s1 + $0xa0] sm:$0xff]   ;;  %v611_v23 = vld [vmem:[%s807_s1 + $0xa8] sm:$0xff]  }
   0x9   :  { %563 = vmatpush3.bf16.msra.mxu1 %v595_v7  ;;  %536 = vmatprep.subr.bf16.mxu0 %v596_v8  ;;  %v612_v24 = vld [vmem:[%s807_s1 + $0x70] sm:$0xff]   ;;  %v616_v28 = vld [vmem:[%s807_s1 + $0x78] sm:$0xff]  }
   0xa   :  { %564 = vmatprep.subr.bf16.mxu1 %v597_v9  ;;  %v613_v25 = vld [vmem:[%s807_s1 + $0xf0] sm:$0xff]   ;;  %v617_v29 = vld [vmem:[%s807_s1 + $0xf8] sm:$0xff]  }
   0xb   :  { %v614_v26 = vld [vmem:[%s807_s1 + $0x30] sm:$0xff]   ;;  %v618_v30 = vld [vmem:[%s807_s1 + $0x38] sm:$0xff]  }
   0xc   :  { %537 = vmatpush3.bf16.msra.mxu0 %v598_v10  ;;  %v615_v27 = vld [vmem:[%s807_s1 + $0xb0] sm:$0xff]   ;;  %v619_v31 = vld [vmem:[%s807_s1 + $0xb8] sm:$0xff]  }
   0xd   :  { %565 = vmatpush3.bf16.msra.mxu1 %v599_v11  ;;  %538 = vmatprep.subr.bf16.mxu0 %v600_v12  ;;  %v620_v32 = vld [vmem:[%s808_s0] ss:$16 sps:$4 sm:$0xff]   ;;  %v622_v33 = vld [vmem:[%s808_s0 + $0x4] ss:$16 sps:$4 sm:$0xff]   ;;  %v623_v34 = vld [vmem:[%s808_s0 + $0x8] ss:$16 sps:$4 sm:$0xff]  }
   0xe   :  { %566 = vmatprep.subr.bf16.mxu1 %v601_v13  ;;  %v625_v35 = vld [vmem:[%s808_s0 + $0xc] ss:$16 sps:$4 sm:$0xff]   ;;  %351 = vmatprep.mubr.bf16.mxu0 %v622_v33  ;;  %v626_v36 = vld [vmem:[%s808_s0 + $0x24] ss:$16 sps:$4 sm:$0xff]   ;;  %v630_v38 = vld [vmem:[%s808_s0 + $0x20] ss:$16 sps:$4 sm:$0xff]  }
   0xf   :  { %400 = vmatprep.mubr.bf16.mxu1 %v625_v35  ;;  %v628_v37 = vld [vmem:[%s808_s0 + $0x2c] ss:$16 sps:$4 sm:$0xff]   ;;  %v631_v39 = vld [vmem:[%s808_s0 + $0x28] ss:$16 sps:$4 sm:$0xff]  }
  0x10   :  { %539 = vmatpush3.bf16.msra.mxu0 %v602_v14 }
  0x11   :  { %567 = vmatpush3.bf16.msra.mxu1 %v603_v15  ;;  %540 = vmatprep.subr.bf16.mxu0 %v604_v16 }
  0x12   :  { %568 = vmatprep.subr.bf16.mxu1 %v605_v17 }
  0x14   :  { %541 = vmatpush3.bf16.msra.mxu0 %v606_v18 }
  0x15   :  { %569 = vmatpush3.bf16.msra.mxu1 %v607_v19  ;;  %542 = vmatprep.subr.bf16.mxu0 %v608_v20 }
  0x16   :  { %570 = vmatprep.subr.bf16.mxu1 %v609_v21 }
  0x18   :  { %543 = vmatpush3.bf16.msra.mxu0 %v610_v22 }
  0x19   :  { %571 = vmatpush3.bf16.msra.mxu1 %v611_v23  ;;  %544 = vmatprep.subr.bf16.mxu0 %v612_v24 }
  0x1a   :  { %572 = vmatprep.subr.bf16.mxu1 %v613_v25 }
  0x1c   :  { %545 = vmatpush3.bf16.msra.mxu0 %v614_v26 }
  0x1d   :  { %573 = vmatpush3.bf16.msra.mxu1 %v615_v27  ;;  %546 = vmatprep.subr.bf16.mxu0 %v616_v28 }
  0x1e   :  { %574 = vmatprep.subr.bf16.mxu1 %v617_v29 }
  0x20   :  { %547 = vmatpush3.bf16.msra.mxu0 %v618_v30 }
  0x21   :  { %575 = vmatpush3.bf16.msra.mxu1 %v619_v31 }
  0x23   :  { %352 = vmatmul.mubr.bf16.vlgmr.msra.gmra.mrb[0].mxu0 %v620_v32 }
  0x24   :  { %401 = vmatmul.mubr.bf16.vlgmr.msra.gmra.mrb[0].mxu1 %v623_v34  ;;  %359 = vmatprep.mubr.bf16.mxu0 %v626_v36 }
  0x25   :  { %408 = vmatprep.mubr.bf16.mxu1 %v628_v37 }
  0x2b   :  { %360 = vmatmul.mubr.bf16.gmra.mrb[4].mxu0 %v630_v38 }
  0x2c   :  { %409 = vmatmul.mubr.bf16.gmra.mrb[4].mxu1 %v631_v39 }
  0xf6   :  { %v548_v40 = vpop.f32.mrb[0].mxu0 }
  0xf7   :  { %v576_v41 = vpop.f32.mrb[0].mxu1  ;;  %v549_v42 = vpop.f32.mrb[1].mxu0 }
  0xf8   :  { %v550_v43 = vadd.f32 %v549_v42, %v548_v40  ;;  %v577_v44 = vpop.f32.mrb[1].mxu1  ;;  %v551_v45 = vpop.f32.mrb[2].mxu0 }
  0xf9   :  { %v578_v46 = vadd.f32 %v577_v44, %v576_v41  ;;  %v579_v47 = vpop.f32.mrb[2].mxu1  ;;  %v552_v48 = vpop.f32.mrb[3].mxu0 }
  0xfa   :  { %v553_v49 = vadd.f32 %v552_v48, %v551_v45  ;;  %v580_v50 = vpop.f32.mrb[3].mxu1 }
  0xfb   :  { %v403_v51 = vadd.f32 %v578_v46, %v550_v43  ;;  %v581_v52 = vadd.f32 %v580_v50, %v579_v47 }
  0xfd   :  { %v433_v53 = vmul.f32 %v403_v51, %v403_v51  ;;  %v528_v54 = vpack.c.bf16 %v403_v51, %v403_v51  ;;  %v406_v55 = vadd.f32 %v581_v52, %v553_v49  ;;  %v418_v57 = vsel %vm417_vm0, %v403_v51, 0.0 }
  0xfe   :  { %v554_v56 = vpop.f32.mrb[4].mxu0 }
  0xff   :  { %468 = vst.msk [vmem:[%s809_s2] sm:$0xf] %vm467_vm1, %v528_v54  ;;  %v419_v58 = vsel %vm417_vm0, %v406_v55, 0.0  ;;  %v434_v59 = vmul.f32 %v406_v55, %v406_v55  ;;  %v529_v60 = vpack.c.bf16 %v406_v55, %v406_v55  ;;  %v582_v61 = vpop.f32.mrb[4].mxu1  ;;  %v555_v62 = vpop.f32.mrb[5].mxu0  ;;  %v437_v3 = vsel %vm417_vm0, %v433_v53, 0.0 }
 0x100   :  { %v420_v63 = vadd.f32 %v419_v58, %v418_v57  ;;  %v556_v0 = vadd.f32 %v555_v62, %v554_v56  ;;  %v583_v1 = vpop.f32.mrb[5].mxu1  ;;  %v557_v2 = vpop.f32.mrb[6].mxu0 }
 0x101   :  { %v438_v4 = vsel %vm417_vm0, %v434_v59, 0.0  ;;  %469 = vst.msk [vmem:[%s809_s2 + $0x4] sm:$0xf] %vm467_vm1, %v529_v60  ;;  %v584_v5 = vadd.f32 %v583_v1, %v582_v61  ;;  %v585_v6 = vpop.f32.mrb[6].mxu1  ;;  %v558_v7 = vpop.f32.mrb[7].mxu0 }
 0x102   :  { %v439_v8 = vadd.f32 %v438_v4, %v437_v3  ;;  %v559_v9 = vadd.f32 %v558_v7, %v557_v2  ;;  %v586_v10 = vpop.f32.mrb[7].mxu1 }
 0x103   :  { %v411_v11 = vadd.f32 %v584_v5, %v556_v0  ;;  %v587_v12 = vadd.f32 %v586_v10, %v585_v6 }
 0x105   :  { %v421_v13 = vsel %vm417_vm0, %v411_v11, 0.0  ;;  %v435_v14 = vmul.f32 %v411_v11, %v411_v11  ;;  %v530_v15 = vpack.c.bf16 %v411_v11, %v411_v11  ;;  %v414_v16 = vadd.f32 %v587_v12, %v559_v9 }
 0x106   :  { %v422_v17 = vadd.f32 %v421_v13, %v420_v63 }
 0x107   :  { %v440_v18 = vsel %vm417_vm0, %v435_v14, 0.0  ;;  %470 = vst.msk [vmem:[%s809_s2 + $0x8] sm:$0xf] %vm467_vm1, %v530_v15  ;;  %v423_v19 = vsel %vm417_vm0, %v414_v16, 0.0  ;;  %v436_v20 = vmul.f32 %v414_v16, %v414_v16  ;;  %v531_v21 = vpack.c.bf16 %v414_v16, %v414_v16 }
 0x108   :  { %v441_v22 = vadd.f32 %v440_v18, %v439_v8  ;;  %v424_v23 = vadd.f32 %v423_v19, %v422_v17 }
 0x109   :  { %v442_v24 = vsel %vm417_vm0, %v436_v20, 0.0  ;;  %471 = vst.msk [vmem:[%s809_s2 + $0xc] sm:$0xf] %vm467_vm1, %v531_v21 }
 0x10a   :  { %v425_v25 = vrot.slane %v424_v23, 4  ;;  %v443_v26 = vadd.f32 %v442_v24, %v441_v22 }
 0x10c   :  { %v426_v27 = vadd.f32 %v425_v25, %v424_v23  ;;  %v444_v28 = vrot.slane %v443_v26, 4 }
 0x10e   :  { %v427_v29 = vrot.slane %v426_v27, 2  ;;  %v445_v30 = vadd.f32 %v444_v28, %v443_v26 }
 0x110   :  { %v428_v31 = vadd.f32 %v427_v29, %v426_v27  ;;  %v446_v32 = vrot.slane %v445_v30, 2 }
 0x112   :  { %v429_v33 = vrot.slane %v428_v31, 1  ;;  %v447_v34 = vadd.f32 %v446_v32, %v445_v30 }
 0x114   :  { %v430_v35 = vadd.f32 %v429_v33, %v428_v31  ;;  %v448_v36 = vrot.slane %v447_v34, 1 }
 0x116   :  { %432 = vst.msk [vmem:[%s810_s3] sm:$0x1] %vm431_vm2, %v430_v35  ;;  %v449_v37 = vadd.f32 %v448_v36, %v447_v34 }
 0x118   :  { %450 = vst.msk [vmem:[%s811_s4] sm:$0x1] %vm431_vm2, %v449_v37 }

// kernel: discriminator_forward.15
= control target key start
LH: loop header
LB: loop body
LE: loop exit
PB: predicated region body
PF: predicated region fallthrough
CT: control target
= control target key end

     0   :  { %vm756_vm0 = vcmask 7168   ;;  %s1232_s1 = inlined_call_operand.vmem [shape: bf16[1024,1], index: 1, kind: input, shape index: {}]   ;;  %s1233_s0 = inlined_call_operand.vmem [shape: bf16[16,1024], index: 0, kind: input, shape index: {}]   ;;  %s1234_s2 = inlined_call_operand.vmem [shape: f32[16,1], index: 2, kind: output, shape index: {}]  }
   0x1   :  { %v923_v0 = vld [vmem:[%s1232_s1 + $0x40] sm:$0xff]   ;;  %v927_v4 = vld [vmem:[%s1232_s1 + $0x48] sm:$0xff]   ;;  %v931_v8 = vld [vmem:[%s1232_s1 + $0x50] sm:$0xff]  }
   0x2   :  { %v924_v1 = vld [vmem:[%s1232_s1 + $0xc0] sm:$0xff]   ;;  %835 = vmatprep.subr.bf16.mxu0 %v923_v0  ;;  %v928_v5 = vld [vmem:[%s1232_s1 + $0xc8] sm:$0xff]   ;;  %v932_v9 = vld [vmem:[%s1232_s1 + $0xd0] sm:$0xff]  }
   0x3   :  { %v925_v2 = vld [vmem:[%s1232_s1] sm:$0xff]   ;;  %857 = vmatprep.subr.bf16.mxu1 %v924_v1  ;;  %v929_v6 = vld [vmem:[%s1232_s1 + $0x8] sm:$0xff]   ;;  %v933_v10 = vld [vmem:[%s1232_s1 + $0x10] sm:$0xff]  }
   0x4   :  { %v926_v3 = vld [vmem:[%s1232_s1 + $0x80] sm:$0xff]   ;;  %836 = vmatpush3.bf16.msra.mxu0 %v925_v2  ;;  %v930_v7 = vld [vmem:[%s1232_s1 + $0x88] sm:$0xff]   ;;  %v934_v11 = vld [vmem:[%s1232_s1 + $0x90] sm:$0xff]  }
   0x5   :  { %858 = vmatpush3.bf16.msra.mxu1 %v926_v3  ;;  %837 = vmatprep.subr.bf16.mxu0 %v927_v4  ;;  %v935_v12 = vld [vmem:[%s1232_s1 + $0x58] sm:$0xff]   ;;  %v939_v16 = vld [vmem:[%s1232_s1 + $0x60] sm:$0xff]   ;;  %v943_v20 = vld [vmem:[%s1232_s1 + $0x68] sm:$0xff]  }
   0x6   :  { %859 = vmatprep.subr.bf16.mxu1 %v928_v5  ;;  %v936_v13 = vld [vmem:[%s1232_s1 + $0xd8] sm:$0xff]   ;;  %v940_v17 = vld [vmem:[%s1232_s1 + $0xe0] sm:$0xff]   ;;  %v944_v21 = vld [vmem:[%s1232_s1 + $0xe8] sm:$0xff]  }
   0x7   :  { %v937_v14 = vld [vmem:[%s1232_s1 + $0x18] sm:$0xff]   ;;  %v941_v18 = vld [vmem:[%s1232_s1 + $0x20] sm:$0xff]   ;;  %v945_v22 = vld [vmem:[%s1232_s1 + $0x28] sm:$0xff]  }
   0x8   :  { %838 = vmatpush3.bf16.msra.mxu0 %v929_v6  ;;  %v938_v15 = vld [vmem:[%s1232_s1 + $0x98] sm:$0xff]   ;;  %v942_v19 = vld [vmem:[%s1232_s1 + $0xa0] sm:$0xff]   ;;  %v946_v23 = vld [vmem:[%s1232_s1 + $0xa8] sm:$0xff]  }
   0x9   :  { %860 = vmatpush3.bf16.msra.mxu1 %v930_v7  ;;  %839 = vmatprep.subr.bf16.mxu0 %v931_v8  ;;  %v947_v24 = vld [vmem:[%s1232_s1 + $0x70] sm:$0xff]   ;;  %v951_v28 = vld [vmem:[%s1232_s1 + $0x78] sm:$0xff]   ;;  %v12_v32 = vld [vmem:[%s1233_s0] sm:$0xff] }
   0xa   :  { %861 = vmatprep.subr.bf16.mxu1 %v932_v9  ;;  %v948_v25 = vld [vmem:[%s1232_s1 + $0xf0] sm:$0xff]   ;;  %v952_v29 = vld [vmem:[%s1232_s1 + $0xf8] sm:$0xff]   ;;  %v16_v33 = vld [vmem:[%s1233_s0 + $0x20] sm:$0xff] }
   0xb   :  { %v949_v26 = vld [vmem:[%s1232_s1 + $0x30] sm:$0xff]   ;;  %v953_v30 = vld [vmem:[%s1232_s1 + $0x38] sm:$0xff]   ;;  %v13_v34 = vld [vmem:[%s1233_s0 + $0x8] sm:$0xff]  ;;  %v763_v35 = vcombine.low %v12_v32, %v16_v33  ;;  %v764_v36 = vcombine.high %v12_v32, %v16_v33 }
   0xc   :  { %840 = vmatpush3.bf16.msra.mxu0 %v933_v10  ;;  %v950_v27 = vld [vmem:[%s1232_s1 + $0xb0] sm:$0xff]   ;;  %v954_v31 = vld [vmem:[%s1232_s1 + $0xb8] sm:$0xff]   ;;  %v17_v37 = vld [vmem:[%s1233_s0 + $0x28] sm:$0xff] }
   0xd   :  { %862 = vmatpush3.bf16.msra.mxu1 %v934_v11  ;;  %841 = vmatprep.subr.bf16.mxu0 %v935_v12  ;;  %v765_v38 = vcombine.low %v13_v34, %v17_v37  ;;  %v766_v39 = vcombine.high %v13_v34, %v17_v37  ;;  %v955_v40 = vld [vmem:[%s1232_s1 + $0x140] sm:$0xff]   ;;  %v959_v44 = vld [vmem:[%s1232_s1 + $0x148] sm:$0xff]   ;;  %v963_v48 = vld [vmem:[%s1232_s1 + $0x150] sm:$0xff]  }
   0xe   :  { %863 = vmatprep.subr.bf16.mxu1 %v936_v13  ;;  %604 = vmatprep.mubr.bf16.mxu0 %v764_v36  ;;  %v956_v41 = vld [vmem:[%s1232_s1 + $0x1c0] sm:$0xff]   ;;  %v960_v45 = vld [vmem:[%s1232_s1 + $0x1c8] sm:$0xff]   ;;  %v964_v49 = vld [vmem:[%s1232_s1 + $0x1d0] sm:$0xff]  }
   0xf   :  { %645 = vmatprep.mubr.bf16.mxu1 %v766_v39  ;;  %v957_v42 = vld [vmem:[%s1232_s1 + $0x100] sm:$0xff]   ;;  %v961_v46 = vld [vmem:[%s1232_s1 + $0x108] sm:$0xff]   ;;  %v965_v50 = vld [vmem:[%s1232_s1 + $0x110] sm:$0xff]  }
  0x10   :  { %842 = vmatpush3.bf16.msra.mxu0 %v937_v14  ;;  %v958_v43 = vld [vmem:[%s1232_s1 + $0x180] sm:$0xff]   ;;  %v962_v47 = vld [vmem:[%s1232_s1 + $0x188] sm:$0xff]   ;;  %v966_v51 = vld [vmem:[%s1232_s1 + $0x190] sm:$0xff]  }
  0x11   :  { %864 = vmatpush3.bf16.msra.mxu1 %v938_v15  ;;  %843 = vmatprep.subr.bf16.mxu0 %v939_v16  ;;  %v967_v52 = vld [vmem:[%s1232_s1 + $0x158] sm:$0xff]   ;;  %v971_v56 = vld [vmem:[%s1232_s1 + $0x160] sm:$0xff]   ;;  %v975_v60 = vld [vmem:[%s1232_s1 + $0x168] sm:$0xff]  }
  0x12   :  { %865 = vmatprep.subr.bf16.mxu1 %v940_v17  ;;  %v968_v53 = vld [vmem:[%s1232_s1 + $0x1d8] sm:$0xff]   ;;  %v972_v57 = vld [vmem:[%s1232_s1 + $0x1e0] sm:$0xff]   ;;  %v976_v61 = vld [vmem:[%s1232_s1 + $0x1e8] sm:$0xff]  }
  0x13   :  { %v969_v54 = vld [vmem:[%s1232_s1 + $0x118] sm:$0xff]   ;;  %v973_v58 = vld [vmem:[%s1232_s1 + $0x120] sm:$0xff]   ;;  %v977_v62 = vld [vmem:[%s1232_s1 + $0x128] sm:$0xff]  }
  0x14   :  { %844 = vmatpush3.bf16.msra.mxu0 %v941_v18  ;;  %v970_v55 = vld [vmem:[%s1232_s1 + $0x198] sm:$0xff]   ;;  %v974_v59 = vld [vmem:[%s1232_s1 + $0x1a0] sm:$0xff]   ;;  %v978_v63 = vld [vmem:[%s1232_s1 + $0x1a8] sm:$0xff]  }
  0x15   :  { %866 = vmatpush3.bf16.msra.mxu1 %v942_v19  ;;  %845 = vmatprep.subr.bf16.mxu0 %v943_v20  ;;  %v979_v0 = vld [vmem:[%s1232_s1 + $0x170] sm:$0xff]   ;;  %v983_v4 = vld [vmem:[%s1232_s1 + $0x178] sm:$0xff]  }
  0x16   :  { %867 = vmatprep.subr.bf16.mxu1 %v944_v21  ;;  %v980_v1 = vld [vmem:[%s1232_s1 + $0x1f0] sm:$0xff]   ;;  %v984_v5 = vld [vmem:[%s1232_s1 + $0x1f8] sm:$0xff]  }
  0x17   :  { %v981_v2 = vld [vmem:[%s1232_s1 + $0x130] sm:$0xff]   ;;  %v985_v6 = vld [vmem:[%s1232_s1 + $0x138] sm:$0xff]  }
  0x18   :  { %846 = vmatpush3.bf16.msra.mxu0 %v945_v22  ;;  %v982_v3 = vld [vmem:[%s1232_s1 + $0x1b0] sm:$0xff]   ;;  %v986_v7 = vld [vmem:[%s1232_s1 + $0x1b8] sm:$0xff]  }
  0x19   :  { %868 = vmatpush3.bf16.msra.mxu1 %v946_v23  ;;  %847 = vmatprep.subr.bf16.mxu0 %v947_v24  ;;  %v14_v8 = vld [vmem:[%s1233_s0 + $0x10] sm:$0xff]  ;;  %v15_v12 = vld [vmem:[%s1233_s0 + $0x18] sm:$0xff] }
  0x1a   :  { %869 = vmatprep.subr.bf16.mxu1 %v948_v25  ;;  %v18_v9 = vld [vmem:[%s1233_s0 + $0x30] sm:$0xff]  ;;  %v19_v13 = vld [vmem:[%s1233_s0 + $0x38] sm:$0xff] }
  0x1b   :  { %v767_v10 = vcombine.low %v14_v8, %v18_v9  ;;  %v768_v11 = vcombine.high %v14_v8, %v18_v9  ;;  %v769_v14 = vcombine.low %v15_v12, %v19_v13  ;;  %v770_v15 = vcombine.high %v15_v12, %v19_v13 }
  0x1c   :  { %848 = vmatpush3.bf16.msra.mxu0 %v949_v26 }
  0x1d   :  { %870 = vmatpush3.bf16.msra.mxu1 %v950_v27  ;;  %849 = vmatprep.subr.bf16.mxu0 %v951_v28 }
  0x1e   :  { %871 = vmatprep.subr.bf16.mxu1 %v952_v29 }
  0x20   :  { %850 = vmatpush3.bf16.msra.mxu0 %v953_v30 }
  0x21   :  { %872 = vmatpush3.bf16.msra.mxu1 %v954_v31  ;;  %879 = vmatprep.subr.bf16.mxu0 %v955_v40 }
  0x22   :  { %901 = vmatprep.subr.bf16.mxu1 %v956_v41 }
  0x23   :  { %605 = vmatmul.mubr.bf16.vlgmr.msra.gmra.mrb[0].mxu0 %v763_v35 }
  0x24   :  { %646 = vmatmul.mubr.bf16.vlgmr.msra.gmra.mrb[0].mxu1 %v765_v38  ;;  %880 = vmatpush3.bf16.msra.mxu0 %v957_v42 }
  0x25   :  { %902 = vmatpush3.bf16.msra.mxu1 %v958_v43  ;;  %881 = vmatprep.subr.bf16.mxu0 %v959_v44 }
  0x26   :  { %903 = vmatprep.subr.bf16.mxu1 %v960_v45  ;;  %686 = vmatprep.mubr.bf16.mxu0 %v768_v11 }
  0x27   :  { %727 = vmatprep.mubr.bf16.mxu1 %v770_v15 }
  0x28   :  { %882 = vmatpush3.bf16.msra.mxu0 %v961_v46 }
  0x29   :  { %904 = vmatpush3.bf16.msra.mxu1 %v962_v47  ;;  %883 = vmatprep.subr.bf16.mxu0 %v963_v48 }
  0x2a   :  { %905 = vmatprep.subr.bf16.mxu1 %v964_v49 }
  0x2c   :  { %884 = vmatpush3.bf16.msra.mxu0 %v965_v50 }
  0x2d   :  { %906 = vmatpush3.bf16.msra.mxu1 %v966_v51  ;;  %885 = vmatprep.subr.bf16.mxu0 %v967_v52 }
  0x2e   :  { %907 = vmatprep.subr.bf16.mxu1 %v968_v53 }
  0x30   :  { %886 = vmatpush3.bf16.msra.mxu0 %v969_v54 }
  0x31   :  { %908 = vmatpush3.bf16.msra.mxu1 %v970_v55  ;;  %887 = vmatprep.subr.bf16.mxu0 %v971_v56 }
  0x32   :  { %909 = vmatprep.subr.bf16.mxu1 %v972_v57 }
  0x34   :  { %888 = vmatpush3.bf16.msra.mxu0 %v973_v58 }
  0x35   :  { %910 = vmatpush3.bf16.msra.mxu1 %v974_v59  ;;  %889 = vmatprep.subr.bf16.mxu0 %v975_v60 }
  0x36   :  { %911 = vmatprep.subr.bf16.mxu1 %v976_v61 }
  0x38   :  { %890 = vmatpush3.bf16.msra.mxu0 %v977_v62 }
  0x39   :  { %912 = vmatpush3.bf16.msra.mxu1 %v978_v63  ;;  %891 = vmatprep.subr.bf16.mxu0 %v979_v0 }
  0x3a   :  { %913 = vmatprep.subr.bf16.mxu1 %v980_v1 }
  0x3c   :  { %892 = vmatpush3.bf16.msra.mxu0 %v981_v2 }
  0x3d   :  { %914 = vmatpush3.bf16.msra.mxu1 %v982_v3  ;;  %893 = vmatprep.subr.bf16.mxu0 %v983_v4 }
  0x3e   :  { %915 = vmatprep.subr.bf16.mxu1 %v984_v5 }
  0x40   :  { %894 = vmatpush3.bf16.msra.mxu0 %v985_v6 }
  0x41   :  { %916 = vmatpush3.bf16.msra.mxu1 %v986_v7 }
  0x43   :  { %687 = vmatmul.mubr.bf16.vlgmr.msra.gmra.mrb[4].mxu0 %v767_v10 }
  0x44   :  { %728 = vmatmul.mubr.bf16.vlgmr.msra.gmra.mrb[4].mxu1 %v769_v14 }
  0xf6   :  { %v851_v16 = vpop.f32.mrb[0].mxu0 }
  0xf7   :  { %v873_v17 = vpop.f32.mrb[0].mxu1  ;;  %v852_v18 = vpop.f32.mrb[1].mxu0 }
  0xf8   :  { %v853_v19 = vadd.f32 %v852_v18, %v851_v16  ;;  %v874_v20 = vpop.f32.mrb[1].mxu1  ;;  %v854_v21 = vpop.f32.mrb[2].mxu0 }
  0xf9   :  { %v875_v22 = vadd.f32 %v874_v20, %v873_v17  ;;  %v876_v23 = vpop.f32.mrb[2].mxu1  ;;  %v855_v24 = vpop.f32.mrb[3].mxu0 }
  0xfa   :  { %v856_v25 = vadd.f32 %v855_v24, %v854_v21  ;;  %v877_v26 = vpop.f32.mrb[3].mxu1 }
  0xfb   :  { %v648_v27 = vadd.f32 %v875_v22, %v853_v19  ;;  %v878_v28 = vadd.f32 %v877_v26, %v876_v23 }
  0xfd   :  { %v651_v29 = vadd.f32 %v878_v28, %v856_v25 }
 0x116   :  { %v895_v30 = vpop.f32.mrb[4].mxu0 }
 0x117   :  { %v917_v31 = vpop.f32.mrb[4].mxu1  ;;  %v896_v32 = vpop.f32.mrb[5].mxu0 }
 0x118   :  { %v897_v33 = vadd.f32 %v896_v32, %v895_v30  ;;  %v918_v34 = vpop.f32.mrb[5].mxu1  ;;  %v898_v35 = vpop.f32.mrb[6].mxu0 }
 0x119   :  { %v919_v36 = vadd.f32 %v918_v34, %v917_v31  ;;  %v920_v37 = vpop.f32.mrb[6].mxu1  ;;  %v899_v38 = vpop.f32.mrb[7].mxu0 }
 0x11a   :  { %v689_v39 = vadd.f32 %v897_v33, %v648_v27  ;;  %v900_v40 = vadd.f32 %v899_v38, %v898_v35  ;;  %v921_v41 = vpop.f32.mrb[7].mxu1 }
 0x11b   :  { %v922_v42 = vadd.f32 %v921_v41, %v920_v37 }
 0x11c   :  { %v730_v43 = vadd.f32 %v919_v36, %v689_v39  ;;  %v692_v44 = vadd.f32 %v900_v40, %v651_v29 }
 0x11e   :  { %v736_v45 = vand.u32 2147483647, %v730_v43  ;;  %v733_v46 = vadd.f32 %v922_v42, %v692_v44  ;;  %vm744_vm1 = vcmp.ge.f32.partialorder %v730_v43, 0.0 }
 0x120   :  { %v738_v47 = vsub.f32 0.0, %v736_v45  ;;  %v737_v48 = vand.u32 2147483647, %v733_v46  ;;  %vm745_vm2 = vcmp.ge.f32.partialorder %v733_v46, 0.0 }
 0x122   :  { %v740_v49 = vmul.f32 1.442695, %v738_v47  ;;  %v739_v50 = vsub.f32 0.0, %v737_v48 }
 0x124   :  { %987 = vpow2.f32 %v740_v49  ;;  %v742_v51 = vmul.f32 1.442695, %v739_v50 }
 0x126   :  { %989 = vpow2.f32 %v742_v51 }
 0x12e   :  { %v988_v52 = vpop.eup %987 }
 0x12f   :  { %v746_v53 = vadd.f32 1.0, %v988_v52 }
 0x130   :  { %v990_v54 = vpop.eup %989 }
 0x131   :  { %991 = vrcp.f32 %v746_v53  ;;  %v747_v55 = vadd.f32 1.0, %v990_v54 }
 0x133   :  { %993 = vrcp.f32 %v747_v55 }
 0x13b   :  { %v992_v56 = vpop.eup %991 }
 0x13c   :  { %v752_v57 = vmul.f32 %v992_v56, %v988_v52 }
 0x13d   :  { %v994_v58 = vpop.eup %993 }
 0x13e   :  { %v754_v59 = vsel %vm744_vm1, %v992_v56, %v752_v57  ;;  %v753_v60 = vmul.f32 %v994_v58, %v990_v54 }
 0x13f   :  { %757 = vst.msk [vmem:[%s1234_s2] sm:$0xff] %vm756_vm0, %v754_v59 }
 0x140   :  { %v755_v61 = vsel %vm745_vm2, %v994_v58, %v753_v60 }
 0x141   :  { %758 = vst.msk [vmem:[%s1234_s2 + $0x8] sm:$0xff] %vm756_vm0, %v755_v61 }

</bundles_post_ra>
